<compile_context>
chip_gen: v7x
topology: tpu7x:2x2x1
jax: 0.10.0
libtpu: 0.0.40
codegen_flags: <defaults>
</compile_context>

<pallas_src>
import functools

import numpy as np

import jax
import jax.numpy as jnp
from jax.experimental import pallas as pl
from jax.experimental.pallas import tpu as pltpu


def _round_up(x, m):
    return ((x + m - 1) // m) * m


# ----------------------------------------------------------------------------
# Pallas kernels
# ----------------------------------------------------------------------------
def _matmul_affine_kernel(x_ref, w_ref, s_ref, b_ref, o_ref, *, relu):
    """o = act((x @ w) * scale + bias) — bf16 MXU matmul, f32 accumulate/epilogue."""
    acc = jnp.dot(x_ref[...], w_ref[...], preferred_element_type=jnp.float32)
    y = acc * s_ref[...] + b_ref[...]
    if relu:
        y = jnp.maximum(y, 0.0)
    o_ref[...] = y.astype(o_ref.dtype)


def matmul_affine(x, w, scale, bias, relu=True, out_dtype=jnp.bfloat16, tm_max=256):
    """x:[M,K](bf16) @ w:[K,N](bf16, N multiple of 128) + per-column affine.

    Tiled over M ("parallel" grid axis -> pipelining + megacore on v7x); K and N
    stay un-tiled (K <= 1152, N <= 256 here), output stores are full-lane (N%128==0).
    """
    M, K = x.shape
    N = w.shape[1]
    tm = min(tm_max, _round_up(M, 8))
    Mp = _round_up(M, tm)
    if Mp != M:
        x = jnp.pad(x, ((0, Mp - M), (0, 0)))

    in_isz = np.dtype(x.dtype).itemsize
    out_isz = np.dtype(out_dtype).itemsize
    cost = pl.CostEstimate(
        flops=2 * Mp * K * N,
        transcendentals=0,
        bytes_accessed=int(Mp * K * in_isz + K * N * in_isz + 2 * N * 4 + Mp * N * out_isz),
    )

    out = pl.pallas_call(
        functools.partial(_matmul_affine_kernel, relu=relu),
        out_shape=jax.ShapeDtypeStruct((Mp, N), out_dtype),
        grid=(Mp // tm,),
        in_specs=[
            pl.BlockSpec((tm, K), lambda i: (i, 0)),
            pl.BlockSpec((K, N), lambda i: (0, 0)),
            pl.BlockSpec((1, N), lambda i: (0, 0)),
            pl.BlockSpec((1, N), lambda i: (0, 0)),
        ],
        out_specs=pl.BlockSpec((tm, N), lambda i: (i, 0)),
        compiler_params=pltpu.CompilerParams(dimension_semantics=("parallel",)),
        cost_estimate=cost,
    )(
        x,
        w,
        scale.reshape(1, N).astype(jnp.float32),
        bias.reshape(1, N).astype(jnp.float32),
    )
    return out[:M] if Mp != M else out


def _head_kernel(x_ref, fcw_ref, s_ref, b_ref, hw_ref, hb_ref, o_ref, *, inv_hw):
    """Fused GlobalAveragePool + Linear+BN1d+ReLU + inference Linear head."""
    # GAP over the (flattened) spatial axis, f32.
    f = jnp.sum(x_ref[...].astype(jnp.float32), axis=1) * inv_hw          # [B, C]
    # Linear(256,256) + folded BatchNorm1d + ReLU   (Dropout = identity in eval)
    h = jnp.dot(f.astype(jnp.bfloat16), fcw_ref[...],
                preferred_element_type=jnp.float32)
    h = jnp.maximum(h * s_ref[...] + b_ref[...], 0.0)
    # Inference head: Linear(256, n_outs) padded to 128 lanes, no activation.
    o = jnp.dot(h.astype(jnp.bfloat16), hw_ref[...],
                preferred_element_type=jnp.float32)
    o_ref[...] = (o + hb_ref[...]).astype(o_ref.dtype)


# ----------------------------------------------------------------------------
# XLA glue: im2col (bf16, real channels only) and 2x2 max-pool (strided maximum)
# ----------------------------------------------------------------------------
def im2col(x, cin, k, stride):
    """x: [B,H,W,C>=cin] NHWC (possibly channel-padded); uses only first `cin`
    channels.  SAME-ish padding k//2.  Returns bf16 [B*Ho*Wo, k*k*cin]."""
    B, H, W, _ = x.shape
    pad = k // 2
    sh, sw = stride
    xp = jnp.pad(x[..., :cin], ((0, 0), (pad, pad), (pad, pad), (0, 0)))
    Ho = (H + 2 * pad - k) // sh + 1
    Wo = (W + 2 * pad - k) // sw + 1
    cols = []
    for dy in range(k):
        for dx in range(k):
            cols.append(
                xp[:, dy: dy + sh * (Ho - 1) + 1: sh,
                      dx: dx + sw * (Wo - 1) + 1: sw, :]
            )
    patches = jnp.concatenate(cols, axis=-1)           # [B, Ho, Wo, k*k*cin]
    return patches.reshape(B * Ho * Wo, k * k * cin).astype(jnp.bfloat16), (B, Ho, Wo)


def max_pool_2x2(x):
    """F.max_pool2d(x, 2) on NHWC via strided-slice maxima (no extra kernel launch)."""
    B, H, W, C = x.shape
    assert H % 2 == 0 and W % 2 == 0
    m = jnp.maximum(x[:, 0::2, :, :], x[:, 1::2, :, :])
    return jnp.maximum(m[:, :, 0::2, :], m[:, :, 1::2, :])


def conv_block(x, p, pool):
    """ConvBlock2d.forward: relu(bn(conv(x))) [+ max_pool2d(2)] — NHWC, lane-dense out."""
    w = p["w"]                                        # [k, k, Cin, Cout] (HWIO)
    k, cin, cout = w.shape[0], w.shape[2], w.shape[3]
    cpad = _round_up(cout, 128)                       # lane-dense output channels

    patches, (B, Ho, Wo) = im2col(x, cin, k, p["stride"])
    wmat = w.reshape(k * k * cin, cout)

    # Fold conv bias + eval-mode BatchNorm into a per-channel affine.
    inv_std = 1.0 / jnp.sqrt(p["bn_var"] + 1e-5)
    scale = p["bn_gamma"] * inv_std
    bias = (p["b"] - p["bn_mean"]) * scale + p["bn_beta"]

    if cpad != cout:                                  # zero-pad N to 128 lanes
        wmat = jnp.pad(wmat, ((0, 0), (0, cpad - cout)))
        scale = jnp.pad(scale, (0, cpad - cout))
        bias = jnp.pad(bias, (0, cpad - cout))

    y = matmul_affine(patches, wmat.astype(jnp.bfloat16), scale, bias, relu=True)
    y = y.reshape(B, Ho, Wo, cpad)
    if pool:
        y = max_pool_2x2(y)
    return y                                          # padded channels are all zero


def head_forward(params, x):
    """GAP + Linear(256,256)+BN1d+ReLU + Linear(256,n_outs) in one Pallas kernel."""
    B, H, W, C = x.shape
    fc, bn, hd = params["fc"], params["fc_bn"], params["head"]

    inv_std = 1.0 / jnp.sqrt(bn["var"] + 1e-5)
    s = bn["gamma"] * inv_std
    b = (fc["b"] - bn["mean"]) * s + bn["beta"]

    n_outs = hd["w"].shape[1]
    npad = _round_up(n_outs, 128)
    hw = jnp.pad(hd["w"], ((0, 0), (0, npad - n_outs))).astype(jnp.bfloat16)
    hb = jnp.pad(hd["b"], (0, npad - n_outs)).astype(jnp.float32)

    xf = x.reshape(B, H * W, C)
    out = pl.pallas_call(
        functools.partial(_head_kernel, inv_hw=1.0 / (H * W)),
        out_shape=jax.ShapeDtypeStruct((B, npad), jnp.float32),
        grid=(1,),
        in_specs=[
            pl.BlockSpec((B, H * W, C), lambda i: (0, 0, 0)),
            pl.BlockSpec((C, C), lambda i: (0, 0)),
            pl.BlockSpec((1, C), lambda i: (0, 0)),
            pl.BlockSpec((1, C), lambda i: (0, 0)),
            pl.BlockSpec((C, npad), lambda i: (0, 0)),
            pl.BlockSpec((1, npad), lambda i: (0, 0)),
        ],
        out_specs=pl.BlockSpec((B, npad), lambda i: (0, 0)),
    )(
        xf,
        fc["w"].astype(jnp.bfloat16),
        s.reshape(1, C).astype(jnp.float32),
        b.reshape(1, C).astype(jnp.float32),
        hw,
        hb.reshape(1, npad),
    )
    return out[:, :n_outs]


# ----------------------------------------------------------------------------
# Deterministic parameter init (synthetic; mirrors layer shapes of the module)
# ----------------------------------------------------------------------------
def glorot_uniform(key, shape, fan_in, fan_out):
    bound = (6.0 / (fan_in + fan_out)) ** 0.5
    return jax.random.uniform(key, shape, jnp.float32, -bound, bound)


def init_conv_block(key, cin, cout, k, stride=(1, 1)):
    ks = jax.random.split(key, 6)
    fan_in, fan_out = cin * k * k, cout * k * k
    return dict(
        w=glorot_uniform(ks[0], (k, k, cin, cout), fan_in, fan_out),
        b=jax.random.uniform(ks[1], (cout,), jnp.float32, -0.05, 0.05),
        bn_gamma=jax.random.uniform(ks[2], (cout,), jnp.float32, 0.8, 1.2),
        bn_beta=jax.random.uniform(ks[3], (cout,), jnp.float32, -0.1, 0.1),
        bn_mean=jax.random.uniform(ks[4], (cout,), jnp.float32, -0.1, 0.1),
        bn_var=jax.random.uniform(ks[5], (cout,), jnp.float32, 0.5, 1.5),
        stride=stride,
    )


def init_linear(key, fin, fout, glorot=True):
    kw, kb = jax.random.split(key)
    if glorot:
        w = glorot_uniform(kw, (fin, fout), fin, fout)
    else:
        bound = 1.0 / fin ** 0.5
        w = jax.random.uniform(kw, (fin, fout), jnp.float32, -bound, bound)
    b = jax.random.uniform(kb, (fout,), jnp.float32, -0.05, 0.05)
    return dict(w=w, b=b)


def init_bn1d(key, n):
    ks = jax.random.split(key, 4)
    return dict(
        gamma=jax.random.uniform(ks[0], (n,), jnp.float32, 0.8, 1.2),
        beta=jax.random.uniform(ks[1], (n,), jnp.float32, -0.1, 0.1),
        mean=jax.random.uniform(ks[2], (n,), jnp.float32, -0.1, 0.1),
        var=jax.random.uniform(ks[3], (n,), jnp.float32, 0.5, 1.5),
    )


def init_vgg_mtl(key, n_outs=50):
    """VGGlikeMTL(tasks=['tag'], branch_at='2', n_outs=50)."""
    ks = jax.random.split(key, 10)
    return dict(
        conv1=init_conv_block(ks[0], 2, 16, 5, stride=(2, 1)),    # shared
        conv2=init_conv_block(ks[1], 16, 32, 3),                  # branch feature
        conv3=init_conv_block(ks[2], 32, 64, 3),
        conv4=init_conv_block(ks[3], 64, 64, 3),
        conv5=init_conv_block(ks[4], 64, 128, 3),
        conv6=init_conv_block(ks[5], 128, 256, 3),                # pool_size=None
        conv7=init_conv_block(ks[6], 256, 256, 1),                # pool_size=None
        fc=init_linear(ks[7], 256, 256, glorot=True),
        fc_bn=init_bn1d(ks[8], 256),
        head=init_linear(ks[9], 256, n_outs, glorot=False),       # branches_infer
    )


# ----------------------------------------------------------------------------
# Forward (task='tag' path of VGGlikeMTL.forward)
# ----------------------------------------------------------------------------
def vgg_mtl_forward(params, x_nchw):
    # Accepts NCHW like PyTorch; NHWC internally so channels map onto TPU lanes.
    x = jnp.transpose(x_nchw, (0, 2, 3, 1)).astype(jnp.float32)
    # shared (branch_at='2'): ConvBlock2d(2,16,5,stride=(2,1),pool=2)
    x = conv_block(x, params["conv1"], pool=True)
    # branch feature
    x = conv_block(x, params["conv2"], pool=True)
    x = conv_block(x, params["conv3"], pool=True)
    x = conv_block(x, params["conv4"], pool=True)
    x = conv_block(x, params["conv5"], pool=True)
    x = conv_block(x, params["conv6"], pool=False)
    x = conv_block(x, params["conv7"], pool=False)
    # GAP + Linear+BN1d+ReLU (+Dropout=id) + Linear(256, n_outs) — one fused kernel.
    return head_forward(params, x)
    # TODO(synk): 'self_' siamese path (pair of inputs -> cat -> Linear 512->128->2)
    #             not wired; this script implements the single-input task path.


if __name__ == "__main__":
    key = jax.random.PRNGKey(0)
    pkey, xkey = jax.random.split(key)
    params = init_vgg_mtl(pkey, n_outs=50)

    # Smallest spatial size surviving the stride-2 conv + five 2x2 max-pools:
    # H=64 -> 32 -> 16 -> 8 -> 4 -> 2 -> 1 ;  W=32 -> 32 -> 16 -> 8 -> 4 -> 2 -> 1
    x = jax.random.normal(xkey, (2, 2, 64, 32), jnp.float32)  # NCHW, 2 input channels

    fwd = jax.jit(lambda inp: vgg_mtl_forward(params, inp))
    out = jax.block_until_ready(fwd(x))
    assert out.shape == (2, 50) and out.dtype == jnp.float32
    print("KERNEL_OK")
</pallas_src>

<mosaic_0001>
module attributes {stable_mosaic.version = 11 : i64} {
  func.func @_matmul_affine_kernel(%arg0: i32, %arg1: memref<256x50xbf16, #tpu.memory_space<vmem>>, %arg2: memref<50x128xbf16, #tpu.memory_space<vmem>>, %arg3: memref<1x128xf32, #tpu.memory_space<vmem>>, %arg4: memref<1x128xf32, #tpu.memory_space<vmem>>, %arg5: memref<256x128xbf16, #tpu.memory_space<vmem>>) attributes {dimension_semantics = [#tpu.dimension_semantics<parallel>], iteration_bounds = array<i64: 8>, scalar_prefetch = 0 : i64, scratch_operands = 0 : i64, tpu.core_type = #tpu.core_type<tc>, window_params = [{transform_indices = @transform_0, window_bounds = array<i64: 256, 50>}, {pipeline_mode = #tpu.pipeline_mode<synchronous>, transform_indices = @transform_1, window_bounds = array<i64: 50, 128>}, {pipeline_mode = #tpu.pipeline_mode<synchronous>, transform_indices = @transform_2, window_bounds = array<i64: 1, 128>}, {pipeline_mode = #tpu.pipeline_mode<synchronous>, transform_indices = @transform_3, window_bounds = array<i64: 1, 128>}, {transform_indices = @transform_4, window_bounds = array<i64: 256, 128>}]} {
    %c0 = arith.constant 0 : index
    %c0_0 = arith.constant 0 : index
    %0 = vector.load %arg1[%c0, %c0_0] : memref<256x50xbf16, #tpu.memory_space<vmem>>, vector<256x50xbf16>
    %c0_1 = arith.constant 0 : index
    %c0_2 = arith.constant 0 : index
    %1 = vector.load %arg2[%c0_1, %c0_2] : memref<50x128xbf16, #tpu.memory_space<vmem>>, vector<50x128xbf16>
    %cst = arith.constant dense<0.000000e+00> : vector<256x128xf32>
    %2 = tpu.matmul %0, %1, %cst {dimension_numbers = #tpu.dot_dimension_numbers<[1], [0], [0], [1], [0, 0, 1, 1], [], []>} : vector<256x50xbf16>, vector<50x128xbf16>, vector<256x128xf32> -> vector<256x128xf32>
    %c0_3 = arith.constant 0 : index
    %c0_4 = arith.constant 0 : index
    %3 = vector.load %arg3[%c0_3, %c0_4] : memref<1x128xf32, #tpu.memory_space<vmem>>, vector<1x128xf32>
    %4 = vector.broadcast %3 : vector<1x128xf32> to vector<256x128xf32>
    %5 = arith.mulf %2, %4 : vector<256x128xf32>
    %c0_5 = arith.constant 0 : index
    %c0_6 = arith.constant 0 : index
    %6 = vector.load %arg4[%c0_5, %c0_6] : memref<1x128xf32, #tpu.memory_space<vmem>>, vector<1x128xf32>
    %7 = vector.broadcast %6 : vector<1x128xf32> to vector<256x128xf32>
    %8 = arith.addf %5, %7 : vector<256x128xf32>
    %cst_7 = arith.constant 0.000000e+00 : f32
    %9 = vector.broadcast %cst_7 : f32 to vector<256x128xf32>
    %10 = arith.maximumf %8, %9 : vector<256x128xf32>
    %11 = arith.truncf %10 : vector<256x128xf32> to vector<256x128xbf16>
    %c0_8 = arith.constant 0 : index
    %c0_9 = arith.constant 0 : index
    %12 = vector.load %arg5[%c0_8, %c0_9] : memref<256x128xbf16, #tpu.memory_space<vmem>>, vector<256x128xbf16>
    tpu.vector_store %arg5[%c0_8, %c0_9], %11 {strides = array<i32>} : memref<256x128xbf16, #tpu.memory_space<vmem>>, vector<256x128xbf16>,
    return
  }
  func.func @transform_0(%arg0: i32) -> (i32, i32) {
    %c0_i32 = arith.constant 0 : i32
    %c0_i32_0 = arith.constant 0 : i32
    return %arg0, %c0_i32 : i32, i32
  }
  func.func @transform_1(%arg0: i32) -> (i32, i32) {
    %c0_i32 = arith.constant 0 : i32
    %c0_i32_0 = arith.constant 0 : i32
    %c0_i32_1 = arith.constant 0 : i32
    return %c0_i32, %c0_i32_0 : i32, i32
  }
  func.func @transform_2(%arg0: i32) -> (i32, i32) {
    %c0_i32 = arith.constant 0 : i32
    %c0_i32_0 = arith.constant 0 : i32
    %c0_i32_1 = arith.constant 0 : i32
    return %c0_i32, %c0_i32_0 : i32, i32
  }
  func.func @transform_3(%arg0: i32) -> (i32, i32) {
    %c0_i32 = arith.constant 0 : i32
    %c0_i32_0 = arith.constant 0 : i32
    %c0_i32_1 = arith.constant 0 : i32
    return %c0_i32, %c0_i32_0 : i32, i32
  }
  func.func @transform_4(%arg0: i32) -> (i32, i32) {
    %c0_i32 = arith.constant 0 : i32
    %c0_i32_0 = arith.constant 0 : i32
    return %arg0, %c0_i32 : i32, i32
  }
}

module attributes {stable_mosaic.version = 11 : i64} {
  func.func @_matmul_affine_kernel(%arg0: i32, %arg1: memref<256x144xbf16, #tpu.memory_space<vmem>>, %arg2: memref<144x128xbf16, #tpu.memory_space<vmem>>, %arg3: memref<1x128xf32, #tpu.memory_space<vmem>>, %arg4: memref<1x128xf32, #tpu.memory_space<vmem>>, %arg5: memref<256x128xbf16, #tpu.memory_space<vmem>>) attributes {dimension_semantics = [#tpu.dimension_semantics<parallel>], iteration_bounds = array<i64: 2>, scalar_prefetch = 0 : i64, scratch_operands = 0 : i64, tpu.core_type = #tpu.core_type<tc>, window_params = [{transform_indices = @transform_0, window_bounds = array<i64: 256, 144>}, {pipeline_mode = #tpu.pipeline_mode<synchronous>, transform_indices = @transform_1, window_bounds = array<i64: 144, 128>}, {pipeline_mode = #tpu.pipeline_mode<synchronous>, transform_indices = @transform_2, window_bounds = array<i64: 1, 128>}, {pipeline_mode = #tpu.pipeline_mode<synchronous>, transform_indices = @transform_3, window_bounds = array<i64: 1, 128>}, {transform_indices = @transform_4, window_bounds = array<i64: 256, 128>}]} {
    %c0 = arith.constant 0 : index
    %c0_0 = arith.constant 0 : index
    %0 = vector.load %arg1[%c0, %c0_0] : memref<256x144xbf16, #tpu.memory_space<vmem>>, vector<256x144xbf16>
    %c0_1 = arith.constant 0 : index
    %c0_2 = arith.constant 0 : index
    %1 = vector.load %arg2[%c0_1, %c0_2] : memref<144x128xbf16, #tpu.memory_space<vmem>>, vector<144x128xbf16>
    %cst = arith.constant dense<0.000000e+00> : vector<256x128xf32>
    %2 = tpu.matmul %0, %1, %cst {dimension_numbers = #tpu.dot_dimension_numbers<[1], [0], [0], [1], [0, 0, 1, 1], [], []>} : vector<256x144xbf16>, vector<144x128xbf16>, vector<256x128xf32> -> vector<256x128xf32>
    %c0_3 = arith.constant 0 : index
    %c0_4 = arith.constant 0 : index
    %3 = vector.load %arg3[%c0_3, %c0_4] : memref<1x128xf32, #tpu.memory_space<vmem>>, vector<1x128xf32>
    %4 = vector.broadcast %3 : vector<1x128xf32> to vector<256x128xf32>
    %5 = arith.mulf %2, %4 : vector<256x128xf32>
    %c0_5 = arith.constant 0 : index
    %c0_6 = arith.constant 0 : index
    %6 = vector.load %arg4[%c0_5, %c0_6] : memref<1x128xf32, #tpu.memory_space<vmem>>, vector<1x128xf32>
    %7 = vector.broadcast %6 : vector<1x128xf32> to vector<256x128xf32>
    %8 = arith.addf %5, %7 : vector<256x128xf32>
    %cst_7 = arith.constant 0.000000e+00 : f32
    %9 = vector.broadcast %cst_7 : f32 to vector<256x128xf32>
    %10 = arith.maximumf %8, %9 : vector<256x128xf32>
    %11 = arith.truncf %10 : vector<256x128xf32> to vector<256x128xbf16>
    %c0_8 = arith.constant 0 : index
    %c0_9 = arith.constant 0 : index
    %12 = vector.load %arg5[%c0_8, %c0_9] : memref<256x128xbf16, #tpu.memory_space<vmem>>, vector<256x128xbf16>
    tpu.vector_store %arg5[%c0_8, %c0_9], %11 {strides = array<i32>} : memref<256x128xbf16, #tpu.memory_space<vmem>>, vector<256x128xbf16>,
    return
  }
  func.func @transform_0(%arg0: i32) -> (i32, i32) {
    %c0_i32 = arith.constant 0 : i32
    %c0_i32_0 = arith.constant 0 : i32
    return %arg0, %c0_i32 : i32, i32
  }
  func.func @transform_1(%arg0: i32) -> (i32, i32) {
    %c0_i32 = arith.constant 0 : i32
    %c0_i32_0 = arith.constant 0 : i32
    %c0_i32_1 = arith.constant 0 : i32
    return %c0_i32, %c0_i32_0 : i32, i32
  }
  func.func @transform_2(%arg0: i32) -> (i32, i32) {
    %c0_i32 = arith.constant 0 : i32
    %c0_i32_0 = arith.constant 0 : i32
    %c0_i32_1 = arith.constant 0 : i32
    return %c0_i32, %c0_i32_0 : i32, i32
  }
  func.func @transform_3(%arg0: i32) -> (i32, i32) {
    %c0_i32 = arith.constant 0 : i32
    %c0_i32_0 = arith.constant 0 : i32
    %c0_i32_1 = arith.constant 0 : i32
    return %c0_i32, %c0_i32_0 : i32, i32
  }
  func.func @transform_4(%arg0: i32) -> (i32, i32) {
    %c0_i32 = arith.constant 0 : i32
    %c0_i32_0 = arith.constant 0 : i32
    return %arg0, %c0_i32 : i32, i32
  }
}

module attributes {stable_mosaic.version = 11 : i64} {
  func.func @_matmul_affine_kernel(%arg0: i32, %arg1: memref<128x288xbf16, #tpu.memory_space<vmem>>, %arg2: memref<288x128xbf16, #tpu.memory_space<vmem>>, %arg3: memref<1x128xf32, #tpu.memory_space<vmem>>, %arg4: memref<1x128xf32, #tpu.memory_space<vmem>>, %arg5: memref<128x128xbf16, #tpu.memory_space<vmem>>) attributes {dimension_semantics = [#tpu.dimension_semantics<parallel>], iteration_bounds = array<i64: 1>, scalar_prefetch = 0 : i64, scratch_operands = 0 : i64, tpu.core_type = #tpu.core_type<tc>, window_params = [{transform_indices = @transform_0, window_bounds = array<i64: 128, 288>}, {pipeline_mode = #tpu.pipeline_mode<synchronous>, transform_indices = @transform_1, window_bounds = array<i64: 288, 128>}, {pipeline_mode = #tpu.pipeline_mode<synchronous>, transform_indices = @transform_2, window_bounds = array<i64: 1, 128>}, {pipeline_mode = #tpu.pipeline_mode<synchronous>, transform_indices = @transform_3, window_bounds = array<i64: 1, 128>}, {transform_indices = @transform_4, window_bounds = array<i64: 128, 128>}]} {
    %c0 = arith.constant 0 : index
    %c0_0 = arith.constant 0 : index
    %0 = vector.load %arg1[%c0, %c0_0] : memref<128x288xbf16, #tpu.memory_space<vmem>>, vector<128x288xbf16>
    %c0_1 = arith.constant 0 : index
    %c0_2 = arith.constant 0 : index
    %1 = vector.load %arg2[%c0_1, %c0_2] : memref<288x128xbf16, #tpu.memory_space<vmem>>, vector<288x128xbf16>
    %cst = arith.constant dense<0.000000e+00> : vector<128x128xf32>
    %2 = tpu.matmul %0, %1, %cst {dimension_numbers = #tpu.dot_dimension_numbers<[1], [0], [0], [1], [0, 0, 1, 1], [], []>} : vector<128x288xbf16>, vector<288x128xbf16>, vector<128x128xf32> -> vector<128x128xf32>
    %c0_3 = arith.constant 0 : index
    %c0_4 = arith.constant 0 : index
    %3 = vector.load %arg3[%c0_3, %c0_4] : memref<1x128xf32, #tpu.memory_space<vmem>>, vector<1x128xf32>
    %4 = vector.broadcast %3 : vector<1x128xf32> to vector<128x128xf32>
    %5 = arith.mulf %2, %4 : vector<128x128xf32>
    %c0_5 = arith.constant 0 : index
    %c0_6 = arith.constant 0 : index
    %6 = vector.load %arg4[%c0_5, %c0_6] : memref<1x128xf32, #tpu.memory_space<vmem>>, vector<1x128xf32>
    %7 = vector.broadcast %6 : vector<1x128xf32> to vector<128x128xf32>
    %8 = arith.addf %5, %7 : vector<128x128xf32>
    %cst_7 = arith.constant 0.000000e+00 : f32
    %9 = vector.broadcast %cst_7 : f32 to vector<128x128xf32>
    %10 = arith.maximumf %8, %9 : vector<128x128xf32>
    %11 = arith.truncf %10 : vector<128x128xf32> to vector<128x128xbf16>
    %c0_8 = arith.constant 0 : index
    %c0_9 = arith.constant 0 : index
    %12 = vector.load %arg5[%c0_8, %c0_9] : memref<128x128xbf16, #tpu.memory_space<vmem>>, vector<128x128xbf16>
    tpu.vector_store %arg5[%c0_8, %c0_9], %11 {strides = array<i32>} : memref<128x128xbf16, #tpu.memory_space<vmem>>, vector<128x128xbf16>,
    return
  }
  func.func @transform_0(%arg0: i32) -> (i32, i32) {
    %c0_i32 = arith.constant 0 : i32
    %c0_i32_0 = arith.constant 0 : i32
    return %arg0, %c0_i32 : i32, i32
  }
  func.func @transform_1(%arg0: i32) -> (i32, i32) {
    %c0_i32 = arith.constant 0 : i32
    %c0_i32_0 = arith.constant 0 : i32
    %c0_i32_1 = arith.constant 0 : i32
    return %c0_i32, %c0_i32_0 : i32, i32
  }
  func.func @transform_2(%arg0: i32) -> (i32, i32) {
    %c0_i32 = arith.constant 0 : i32
    %c0_i32_0 = arith.constant 0 : i32
    %c0_i32_1 = arith.constant 0 : i32
    return %c0_i32, %c0_i32_0 : i32, i32
  }
  func.func @transform_3(%arg0: i32) -> (i32, i32) {
    %c0_i32 = arith.constant 0 : i32
    %c0_i32_0 = arith.constant 0 : i32
    %c0_i32_1 = arith.constant 0 : i32
    return %c0_i32, %c0_i32_0 : i32, i32
  }
  func.func @transform_4(%arg0: i32) -> (i32, i32) {
    %c0_i32 = arith.constant 0 : i32
    %c0_i32_0 = arith.constant 0 : i32
    return %arg0, %c0_i32 : i32, i32
  }
}

module attributes {stable_mosaic.version = 11 : i64} {
  func.func @_matmul_affine_kernel(%arg0: i32, %arg1: memref<32x576xbf16, #tpu.memory_space<vmem>>, %arg2: memref<576x128xbf16, #tpu.memory_space<vmem>>, %arg3: memref<1x128xf32, #tpu.memory_space<vmem>>, %arg4: memref<1x128xf32, #tpu.memory_space<vmem>>, %arg5: memref<32x128xbf16, #tpu.memory_space<vmem>>) attributes {dimension_semantics = [#tpu.dimension_semantics<parallel>], iteration_bounds = array<i64: 1>, scalar_prefetch = 0 : i64, scratch_operands = 0 : i64, tpu.core_type = #tpu.core_type<tc>, window_params = [{transform_indices = @transform_0, window_bounds = array<i64: 32, 576>}, {pipeline_mode = #tpu.pipeline_mode<synchronous>, transform_indices = @transform_1, window_bounds = array<i64: 576, 128>}, {pipeline_mode = #tpu.pipeline_mode<synchronous>, transform_indices = @transform_2, window_bounds = array<i64: 1, 128>}, {pipeline_mode = #tpu.pipeline_mode<synchronous>, transform_indices = @transform_3, window_bounds = array<i64: 1, 128>}, {transform_indices = @transform_4, window_bounds = array<i64: 32, 128>}]} {
    %c0 = arith.constant 0 : index
    %c0_0 = arith.constant 0 : index
    %0 = vector.load %arg1[%c0, %c0_0] : memref<32x576xbf16, #tpu.memory_space<vmem>>, vector<32x576xbf16>
    %c0_1 = arith.constant 0 : index
    %c0_2 = arith.constant 0 : index
    %1 = vector.load %arg2[%c0_1, %c0_2] : memref<576x128xbf16, #tpu.memory_space<vmem>>, vector<576x128xbf16>
    %cst = arith.constant dense<0.000000e+00> : vector<32x128xf32>
    %2 = tpu.matmul %0, %1, %cst {dimension_numbers = #tpu.dot_dimension_numbers<[1], [0], [0], [1], [0, 0, 1, 1], [], []>} : vector<32x576xbf16>, vector<576x128xbf16>, vector<32x128xf32> -> vector<32x128xf32>
    %c0_3 = arith.constant 0 : index
    %c0_4 = arith.constant 0 : index
    %3 = vector.load %arg3[%c0_3, %c0_4] : memref<1x128xf32, #tpu.memory_space<vmem>>, vector<1x128xf32>
    %4 = vector.broadcast %3 : vector<1x128xf32> to vector<32x128xf32>
    %5 = arith.mulf %2, %4 : vector<32x128xf32>
    %c0_5 = arith.constant 0 : index
    %c0_6 = arith.constant 0 : index
    %6 = vector.load %arg4[%c0_5, %c0_6] : memref<1x128xf32, #tpu.memory_space<vmem>>, vector<1x128xf32>
    %7 = vector.broadcast %6 : vector<1x128xf32> to vector<32x128xf32>
    %8 = arith.addf %5, %7 : vector<32x128xf32>
    %cst_7 = arith.constant 0.000000e+00 : f32
    %9 = vector.broadcast %cst_7 : f32 to vector<32x128xf32>
    %10 = arith.maximumf %8, %9 : vector<32x128xf32>
    %11 = arith.truncf %10 : vector<32x128xf32> to vector<32x128xbf16>
    %c0_8 = arith.constant 0 : index
    %c0_9 = arith.constant 0 : index
    %12 = vector.load %arg5[%c0_8, %c0_9] : memref<32x128xbf16, #tpu.memory_space<vmem>>, vector<32x128xbf16>
    tpu.vector_store %arg5[%c0_8, %c0_9], %11 {strides = array<i32>} : memref<32x128xbf16, #tpu.memory_space<vmem>>, vector<32x128xbf16>,
    return
  }
  func.func @transform_0(%arg0: i32) -> (i32, i32) {
    %c0_i32 = arith.constant 0 : i32
    %c0_i32_0 = arith.constant 0 : i32
    return %arg0, %c0_i32 : i32, i32
  }
  func.func @transform_1(%arg0: i32) -> (i32, i32) {
    %c0_i32 = arith.constant 0 : i32
    %c0_i32_0 = arith.constant 0 : i32
    %c0_i32_1 = arith.constant 0 : i32
    return %c0_i32, %c0_i32_0 : i32, i32
  }
  func.func @transform_2(%arg0: i32) -> (i32, i32) {
    %c0_i32 = arith.constant 0 : i32
    %c0_i32_0 = arith.constant 0 : i32
    %c0_i32_1 = arith.constant 0 : i32
    return %c0_i32, %c0_i32_0 : i32, i32
  }
  func.func @transform_3(%arg0: i32) -> (i32, i32) {
    %c0_i32 = arith.constant 0 : i32
    %c0_i32_0 = arith.constant 0 : i32
    %c0_i32_1 = arith.constant 0 : i32
    return %c0_i32, %c0_i32_0 : i32, i32
  }
  func.func @transform_4(%arg0: i32) -> (i32, i32) {
    %c0_i32 = arith.constant 0 : i32
    %c0_i32_0 = arith.constant 0 : i32
    return %arg0, %c0_i32 : i32, i32
  }
}

module attributes {stable_mosaic.version = 11 : i64} {
  func.func @_matmul_affine_kernel(%arg0: i32, %arg1: memref<8x576xbf16, #tpu.memory_space<vmem>>, %arg2: memref<576x128xbf16, #tpu.memory_space<vmem>>, %arg3: memref<1x128xf32, #tpu.memory_space<vmem>>, %arg4: memref<1x128xf32, #tpu.memory_space<vmem>>, %arg5: memref<8x128xbf16, #tpu.memory_space<vmem>>) attributes {dimension_semantics = [#tpu.dimension_semantics<parallel>], iteration_bounds = array<i64: 1>, scalar_prefetch = 0 : i64, scratch_operands = 0 : i64, tpu.core_type = #tpu.core_type<tc>, window_params = [{transform_indices = @transform_0, window_bounds = array<i64: 8, 576>}, {pipeline_mode = #tpu.pipeline_mode<synchronous>, transform_indices = @transform_1, window_bounds = array<i64: 576, 128>}, {pipeline_mode = #tpu.pipeline_mode<synchronous>, transform_indices = @transform_2, window_bounds = array<i64: 1, 128>}, {pipeline_mode = #tpu.pipeline_mode<synchronous>, transform_indices = @transform_3, window_bounds = array<i64: 1, 128>}, {transform_indices = @transform_4, window_bounds = array<i64: 8, 128>}]} {
    %c0 = arith.constant 0 : index
    %c0_0 = arith.constant 0 : index
    %0 = vector.load %arg1[%c0, %c0_0] : memref<8x576xbf16, #tpu.memory_space<vmem>>, vector<8x576xbf16>
    %c0_1 = arith.constant 0 : index
    %c0_2 = arith.constant 0 : index
    %1 = vector.load %arg2[%c0_1, %c0_2] : memref<576x128xbf16, #tpu.memory_space<vmem>>, vector<576x128xbf16>
    %cst = arith.constant dense<0.000000e+00> : vector<8x128xf32>
    %2 = tpu.matmul %0, %1, %cst {dimension_numbers = #tpu.dot_dimension_numbers<[1], [0], [0], [1], [0, 0, 1, 1], [], []>} : vector<8x576xbf16>, vector<576x128xbf16>, vector<8x128xf32> -> vector<8x128xf32>
    %c0_3 = arith.constant 0 : index
    %c0_4 = arith.constant 0 : index
    %3 = vector.load %arg3[%c0_3, %c0_4] : memref<1x128xf32, #tpu.memory_space<vmem>>, vector<1x128xf32>
    %4 = vector.broadcast %3 : vector<1x128xf32> to vector<8x128xf32>
    %5 = arith.mulf %2, %4 : vector<8x128xf32>
    %c0_5 = arith.constant 0 : index
    %c0_6 = arith.constant 0 : index
    %6 = vector.load %arg4[%c0_5, %c0_6] : memref<1x128xf32, #tpu.memory_space<vmem>>, vector<1x128xf32>
    %7 = vector.broadcast %6 : vector<1x128xf32> to vector<8x128xf32>
    %8 = arith.addf %5, %7 : vector<8x128xf32>
    %cst_7 = arith.constant 0.000000e+00 : f32
    %9 = vector.broadcast %cst_7 : f32 to vector<8x128xf32>
    %10 = arith.maximumf %8, %9 : vector<8x128xf32>
    %11 = arith.truncf %10 : vector<8x128xf32> to vector<8x128xbf16>
    %c0_8 = arith.constant 0 : index
    %c0_9 = arith.constant 0 : index
    %12 = vector.load %arg5[%c0_8, %c0_9] : memref<8x128xbf16, #tpu.memory_space<vmem>>, vector<8x128xbf16>
    tpu.vector_store %arg5[%c0_8, %c0_9], %11 {strides = array<i32>} : memref<8x128xbf16, #tpu.memory_space<vmem>>, vector<8x128xbf16>,
    return
  }
  func.func @transform_0(%arg0: i32) -> (i32, i32) {
    %c0_i32 = arith.constant 0 : i32
    %c0_i32_0 = arith.constant 0 : i32
    return %arg0, %c0_i32 : i32, i32
  }
  func.func @transform_1(%arg0: i32) -> (i32, i32) {
    %c0_i32 = arith.constant 0 : i32
    %c0_i32_0 = arith.constant 0 : i32
    %c0_i32_1 = arith.constant 0 : i32
    return %c0_i32, %c0_i32_0 : i32, i32
  }
  func.func @transform_2(%arg0: i32) -> (i32, i32) {
    %c0_i32 = arith.constant 0 : i32
    %c0_i32_0 = arith.constant 0 : i32
    %c0_i32_1 = arith.constant 0 : i32
    return %c0_i32, %c0_i32_0 : i32, i32
  }
  func.func @transform_3(%arg0: i32) -> (i32, i32) {
    %c0_i32 = arith.constant 0 : i32
    %c0_i32_0 = arith.constant 0 : i32
    %c0_i32_1 = arith.constant 0 : i32
    return %c0_i32, %c0_i32_0 : i32, i32
  }
  func.func @transform_4(%arg0: i32) -> (i32, i32) {
    %c0_i32 = arith.constant 0 : i32
    %c0_i32_0 = arith.constant 0 : i32
    return %arg0, %c0_i32 : i32, i32
  }
}

module attributes {stable_mosaic.version = 11 : i64} {
  func.func @_matmul_affine_kernel(%arg0: i32, %arg1: memref<8x1152xbf16, #tpu.memory_space<vmem>>, %arg2: memref<1152x256xbf16, #tpu.memory_space<vmem>>, %arg3: memref<1x256xf32, #tpu.memory_space<vmem>>, %arg4: memref<1x256xf32, #tpu.memory_space<vmem>>, %arg5: memref<8x256xbf16, #tpu.memory_space<vmem>>) attributes {dimension_semantics = [#tpu.dimension_semantics<parallel>], iteration_bounds = array<i64: 1>, scalar_prefetch = 0 : i64, scratch_operands = 0 : i64, tpu.core_type = #tpu.core_type<tc>, window_params = [{transform_indices = @transform_0, window_bounds = array<i64: 8, 1152>}, {pipeline_mode = #tpu.pipeline_mode<synchronous>, transform_indices = @transform_1, window_bounds = array<i64: 1152, 256>}, {pipeline_mode = #tpu.pipeline_mode<synchronous>, transform_indices = @transform_2, window_bounds = array<i64: 1, 256>}, {pipeline_mode = #tpu.pipeline_mode<synchronous>, transform_indices = @transform_3, window_bounds = array<i64: 1, 256>}, {transform_indices = @transform_4, window_bounds = array<i64: 8, 256>}]} {
    %c0 = arith.constant 0 : index
    %c0_0 = arith.constant 0 : index
    %0 = vector.load %arg1[%c0, %c0_0] : memref<8x1152xbf16, #tpu.memory_space<vmem>>, vector<8x1152xbf16>
    %c0_1 = arith.constant 0 : index
    %c0_2 = arith.constant 0 : index
    %1 = vector.load %arg2[%c0_1, %c0_2] : memref<1152x256xbf16, #tpu.memory_space<vmem>>, vector<1152x256xbf16>
    %cst = arith.constant dense<0.000000e+00> : vector<8x256xf32>
    %2 = tpu.matmul %0, %1, %cst {dimension_numbers = #tpu.dot_dimension_numbers<[1], [0], [0], [1], [0, 0, 1, 1], [], []>} : vector<8x1152xbf16>, vector<1152x256xbf16>, vector<8x256xf32> -> vector<8x256xf32>
    %c0_3 = arith.constant 0 : index
    %c0_4 = arith.constant 0 : index
    %3 = vector.load %arg3[%c0_3, %c0_4] : memref<1x256xf32, #tpu.memory_space<vmem>>, vector<1x256xf32>
    %4 = vector.broadcast %3 : vector<1x256xf32> to vector<8x256xf32>
    %5 = arith.mulf %2, %4 : vector<8x256xf32>
    %c0_5 = arith.constant 0 : index
    %c0_6 = arith.constant 0 : index
    %6 = vector.load %arg4[%c0_5, %c0_6] : memref<1x256xf32, #tpu.memory_space<vmem>>, vector<1x256xf32>
    %7 = vector.broadcast %6 : vector<1x256xf32> to vector<8x256xf32>
    %8 = arith.addf %5, %7 : vector<8x256xf32>
    %cst_7 = arith.constant 0.000000e+00 : f32
    %9 = vector.broadcast %cst_7 : f32 to vector<8x256xf32>
    %10 = arith.maximumf %8, %9 : vector<8x256xf32>
    %11 = arith.truncf %10 : vector<8x256xf32> to vector<8x256xbf16>
    %c0_8 = arith.constant 0 : index
    %c0_9 = arith.constant 0 : index
    %12 = vector.load %arg5[%c0_8, %c0_9] : memref<8x256xbf16, #tpu.memory_space<vmem>>, vector<8x256xbf16>
    tpu.vector_store %arg5[%c0_8, %c0_9], %11 {strides = array<i32>} : memref<8x256xbf16, #tpu.memory_space<vmem>>, vector<8x256xbf16>,
    return
  }
  func.func @transform_0(%arg0: i32) -> (i32, i32) {
    %c0_i32 = arith.constant 0 : i32
    %c0_i32_0 = arith.constant 0 : i32
    return %arg0, %c0_i32 : i32, i32
  }
  func.func @transform_1(%arg0: i32) -> (i32, i32) {
    %c0_i32 = arith.constant 0 : i32
    %c0_i32_0 = arith.constant 0 : i32
    %c0_i32_1 = arith.constant 0 : i32
    return %c0_i32, %c0_i32_0 : i32, i32
  }
  func.func @transform_2(%arg0: i32) -> (i32, i32) {
    %c0_i32 = arith.constant 0 : i32
    %c0_i32_0 = arith.constant 0 : i32
    %c0_i32_1 = arith.constant 0 : i32
    return %c0_i32, %c0_i32_0 : i32, i32
  }
  func.func @transform_3(%arg0: i32) -> (i32, i32) {
    %c0_i32 = arith.constant 0 : i32
    %c0_i32_0 = arith.constant 0 : i32
    %c0_i32_1 = arith.constant 0 : i32
    return %c0_i32, %c0_i32_0 : i32, i32
  }
  func.func @transform_4(%arg0: i32) -> (i32, i32) {
    %c0_i32 = arith.constant 0 : i32
    %c0_i32_0 = arith.constant 0 : i32
    return %arg0, %c0_i32 : i32, i32
  }
}

module attributes {stable_mosaic.version = 11 : i64} {
  func.func @_matmul_affine_kernel(%arg0: i32, %arg1: memref<8x256xbf16, #tpu.memory_space<vmem>>, %arg2: memref<256x256xbf16, #tpu.memory_space<vmem>>, %arg3: memref<1x256xf32, #tpu.memory_space<vmem>>, %arg4: memref<1x256xf32, #tpu.memory_space<vmem>>, %arg5: memref<8x256xbf16, #tpu.memory_space<vmem>>) attributes {dimension_semantics = [#tpu.dimension_semantics<parallel>], iteration_bounds = array<i64: 1>, scalar_prefetch = 0 : i64, scratch_operands = 0 : i64, tpu.core_type = #tpu.core_type<tc>, window_params = [{transform_indices = @transform_0, window_bounds = array<i64: 8, 256>}, {pipeline_mode = #tpu.pipeline_mode<synchronous>, transform_indices = @transform_1, window_bounds = array<i64: 256, 256>}, {pipeline_mode = #tpu.pipeline_mode<synchronous>, transform_indices = @transform_2, window_bounds = array<i64: 1, 256>}, {pipeline_mode = #tpu.pipeline_mode<synchronous>, transform_indices = @transform_3, window_bounds = array<i64: 1, 256>}, {transform_indices = @transform_4, window_bounds = array<i64: 8, 256>}]} {
    %c0 = arith.constant 0 : index
    %c0_0 = arith.constant 0 : index
    %0 = vector.load %arg1[%c0, %c0_0] : memref<8x256xbf16, #tpu.memory_space<vmem>>, vector<8x256xbf16>
    %c0_1 = arith.constant 0 : index
    %c0_2 = arith.constant 0 : index
    %1 = vector.load %arg2[%c0_1, %c0_2] : memref<256x256xbf16, #tpu.memory_space<vmem>>, vector<256x256xbf16>
    %cst = arith.constant dense<0.000000e+00> : vector<8x256xf32>
    %2 = tpu.matmul %0, %1, %cst {dimension_numbers = #tpu.dot_dimension_numbers<[1], [0], [0], [1], [0, 0, 1, 1], [], []>} : vector<8x256xbf16>, vector<256x256xbf16>, vector<8x256xf32> -> vector<8x256xf32>
    %c0_3 = arith.constant 0 : index
    %c0_4 = arith.constant 0 : index
    %3 = vector.load %arg3[%c0_3, %c0_4] : memref<1x256xf32, #tpu.memory_space<vmem>>, vector<1x256xf32>
    %4 = vector.broadcast %3 : vector<1x256xf32> to vector<8x256xf32>
    %5 = arith.mulf %2, %4 : vector<8x256xf32>
    %c0_5 = arith.constant 0 : index
    %c0_6 = arith.constant 0 : index
    %6 = vector.load %arg4[%c0_5, %c0_6] : memref<1x256xf32, #tpu.memory_space<vmem>>, vector<1x256xf32>
    %7 = vector.broadcast %6 : vector<1x256xf32> to vector<8x256xf32>
    %8 = arith.addf %5, %7 : vector<8x256xf32>
    %cst_7 = arith.constant 0.000000e+00 : f32
    %9 = vector.broadcast %cst_7 : f32 to vector<8x256xf32>
    %10 = arith.maximumf %8, %9 : vector<8x256xf32>
    %11 = arith.truncf %10 : vector<8x256xf32> to vector<8x256xbf16>
    %c0_8 = arith.constant 0 : index
    %c0_9 = arith.constant 0 : index
    %12 = vector.load %arg5[%c0_8, %c0_9] : memref<8x256xbf16, #tpu.memory_space<vmem>>, vector<8x256xbf16>
    tpu.vector_store %arg5[%c0_8, %c0_9], %11 {strides = array<i32>} : memref<8x256xbf16, #tpu.memory_space<vmem>>, vector<8x256xbf16>,
    return
  }
  func.func @transform_0(%arg0: i32) -> (i32, i32) {
    %c0_i32 = arith.constant 0 : i32
    %c0_i32_0 = arith.constant 0 : i32
    return %arg0, %c0_i32 : i32, i32
  }
  func.func @transform_1(%arg0: i32) -> (i32, i32) {
    %c0_i32 = arith.constant 0 : i32
    %c0_i32_0 = arith.constant 0 : i32
    %c0_i32_1 = arith.constant 0 : i32
    return %c0_i32, %c0_i32_0 : i32, i32
  }
  func.func @transform_2(%arg0: i32) -> (i32, i32) {
    %c0_i32 = arith.constant 0 : i32
    %c0_i32_0 = arith.constant 0 : i32
    %c0_i32_1 = arith.constant 0 : i32
    return %c0_i32, %c0_i32_0 : i32, i32
  }
  func.func @transform_3(%arg0: i32) -> (i32, i32) {
    %c0_i32 = arith.constant 0 : i32
    %c0_i32_0 = arith.constant 0 : i32
    %c0_i32_1 = arith.constant 0 : i32
    return %c0_i32, %c0_i32_0 : i32, i32
  }
  func.func @transform_4(%arg0: i32) -> (i32, i32) {
    %c0_i32 = arith.constant 0 : i32
    %c0_i32_0 = arith.constant 0 : i32
    return %arg0, %c0_i32 : i32, i32
  }
}

module attributes {stable_mosaic.version = 11 : i64} {
  func.func @_head_kernel(%arg0: i32, %arg1: memref<2x1x256xbf16, #tpu.memory_space<vmem>>, %arg2: memref<256x256xbf16, #tpu.memory_space<vmem>>, %arg3: memref<1x256xf32, #tpu.memory_space<vmem>>, %arg4: memref<1x256xf32, #tpu.memory_space<vmem>>, %arg5: memref<256x128xbf16, #tpu.memory_space<vmem>>, %arg6: memref<1x128xf32, #tpu.memory_space<vmem>>, %arg7: memref<2x128xf32, #tpu.memory_space<vmem>>) attributes {dimension_semantics = [#tpu.dimension_semantics<arbitrary>], iteration_bounds = array<i64: 1>, scalar_prefetch = 0 : i64, scratch_operands = 0 : i64, tpu.core_type = #tpu.core_type<tc>, window_params = [{pipeline_mode = #tpu.pipeline_mode<synchronous>, transform_indices = @transform_0, window_bounds = array<i64: 2, 1, 256>}, {pipeline_mode = #tpu.pipeline_mode<synchronous>, transform_indices = @transform_1, window_bounds = array<i64: 256, 256>}, {pipeline_mode = #tpu.pipeline_mode<synchronous>, transform_indices = @transform_2, window_bounds = array<i64: 1, 256>}, {pipeline_mode = #tpu.pipeline_mode<synchronous>, transform_indices = @transform_3, window_bounds = array<i64: 1, 256>}, {pipeline_mode = #tpu.pipeline_mode<synchronous>, transform_indices = @transform_4, window_bounds = array<i64: 256, 128>}, {pipeline_mode = #tpu.pipeline_mode<synchronous>, transform_indices = @transform_5, window_bounds = array<i64: 1, 128>}, {pipeline_mode = #tpu.pipeline_mode<synchronous>, transform_indices = @transform_6, window_bounds = array<i64: 2, 128>}]} {
    %c0 = arith.constant 0 : index
    %c0_0 = arith.constant 0 : index
    %c0_1 = arith.constant 0 : index
    %0 = vector.load %arg1[%c0, %c0_0, %c0_1] : memref<2x1x256xbf16, #tpu.memory_space<vmem>>, vector<2x1x256xbf16>
    %1 = arith.extf %0 : vector<2x1x256xbf16> to vector<2x1x256xf32>
    %cst = arith.constant dense<0.000000e+00> : vector<2x256xf32>
    %2 = vector.multi_reduction <add>, %1, %cst [1] : vector<2x1x256xf32> to vector<2x256xf32>
    %cst_2 = arith.constant 1.000000e+00 : f32
    %3 = vector.broadcast %cst_2 : f32 to vector<2x256xf32>
    %4 = arith.mulf %2, %3 : vector<2x256xf32>
    %5 = arith.truncf %4 : vector<2x256xf32> to vector<2x256xbf16>
    %c0_3 = arith.constant 0 : index
    %c0_4 = arith.constant 0 : index
    %6 = vector.load %arg2[%c0_3, %c0_4] : memref<256x256xbf16, #tpu.memory_space<vmem>>, vector<256x256xbf16>
    %cst_5 = arith.constant dense<0.000000e+00> : vector<2x256xf32>
    %7 = tpu.matmul %5, %6, %cst_5 {dimension_numbers = #tpu.dot_dimension_numbers<[1], [0], [0], [1], [0, 0, 1, 1], [], []>} : vector<2x256xbf16>, vector<256x256xbf16>, vector<2x256xf32> -> vector<2x256xf32>
    %c0_6 = arith.constant 0 : index
    %c0_7 = arith.constant 0 : index
    %8 = vector.load %arg3[%c0_6, %c0_7] : memref<1x256xf32, #tpu.memory_space<vmem>>, vector<1x256xf32>
    %9 = vector.broadcast %8 : vector<1x256xf32> to vector<2x256xf32>
    %10 = arith.mulf %7, %9 : vector<2x256xf32>
    %c0_8 = arith.constant 0 : index
    %c0_9 = arith.constant 0 : index
    %11 = vector.load %arg4[%c0_8, %c0_9] : memref<1x256xf32, #tpu.memory_space<vmem>>, vector<1x256xf32>
    %12 = vector.broadcast %11 : vector<1x256xf32> to vector<2x256xf32>
    %13 = arith.addf %10, %12 : vector<2x256xf32>
    %cst_10 = arith.constant 0.000000e+00 : f32
    %14 = vector.broadcast %cst_10 : f32 to vector<2x256xf32>
    %15 = arith.maximumf %13, %14 : vector<2x256xf32>
    %16 = arith.truncf %15 : vector<2x256xf32> to vector<2x256xbf16>
    %c0_11 = arith.constant 0 : index
    %c0_12 = arith.constant 0 : index
    %17 = vector.load %arg5[%c0_11, %c0_12] : memref<256x128xbf16, #tpu.memory_space<vmem>>, vector<256x128xbf16>
    %cst_13 = arith.constant dense<0.000000e+00> : vector<2x128xf32>
    %18 = tpu.matmul %16, %17, %cst_13 {dimension_numbers = #tpu.dot_dimension_numbers<[1], [0], [0], [1], [0, 0, 1, 1], [], []>} : vector<2x256xbf16>, vector<256x128xbf16>, vector<2x128xf32> -> vector<2x128xf32>
    %c0_14 = arith.constant 0 : index
    %c0_15 = arith.constant 0 : index
    %19 = vector.load %arg6[%c0_14, %c0_15] : memref<1x128xf32, #tpu.memory_space<vmem>>, vector<1x128xf32>
    %20 = vector.broadcast %19 : vector<1x128xf32> to vector<2x128xf32>
    %21 = arith.addf %18, %20 : vector<2x128xf32>
    %c0_16 = arith.constant 0 : index
    %c0_17 = arith.constant 0 : index
    %22 = vector.load %arg7[%c0_16, %c0_17] : memref<2x128xf32, #tpu.memory_space<vmem>>, vector<2x128xf32>
    tpu.vector_store %arg7[%c0_16, %c0_17], %21 {strides = array<i32>} : memref<2x128xf32, #tpu.memory_space<vmem>>, vector<2x128xf32>,
    return
  }
  func.func @transform_0(%arg0: i32) -> (i32, i32, i32) {
    %c0_i32 = arith.constant 0 : i32
    %c0_i32_0 = arith.constant 0 : i32
    %c0_i32_1 = arith.constant 0 : i32
    %c0_i32_2 = arith.constant 0 : i32
    return %c0_i32, %c0_i32_0, %c0_i32_1 : i32, i32, i32
  }
  func.func @transform_1(%arg0: i32) -> (i32, i32) {
    %c0_i32 = arith.constant 0 : i32
    %c0_i32_0 = arith.constant 0 : i32
    %c0_i32_1 = arith.constant 0 : i32
    return %c0_i32, %c0_i32_0 : i32, i32
  }
  func.func @transform_2(%arg0: i32) -> (i32, i32) {
    %c0_i32 = arith.constant 0 : i32
    %c0_i32_0 = arith.constant 0 : i32
    %c0_i32_1 = arith.constant 0 : i32
    return %c0_i32, %c0_i32_0 : i32, i32
  }
  func.func @transform_3(%arg0: i32) -> (i32, i32) {
    %c0_i32 = arith.constant 0 : i32
    %c0_i32_0 = arith.constant 0 : i32
    %c0_i32_1 = arith.constant 0 : i32
    return %c0_i32, %c0_i32_0 : i32, i32
  }
  func.func @transform_4(%arg0: i32) -> (i32, i32) {
    %c0_i32 = arith.constant 0 : i32
    %c0_i32_0 = arith.constant 0 : i32
    %c0_i32_1 = arith.constant 0 : i32
    return %c0_i32, %c0_i32_0 : i32, i32
  }
  func.func @transform_5(%arg0: i32) -> (i32, i32) {
    %c0_i32 = arith.constant 0 : i32
    %c0_i32_0 = arith.constant 0 : i32
    %c0_i32_1 = arith.constant 0 : i32
    return %c0_i32, %c0_i32_0 : i32, i32
  }
  func.func @transform_6(%arg0: i32) -> (i32, i32) {
    %c0_i32 = arith.constant 0 : i32
    %c0_i32_0 = arith.constant 0 : i32
    %c0_i32_1 = arith.constant 0 : i32
    return %c0_i32, %c0_i32_0 : i32, i32
  }
}

</mosaic_0001>

<bundles_post_ra>
// kernel: _lambda_.8
= control target key start
LH: loop header
LB: loop body
LE: loop exit
PB: predicated region body
PF: predicated region fallthrough
CT: control target
= control target key end

     0   :  { %s1221_s15 = smov 0   ;;  %s1383_s0 = inlined_call_operand.vmem [shape: bf16[2048,50], index: 0, kind: input, shape index: {}]   ;;  %s1384_s1 = inlined_call_operand.vmem [shape: bf16[50,128], index: 1, kind: input, shape index: {}]   ;;  %s1385_s2 = inlined_call_operand.vmem [shape: f32[1,128], index: 2, kind: input, shape index: {}]   ;;  %s1386_s3 = inlined_call_operand.vmem [shape: f32[1,128], index: 3, kind: input, shape index: {}]   ;;  %s1387_s4 = inlined_call_operand.vmem [shape: bf16[2048,128], index: 4, kind: output, shape index: {}]  }
   0x1 LB: > { %s882_s16 = sadd.s32 4294967295, %s1194_s15   ;;  %p886_p0 = scmp.ge.s32.totalorder %s1194_s15, 1  ;;  %s1194_s15 = sphi %s1221_s15, %s14_s15  }
   0x2   : > { %p163_p1 = scmp.lt.s32.totalorder %s1194_s15, 9 }
   0x4   : > { %p164_p2 = pnand %p886_p0, %p163_p1 }
   0x5   : > { %v1168_v0 = vld [vmem:[%s1384_s1] sm:$0xff] (!%p164_p2)   ;;  %v1169_v1 = vld [vmem:[%s1384_s1 + $0x8] sm:$0xff] (!%p164_p2)   ;;  %s887_s21 = sshll.u32 (!%p164_p2), %s882_s16, 5  ;;  %v1170_v2 = vld [vmem:[%s1384_s1 + $0x10] sm:$0xff] (!%p164_p2)   ;;  %vm342_vm0 = vcmask (!%p164_p2), 408576   ;;  %vm391_vm1 = vcmask (!%p164_p2), 1040384  }
   0x6   : > { %167 = sbr.rel (%p164_p2) target bundleno = 271 (0x10f), region = 36  ;;  %1110 = vmatprep.subr.bf16.mxu0 (!%p164_p2), %v1168_v0  ;;  %1150 = vmatprep.subr.bf16.mxu1 (!%p164_p2), %v1168_v0  ;;  %p190_p3 = scmp.lt.s32.totalorder (!%p164_p2), %s887_s21, 255  ;;  %v1171_v3 = vld [vmem:[%s1384_s1 + $0x18] ss:$0 sps:$4 sm:$0x11] (!%p164_p2)  }
   0x7   : > { %1111 = vmatpush3.bf16.msra.mxu0 (!%p164_p2), %v1168_v0  ;;  %1154 = vmatpush3.bf16.msra.mxu1 (!%p164_p2), %v1168_v0  ;;  %v393_v6 = vsel (!%p164_p2), %vm391_vm1, %v1171_v3, 0  ;;  %v1286_v21 = vld [vmem:[%s1385_s2] ss:$0 sm:$0xff] (!%p164_p2) }
   0x8   : > { %1112 = vmatprep.subr.bf16.mxu0 (!%p164_p2), %v1169_v1  ;;  %1151 = vmatprep.subr.bf16.mxu1 (!%p164_p2), %v1169_v1  ;;  %v1291_v23 = vld [vmem:[%s1386_s3] ss:$0 sm:$0xff] (!%p164_p2) }
   0xb   : > { %1113 = vmatpush3.bf16.msra.mxu0 (!%p164_p2), %v1169_v1  ;;  %1155 = vmatpush3.bf16.msra.mxu1 (!%p164_p2), %v1169_v1 }
   0xc   : > { %1114 = vmatprep.subr.bf16.mxu0 (!%p164_p2), %v1170_v2  ;;  %1152 = vmatprep.subr.bf16.mxu1 (!%p164_p2), %v1170_v2 }
   0xd   : > { %s1389_s21 = smov (!%p190_p3, %s887_s21), 255 }
   0xe   : > { %s888_s24 = sshll.u32 %s1389_s21, 2 }
   0xf   : > { %s1249_s29 = scalar_lea.vmem %s1383_s0, %s888_s24  ;;  %1115 = vmatpush3.bf16.msra.mxu0 %v1170_v2  ;;  %1156 = vmatpush3.bf16.msra.mxu1 %v1170_v2  ;;  %s1314_s10 = scalar_lea.vmem %s1387_s4, %s888_s24 }
  0x10   : > { %v1172_v4 = vld [vmem:[%s1249_s29] sm:$0xff]   ;;  %1158 = vmatprep.subr.msk.bf16.mxu0 %vm391_vm1, %v1171_v3  ;;  %1159 = vmatprep.subr.msk.bf16.mxu1 %vm391_vm1, %v1171_v3  ;;  %v1174_v7 = vld [vmem:[%s1249_s29 + $0x8] sm:$0xff]   ;;  %v1176_v9 = vld [vmem:[%s1249_s29 + $0x10] sm:$0xff]  }
  0x11   : > { %v1173_v5 = vld [vmem:[%s1249_s29 + $0x40] sm:$0xff]   ;;  %1118 = vmatprep.mubr.msk.bf16.mxu0 %vm342_vm0, %v1172_v4  ;;  %v1175_v8 = vld [vmem:[%s1249_s29 + $0x48] sm:$0xff]   ;;  %v1177_v10 = vld [vmem:[%s1249_s29 + $0x50] sm:$0xff]  }
  0x12   : > { %1134 = vmatprep.mubr.msk.bf16.mxu1 %vm342_vm0, %v1173_v5  ;;  %v1178_v11 = vld [vmem:[%s1249_s29 + $0x18] sm:$0xff]   ;;  %v1180_v13 = vld [vmem:[%s1249_s29 + $0x20] sm:$0xff]   ;;  %v1182_v15 = vld [vmem:[%s1249_s29 + $0x28] sm:$0xff]  }
  0x13   : > { %1117 = vmatpush3.bf16.msra.mxu0 %v393_v6  ;;  %1157 = vmatpush3.bf16.msra.mxu1 %v393_v6  ;;  %v1179_v12 = vld [vmem:[%s1249_s29 + $0x58] sm:$0xff]   ;;  %v1181_v14 = vld [vmem:[%s1249_s29 + $0x60] sm:$0xff]   ;;  %v1183_v16 = vld [vmem:[%s1249_s29 + $0x68] sm:$0xff]  }
  0x14   : > { %v1184_v17 = vld [vmem:[%s1249_s29 + $0x30] sm:$0xff]   ;;  %v1186_v19 = vld [vmem:[%s1249_s29 + $0x38] sm:$0xff]  }
  0x15   : > { %v1185_v18 = vld [vmem:[%s1249_s29 + $0x70] sm:$0xff]   ;;  %v1187_v20 = vld [vmem:[%s1249_s29 + $0x78] sm:$0xff]  }
  0x16   : > { %1119 = vmatmul.mubr.msk.bf16.vlgmr.msra.gmra.mrb[0].mxu0 %vm342_vm0, %v1174_v7  ;;  %1135 = vmatmul.mubr.msk.bf16.vlgmr.msra.gmra.mrb[0].mxu1 %vm342_vm0, %v1175_v8 }
  0x17   : > { %1122 = vmatprep.mubr.msk.bf16.mxu0 %vm342_vm0, %v1176_v9  ;;  %1138 = vmatprep.mubr.msk.bf16.mxu1 %vm342_vm0, %v1177_v10 }
  0x1e   : > { %1123 = vmatmul.mubr.msk.bf16.gmra.mrb[4].mxu0 %vm342_vm0, %v1178_v11  ;;  %1139 = vmatmul.mubr.msk.bf16.gmra.mrb[4].mxu1 %vm342_vm0, %v1179_v12 }
  0x1f   : > { %1126 = vmatprep.mubr.msk.bf16.mxu0 %vm342_vm0, %v1180_v13  ;;  %1142 = vmatprep.mubr.msk.bf16.mxu1 %vm342_vm0, %v1181_v14 }
  0x26   : > { %1127 = vmatmul.mubr.msk.bf16.gmra.mrb[8].mxu0 %vm342_vm0, %v1182_v15  ;;  %1143 = vmatmul.mubr.msk.bf16.gmra.mrb[8].mxu1 %vm342_vm0, %v1183_v16 }
  0x27   : > { %1130 = vmatprep.mubr.msk.bf16.mxu0 %vm342_vm0, %v1184_v17  ;;  %1146 = vmatprep.mubr.msk.bf16.mxu1 %vm342_vm0, %v1185_v18 }
  0x2e   : > { %1131 = vmatmul.mubr.msk.bf16.gmra.mrb[12].mxu0 %vm342_vm0, %v1186_v19  ;;  %1147 = vmatmul.mubr.msk.bf16.gmra.mrb[12].mxu1 %vm342_vm0, %v1187_v20 }
  0xe9   : > { %v1120_v22 = vpop.f32.mrb[0].mxu0  ;;  %v1136_v24 = vpop.f32.mrb[0].mxu1 }
  0xea   : > { %v565_v25 = vmul.f32 %v1120_v22, %v1286_v21  ;;  %v581_v26 = vmul.f32 %v1136_v24, %v1286_v21  ;;  %v429_v27 = vpop.f32.mrb[1].mxu0  ;;  %v493_v28 = vpop.f32.mrb[1].mxu1 }
  0xeb   : > { %v563_v29 = vmul.f32 %v1286_v21, %v429_v27  ;;  %v579_v30 = vmul.f32 %v1286_v21, %v493_v28  ;;  %v1121_v31 = vpop.f32.mrb[2].mxu0  ;;  %v1137_v32 = vpop.f32.mrb[2].mxu1 }
  0xec   : > { %v604_v33 = vadd.f32 %v1291_v23, %v565_v25  ;;  %v620_v34 = vadd.f32 %v1291_v23, %v581_v26  ;;  %v566_v35 = vmul.f32 %v1121_v31, %v1286_v21  ;;  %v582_v36 = vmul.f32 %v1137_v32, %v1286_v21  ;;  %v432_v37 = vpop.f32.mrb[3].mxu0  ;;  %v496_v38 = vpop.f32.mrb[3].mxu1 }
  0xed   : > { %v602_v39 = vadd.f32 %v1291_v23, %v563_v29  ;;  %v618_v40 = vadd.f32 %v1291_v23, %v579_v30  ;;  %v564_v41 = vmul.f32 %v1286_v21, %v432_v37  ;;  %v580_v42 = vmul.f32 %v1286_v21, %v496_v38 }
  0xee   : > { %v605_v43 = vadd.f32 %v1291_v23, %v566_v35  ;;  %v621_v44 = vadd.f32 %v1291_v23, %v582_v36  ;;  %v636_v47 = vmax.f32 %v604_v33, 0.0  ;;  %v652_v48 = vmax.f32 %v620_v34, 0.0 }
  0xef   : > { %v603_v45 = vadd.f32 %v1291_v23, %v564_v41  ;;  %v619_v46 = vadd.f32 %v1291_v23, %v580_v42  ;;  %v634_v51 = vmax.f32 %v602_v39, 0.0  ;;  %v650_v52 = vmax.f32 %v618_v40, 0.0 }
  0xf0   : > { %v637_v49 = vmax.f32 %v605_v43, 0.0  ;;  %v653_v50 = vmax.f32 %v621_v44, 0.0 }
  0xf1   : > { %v635_v53 = vmax.f32 %v603_v45, 0.0  ;;  %v651_v54 = vmax.f32 %v619_v46, 0.0  ;;  %v1124_v55 = vpop.f32.mrb[4].mxu0  ;;  %v1140_v56 = vpop.f32.mrb[4].mxu1 }
  0xf2   : > { %v1003_v57 = vpack.c.bf16 %v637_v49, %v636_v47  ;;  %v1043_v58 = vpack.c.bf16 %v653_v50, %v652_v48  ;;  %v569_v59 = vmul.f32 %v1124_v55, %v1286_v21  ;;  %v585_v60 = vmul.f32 %v1140_v56, %v1286_v21  ;;  %v445_v61 = vpop.f32.mrb[5].mxu0  ;;  %v509_v62 = vpop.f32.mrb[5].mxu1 }
  0xf3   : > { %v998_v63 = vpack.c.bf16 %v635_v53, %v634_v51  ;;  %v1038_v0 = vpack.c.bf16 %v651_v54, %v650_v52  ;;  %v567_v1 = vmul.f32 %v1286_v21, %v445_v61  ;;  %v583_v2 = vmul.f32 %v1286_v21, %v509_v62  ;;  %v1125_v3 = vpop.f32.mrb[6].mxu0  ;;  %v1141_v4 = vpop.f32.mrb[6].mxu1 }
  0xf4   : > { %1075 = vst [vmem:[%s1314_s10 + $0x8] sm:$0xff] %v1003_v57   ;;  %1083 = vst [vmem:[%s1314_s10 + $0x48] sm:$0xff] %v1043_v58   ;;  %v608_v5 = vadd.f32 %v1291_v23, %v569_v59  ;;  %v624_v6 = vadd.f32 %v1291_v23, %v585_v60  ;;  %v570_v7 = vmul.f32 %v1125_v3, %v1286_v21  ;;  %v448_v9 = vpop.f32.mrb[7].mxu0  ;;  %v512_v10 = vpop.f32.mrb[7].mxu1 }
  0xf5   : > { %v586_v8 = vmul.f32 %v1141_v4, %v1286_v21  ;;  %999 = vst [vmem:[%s1314_s10] sm:$0xff] %v998_v63   ;;  %1082 = vst [vmem:[%s1314_s10 + $0x40] sm:$0xff] %v1038_v0   ;;  %v606_v11 = vadd.f32 %v1291_v23, %v567_v1  ;;  %v622_v12 = vadd.f32 %v1291_v23, %v583_v2 }
  0xf6   : > { %v568_v13 = vmul.f32 %v1286_v21, %v448_v9  ;;  %v584_v14 = vmul.f32 %v1286_v21, %v512_v10  ;;  %v609_v15 = vadd.f32 %v1291_v23, %v570_v7  ;;  %v640_v19 = vmax.f32 %v608_v5, 0.0 }
  0xf7   : > { %v625_v16 = vadd.f32 %v1291_v23, %v586_v8  ;;  %v656_v20 = vmax.f32 %v624_v6, 0.0  ;;  %v638_v25 = vmax.f32 %v606_v11, 0.0  ;;  %v654_v26 = vmax.f32 %v622_v12, 0.0 }
  0xf8   : > { %v607_v17 = vadd.f32 %v1291_v23, %v568_v13  ;;  %v623_v18 = vadd.f32 %v1291_v23, %v584_v14  ;;  %v641_v22 = vmax.f32 %v609_v15, 0.0 }
  0xf9   : > { %v657_v24 = vmax.f32 %v625_v16, 0.0  ;;  %v1128_v29 = vpop.f32.mrb[8].mxu0  ;;  %v1144_v30 = vpop.f32.mrb[8].mxu1 }
  0xfa   : > { %v639_v27 = vmax.f32 %v607_v17, 0.0  ;;  %v655_v28 = vmax.f32 %v623_v18, 0.0  ;;  %v1013_v31 = vpack.c.bf16 %v641_v22, %v640_v19  ;;  %v573_v33 = vmul.f32 %v1128_v29, %v1286_v21  ;;  %v461_v35 = vpop.f32.mrb[9].mxu0  ;;  %v525_v36 = vpop.f32.mrb[9].mxu1 }
  0xfb   : > { %v1053_v32 = vpack.c.bf16 %v657_v24, %v656_v20  ;;  %v589_v34 = vmul.f32 %v1144_v30, %v1286_v21  ;;  %v571_v39 = vmul.f32 %v1286_v21, %v461_v35  ;;  %v587_v40 = vmul.f32 %v1286_v21, %v525_v36  ;;  %v1129_v41 = vpop.f32.mrb[10].mxu0  ;;  %v1145_v42 = vpop.f32.mrb[10].mxu1 }
  0xfc   : > { %v1008_v37 = vpack.c.bf16 %v639_v27, %v638_v25  ;;  %v1048_v38 = vpack.c.bf16 %v655_v28, %v654_v26  ;;  %1077 = vst [vmem:[%s1314_s10 + $0x18] sm:$0xff] %v1013_v31   ;;  %v612_v43 = vadd.f32 %v1291_v23, %v573_v33  ;;  %v574_v45 = vmul.f32 %v1129_v41, %v1286_v21  ;;  %v464_v47 = vpop.f32.mrb[11].mxu0  ;;  %v528_v48 = vpop.f32.mrb[11].mxu1 }
  0xfd   : > { %1085 = vst [vmem:[%s1314_s10 + $0x58] sm:$0xff] %v1053_v32   ;;  %v628_v44 = vadd.f32 %v1291_v23, %v589_v34  ;;  %v590_v46 = vmul.f32 %v1145_v42, %v1286_v21  ;;  %v610_v49 = vadd.f32 %v1291_v23, %v571_v39  ;;  %v626_v50 = vadd.f32 %v1291_v23, %v587_v40 }
  0xfe   : > { %1076 = vst [vmem:[%s1314_s10 + $0x10] sm:$0xff] %v1008_v37   ;;  %1084 = vst [vmem:[%s1314_s10 + $0x50] sm:$0xff] %v1048_v38   ;;  %v572_v51 = vmul.f32 %v1286_v21, %v464_v47  ;;  %v588_v52 = vmul.f32 %v1286_v21, %v528_v48  ;;  %v613_v53 = vadd.f32 %v1291_v23, %v574_v45  ;;  %v644_v57 = vmax.f32 %v612_v43, 0.0 }
  0xff   : > { %v629_v54 = vadd.f32 %v1291_v23, %v590_v46  ;;  %v660_v58 = vmax.f32 %v628_v44, 0.0  ;;  %v642_v61 = vmax.f32 %v610_v49, 0.0  ;;  %v658_v62 = vmax.f32 %v626_v50, 0.0 }
 0x100   : > { %v611_v55 = vadd.f32 %v1291_v23, %v572_v51  ;;  %v627_v56 = vadd.f32 %v1291_v23, %v588_v52  ;;  %v645_v59 = vmax.f32 %v613_v53, 0.0 }
 0x101   : > { %v661_v60 = vmax.f32 %v629_v54, 0.0  ;;  %v1132_v1 = vpop.f32.mrb[12].mxu0  ;;  %v1148_v2 = vpop.f32.mrb[12].mxu1 }
 0x102   : > { %v643_v63 = vmax.f32 %v611_v55, 0.0  ;;  %v659_v0 = vmax.f32 %v627_v56, 0.0  ;;  %v1023_v3 = vpack.c.bf16 %v645_v59, %v644_v57  ;;  %v577_v5 = vmul.f32 %v1132_v1, %v1286_v21  ;;  %v477_v7 = vpop.f32.mrb[13].mxu0  ;;  %v541_v8 = vpop.f32.mrb[13].mxu1 }
 0x103   : > { %v1063_v4 = vpack.c.bf16 %v661_v60, %v660_v58  ;;  %v593_v6 = vmul.f32 %v1148_v2, %v1286_v21  ;;  %v575_v11 = vmul.f32 %v1286_v21, %v477_v7  ;;  %v591_v12 = vmul.f32 %v1286_v21, %v541_v8  ;;  %v1133_v13 = vpop.f32.mrb[14].mxu0  ;;  %v1149_v14 = vpop.f32.mrb[14].mxu1 }
 0x104   : > { %v1018_v9 = vpack.c.bf16 %v643_v63, %v642_v61  ;;  %v1058_v10 = vpack.c.bf16 %v659_v0, %v658_v62  ;;  %1079 = vst [vmem:[%s1314_s10 + $0x28] sm:$0xff] %v1023_v3   ;;  %v616_v15 = vadd.f32 %v1291_v23, %v577_v5  ;;  %v578_v17 = vmul.f32 %v1133_v13, %v1286_v21  ;;  %v480_v19 = vpop.f32.mrb[15].mxu0  ;;  %v544_v20 = vpop.f32.mrb[15].mxu1 }
 0x105   : > { %1087 = vst [vmem:[%s1314_s10 + $0x68] sm:$0xff] %v1063_v4   ;;  %v632_v16 = vadd.f32 %v1291_v23, %v593_v6  ;;  %v594_v18 = vmul.f32 %v1149_v14, %v1286_v21  ;;  %v614_v22 = vadd.f32 %v1291_v23, %v575_v11  ;;  %v630_v24 = vadd.f32 %v1291_v23, %v591_v12 }
 0x106   : > { %1078 = vst [vmem:[%s1314_s10 + $0x20] sm:$0xff] %v1018_v9   ;;  %1086 = vst [vmem:[%s1314_s10 + $0x60] sm:$0xff] %v1058_v10   ;;  %v576_v25 = vmul.f32 %v1286_v21, %v480_v19  ;;  %v592_v26 = vmul.f32 %v1286_v21, %v544_v20  ;;  %v617_v27 = vadd.f32 %v1291_v23, %v578_v17  ;;  %v648_v31 = vmax.f32 %v616_v15, 0.0 }
 0x107   : > { %v633_v28 = vadd.f32 %v1291_v23, %v594_v18  ;;  %v664_v32 = vmax.f32 %v632_v16, 0.0  ;;  %v646_v35 = vmax.f32 %v614_v22, 0.0  ;;  %v662_v36 = vmax.f32 %v630_v24, 0.0 }
 0x108   : > { %v615_v29 = vadd.f32 %v1291_v23, %v576_v25  ;;  %v631_v30 = vadd.f32 %v1291_v23, %v592_v26  ;;  %v649_v33 = vmax.f32 %v617_v27, 0.0 }
 0x109   : > { %v665_v34 = vmax.f32 %v633_v28, 0.0 }
 0x10a   : > { %v647_v37 = vmax.f32 %v615_v29, 0.0  ;;  %v663_v21 = vmax.f32 %v631_v30, 0.0  ;;  %v1033_v38 = vpack.c.bf16 %v649_v33, %v648_v31 }
 0x10b   : > { %v1073_v39 = vpack.c.bf16 %v665_v34, %v664_v32 }
 0x10c   : > { %v1028_v40 = vpack.c.bf16 %v647_v37, %v646_v35  ;;  %v1068_v41 = vpack.c.bf16 %v663_v21, %v662_v36  ;;  %1081 = vst [vmem:[%s1314_s10 + $0x38] sm:$0xff] %v1033_v38  }
 0x10d   : > { %1089 = vst [vmem:[%s1314_s10 + $0x78] sm:$0xff] %v1073_v39  }
 0x10e   : > { %1080 = vst [vmem:[%s1314_s10 + $0x30] sm:$0xff] %v1028_v40   ;;  %1088 = vst [vmem:[%s1314_s10 + $0x70] sm:$0xff] %v1068_v41  }
 0x10f PF: > { %s14_s15 = sadd.s32 1, %s1194_s15  }
 0x110   : > { %p11_p4 = scmp.ge.s32.totalorder %s14_s15, 10  }
 0x112   :  { %13 = sbr.rel (!%p11_p4) target bundleno = 1 (0x1), region = 66 }

// kernel: _lambda_.9
= control target key start
LH: loop header
LB: loop body
LE: loop exit
PB: predicated region body
PF: predicated region fallthrough
CT: control target
= control target key end

     0   :  { %s1338_s15 = smov 0   ;;  %s1528_s0 = inlined_call_operand.vmem [shape: bf16[512,144], index: 0, kind: input, shape index: {}]   ;;  %s1529_s1 = inlined_call_operand.vmem [shape: bf16[144,128], index: 1, kind: input, shape index: {}]   ;;  %s1530_s2 = inlined_call_operand.vmem [shape: f32[1,128], index: 2, kind: input, shape index: {}]   ;;  %s1531_s3 = inlined_call_operand.vmem [shape: f32[1,128], index: 3, kind: input, shape index: {}]   ;;  %s1532_s4 = inlined_call_operand.vmem [shape: bf16[512,128], index: 4, kind: output, shape index: {}]  }
   0x1 LB: > { %s989_s16 = sadd.s32 4294967295, %s1310_s15   ;;  %p993_p0 = scmp.ge.s32.totalorder %s1310_s15, 1  ;;  %s1310_s15 = sphi %s1338_s15, %s14_s15  }
   0x2   : > { %p164_p1 = scmp.lt.s32.totalorder %s1310_s15, 3 }
   0x4   : > { %p165_p2 = pnand %p993_p0, %p164_p1 }
   0x5   : > { %v1247_v0 = vld [vmem:[%s1529_s1] sm:$0xff] (!%p165_p2)   ;;  %v1312_v1 = vmov (!%p165_p2), 0   ;;  %s994_s19 = sshll.u32 (!%p165_p2), %s989_s16, 5  ;;  %v1248_v2 = vld [vmem:[%s1529_s1 + $0x8] sm:$0xff] (!%p165_p2)   ;;  %v1249_v3 = vld [vmem:[%s1529_s1 + $0x10] sm:$0xff] (!%p165_p2)   ;;  %vm453_vm0 = vcmask (!%p165_p2), 130048  }
   0x6   : > { %168 = sbr.rel (%p165_p2) target bundleno = 322 (0x142), region = 36  ;;  %502 = vmatprep.subr.bf16.mxu0 (!%p165_p2), %v1312_v1  ;;  %1220 = vmatprep.subr.bf16.mxu1 (!%p165_p2), %v1312_v1  ;;  %p192_p3 = scmp.lt.s32.totalorder (!%p165_p2), %s994_s19, 63  ;;  %v1250_v4 = vld [vmem:[%s1529_s1 + $0x18] sm:$0xff] (!%p165_p2)   ;;  %v1251_v7 = vld [vmem:[%s1529_s1 + $0x20] sm:$0xff] (!%p165_p2)   ;;  %v1252_v8 = vld [vmem:[%s1529_s1 + $0x28] sm:$0xff] (!%p165_p2)  }
   0x7   : > { %503 = vmatpush1.bf16.msra.mxu0 (!%p165_p2), %v1247_v0  ;;  %1229 = vmatpush1.bf16.msra.mxu1 (!%p165_p2), %v1247_v0  ;;  %v1253_v9 = vld [vmem:[%s1529_s1 + $0x30] sm:$0xff] (!%p165_p2)   ;;  %v1254_v10 = vld [vmem:[%s1529_s1 + $0x38] sm:$0xff] (!%p165_p2)   ;;  %v1255_v11 = vld [vmem:[%s1529_s1 + $0x40] sm:$0xff] (!%p165_p2)  }
   0x8   : > { %504 = vmatprep.subr.bf16.mxu0 (!%p165_p2), %v1312_v1  ;;  %1221 = vmatprep.subr.bf16.mxu1 (!%p165_p2), %v1312_v1  ;;  %v1432_v42 = vld [vmem:[%s1530_s2] ss:$0 sm:$0xff] (!%p165_p2) }
   0x9   : > { %v1437_v44 = vld [vmem:[%s1531_s3] ss:$0 sm:$0xff] (!%p165_p2) }
   0xb   : > { %505 = vmatpush1.bf16.msra.mxu0 (!%p165_p2), %v1248_v2  ;;  %1230 = vmatpush1.bf16.msra.mxu1 (!%p165_p2), %v1248_v2 }
   0xc   : > { %506 = vmatprep.subr.bf16.mxu0 (!%p165_p2), %v1312_v1  ;;  %1222 = vmatprep.subr.bf16.mxu1 (!%p165_p2), %v1312_v1 }
   0xd   : > { %s1534_s19 = smov (!%p192_p3, %s994_s19), 63 }
   0xe   : > { %s1092_s24 = sshll.u32 %s1534_s19, 3  ;;  %s998_s20 = sshll.u32 %s1534_s19, 2 }
   0xf   : > { %s1361_s27 = scalar_lea.vmem %s1528_s0, %s1092_s24  ;;  %507 = vmatpush1.bf16.msra.mxu0 %v1249_v3  ;;  %1231 = vmatpush1.bf16.msra.mxu1 %v1249_v3  ;;  %s1451_s23 = scalar_lea.vmem %s1532_s4, %s998_s20 }
  0x10   : > { %v1258_v5 = vld [vmem:[%s1361_s27 + $0x4] ss:$8 sps:$4 sm:$0xff]   ;;  %508 = vmatprep.subr.bf16.mxu0 %v1312_v1  ;;  %1223 = vmatprep.subr.bf16.mxu1 %v1312_v1  ;;  %v1256_v12 = vld [vmem:[%s1361_s27] ss:$8 sps:$4 sm:$0xff]   ;;  %v1262_v14 = vld [vmem:[%s1361_s27 + $0x14] ss:$8 sps:$4 sm:$0xff]  }
  0x11   : > { %v1261_v6 = vld [vmem:[%s1361_s27 + $0x84] ss:$8 sps:$4 sm:$0xff]   ;;  %1040 = vmatprep.mubr.msk.bf16.mxu0 %vm453_vm0, %v1258_v5  ;;  %v1259_v13 = vld [vmem:[%s1361_s27 + $0x80] ss:$8 sps:$4 sm:$0xff]   ;;  %v1264_v15 = vld [vmem:[%s1361_s27 + $0x94] ss:$8 sps:$4 sm:$0xff]  }
  0x12   : > { %1048 = vmatprep.mubr.msk.bf16.mxu1 %vm453_vm0, %v1261_v6  ;;  %v1266_v16 = vld [vmem:[%s1361_s27 + $0x10] ss:$8 sps:$4 sm:$0xff]   ;;  %v1268_v18 = vld [vmem:[%s1361_s27 + $0x24] ss:$8 sps:$4 sm:$0xff]   ;;  %v1272_v20 = vld [vmem:[%s1361_s27 + $0x20] ss:$8 sps:$4 sm:$0xff]  }
  0x13   : > { %509 = vmatpush1.bf16.msra.mxu0 %v1250_v4  ;;  %1232 = vmatpush1.bf16.msra.mxu1 %v1250_v4  ;;  %v1267_v17 = vld [vmem:[%s1361_s27 + $0x90] ss:$8 sps:$4 sm:$0xff]   ;;  %v1270_v19 = vld [vmem:[%s1361_s27 + $0xa4] ss:$8 sps:$4 sm:$0xff]   ;;  %v1273_v21 = vld [vmem:[%s1361_s27 + $0xa0] ss:$8 sps:$4 sm:$0xff]  }
  0x14   : > { %510 = vmatprep.subr.bf16.mxu0 %v1312_v1  ;;  %1224 = vmatprep.subr.bf16.mxu1 %v1312_v1  ;;  %v1274_v22 = vld [vmem:[%s1361_s27 + $0x34] ss:$8 sps:$4 sm:$0xff]   ;;  %v1278_v24 = vld [vmem:[%s1361_s27 + $0x30] ss:$8 sps:$4 sm:$0xff]   ;;  %v1280_v26 = vld [vmem:[%s1361_s27 + $0x44] ss:$8 sps:$4 sm:$0xff]  }
  0x15   : > { %v1276_v23 = vld [vmem:[%s1361_s27 + $0xb4] ss:$8 sps:$4 sm:$0xff]   ;;  %v1279_v25 = vld [vmem:[%s1361_s27 + $0xb0] ss:$8 sps:$4 sm:$0xff]   ;;  %v1282_v27 = vld [vmem:[%s1361_s27 + $0xc4] ss:$8 sps:$4 sm:$0xff]  }
  0x16   : > { %v1284_v28 = vld [vmem:[%s1361_s27 + $0x40] ss:$8 sps:$4 sm:$0xff]   ;;  %v1286_v30 = vld [vmem:[%s1361_s27 + $0x54] ss:$8 sps:$4 sm:$0xff]   ;;  %v1290_v32 = vld [vmem:[%s1361_s27 + $0x50] ss:$8 sps:$4 sm:$0xff]  }
  0x17   : > { %511 = vmatpush1.bf16.msra.mxu0 %v1251_v7  ;;  %1233 = vmatpush1.bf16.msra.mxu1 %v1251_v7  ;;  %v1285_v29 = vld [vmem:[%s1361_s27 + $0xc0] ss:$8 sps:$4 sm:$0xff]   ;;  %v1288_v31 = vld [vmem:[%s1361_s27 + $0xd4] ss:$8 sps:$4 sm:$0xff]   ;;  %v1291_v33 = vld [vmem:[%s1361_s27 + $0xd0] ss:$8 sps:$4 sm:$0xff]  }
  0x18   : > { %512 = vmatprep.subr.bf16.mxu0 %v1312_v1  ;;  %1225 = vmatprep.subr.bf16.mxu1 %v1312_v1  ;;  %v1292_v34 = vld [vmem:[%s1361_s27 + $0x64] ss:$8 sps:$4 sm:$0xff]   ;;  %v1296_v36 = vld [vmem:[%s1361_s27 + $0x60] ss:$8 sps:$4 sm:$0xff]   ;;  %v1298_v38 = vld [vmem:[%s1361_s27 + $0x74] ss:$8 sps:$4 sm:$0xff]  }
  0x19   : > { %v1294_v35 = vld [vmem:[%s1361_s27 + $0xe4] ss:$8 sps:$4 sm:$0xff]   ;;  %v1297_v37 = vld [vmem:[%s1361_s27 + $0xe0] ss:$8 sps:$4 sm:$0xff]   ;;  %v1300_v39 = vld [vmem:[%s1361_s27 + $0xf4] ss:$8 sps:$4 sm:$0xff]  }
  0x1a   : > { %v1302_v40 = vld [vmem:[%s1361_s27 + $0x70] ss:$8 sps:$4 sm:$0xff]  }
  0x1b   : > { %513 = vmatpush1.bf16.msra.mxu0 %v1252_v8  ;;  %1234 = vmatpush1.bf16.msra.mxu1 %v1252_v8  ;;  %v1303_v41 = vld [vmem:[%s1361_s27 + $0xf0] ss:$8 sps:$4 sm:$0xff]  }
  0x1c   : > { %514 = vmatprep.subr.bf16.mxu0 %v1312_v1  ;;  %1226 = vmatprep.subr.bf16.mxu1 %v1312_v1 }
  0x1f   : > { %515 = vmatpush1.bf16.msra.mxu0 %v1253_v9  ;;  %1235 = vmatpush1.bf16.msra.mxu1 %v1253_v9 }
  0x20   : > { %516 = vmatprep.subr.bf16.mxu0 %v1312_v1  ;;  %1227 = vmatprep.subr.bf16.mxu1 %v1312_v1 }
  0x23   : > { %517 = vmatpush1.bf16.msra.mxu0 %v1254_v10  ;;  %1236 = vmatpush1.bf16.msra.mxu1 %v1254_v10 }
  0x24   : > { %518 = vmatprep.subr.bf16.mxu0 %v1312_v1  ;;  %1228 = vmatprep.subr.bf16.mxu1 %v1312_v1 }
  0x27   : > { %519 = vmatpush1.bf16.msra.mxu0 %v1255_v11  ;;  %1237 = vmatpush1.bf16.msra.mxu1 %v1255_v11 }
  0x2a   : > { %535 = vmatmul.mubr.bf16.vlgmr.msra.gmra.mrb[0].mxu0 %v1256_v12  ;;  %599 = vmatmul.mubr.bf16.vlgmr.msra.gmra.mrb[0].mxu1 %v1259_v13 }
  0x2b   : > { %1041 = vmatprep.mubr.msk.bf16.mxu0 %vm453_vm0, %v1262_v14  ;;  %1049 = vmatprep.mubr.msk.bf16.mxu1 %vm453_vm0, %v1264_v15 }
  0x32   : > { %543 = vmatmul.mubr.bf16.gmra.mrb[4].mxu0 %v1266_v16  ;;  %607 = vmatmul.mubr.bf16.gmra.mrb[4].mxu1 %v1267_v17 }
  0x33   : > { %1042 = vmatprep.mubr.msk.bf16.mxu0 %vm453_vm0, %v1268_v18  ;;  %1050 = vmatprep.mubr.msk.bf16.mxu1 %vm453_vm0, %v1270_v19 }
  0x3a   : > { %551 = vmatmul.mubr.bf16.gmra.mrb[8].mxu0 %v1272_v20  ;;  %615 = vmatmul.mubr.bf16.gmra.mrb[8].mxu1 %v1273_v21 }
  0x3b   : > { %1043 = vmatprep.mubr.msk.bf16.mxu0 %vm453_vm0, %v1274_v22  ;;  %1051 = vmatprep.mubr.msk.bf16.mxu1 %vm453_vm0, %v1276_v23 }
  0x42   : > { %559 = vmatmul.mubr.bf16.gmra.mrb[12].mxu0 %v1278_v24  ;;  %623 = vmatmul.mubr.bf16.gmra.mrb[12].mxu1 %v1279_v25 }
  0x43   : > { %1044 = vmatprep.mubr.msk.bf16.mxu0 %vm453_vm0, %v1280_v26  ;;  %1052 = vmatprep.mubr.msk.bf16.mxu1 %vm453_vm0, %v1282_v27 }
  0x4a   : > { %567 = vmatmul.mubr.bf16.gmra.mrb[16].mxu0 %v1284_v28  ;;  %631 = vmatmul.mubr.bf16.gmra.mrb[16].mxu1 %v1285_v29 }
  0x4b   : > { %1045 = vmatprep.mubr.msk.bf16.mxu0 %vm453_vm0, %v1286_v30  ;;  %1053 = vmatprep.mubr.msk.bf16.mxu1 %vm453_vm0, %v1288_v31 }
  0x52   : > { %575 = vmatmul.mubr.bf16.gmra.mrb[20].mxu0 %v1290_v32  ;;  %639 = vmatmul.mubr.bf16.gmra.mrb[20].mxu1 %v1291_v33 }
  0x53   : > { %1046 = vmatprep.mubr.msk.bf16.mxu0 %vm453_vm0, %v1292_v34  ;;  %1054 = vmatprep.mubr.msk.bf16.mxu1 %vm453_vm0, %v1294_v35 }
  0x5a   : > { %583 = vmatmul.mubr.bf16.gmra.mrb[24].mxu0 %v1296_v36  ;;  %647 = vmatmul.mubr.bf16.gmra.mrb[24].mxu1 %v1297_v37 }
  0x5b   : > { %1047 = vmatprep.mubr.msk.bf16.mxu0 %vm453_vm0, %v1298_v38  ;;  %1055 = vmatprep.mubr.msk.bf16.mxu1 %vm453_vm0, %v1300_v39 }
  0x62   : > { %591 = vmatmul.mubr.bf16.gmra.mrb[28].mxu0 %v1302_v40  ;;  %655 = vmatmul.mubr.bf16.gmra.mrb[28].mxu1 %v1303_v41 }
  0xfd   : > { %v536_v43 = vpop.f32.mrb[0].mxu0  ;;  %v600_v45 = vpop.f32.mrb[0].mxu1 }
  0xfe   : > { %v670_v46 = vmul.f32 %v1432_v42, %v536_v43  ;;  %v686_v47 = vmul.f32 %v1432_v42, %v600_v45  ;;  %v538_v48 = vpop.f32.mrb[1].mxu0  ;;  %v602_v49 = vpop.f32.mrb[1].mxu1 }
  0xff   : > { %v539_v50 = vpop.f32.mrb[2].mxu0  ;;  %v603_v51 = vpop.f32.mrb[2].mxu1 }
 0x100   : > { %v709_v52 = vadd.f32 %v1437_v44, %v670_v46  ;;  %v725_v53 = vadd.f32 %v1437_v44, %v686_v47  ;;  %v671_v54 = vmul.f32 %v1432_v42, %v539_v50  ;;  %v687_v55 = vmul.f32 %v1432_v42, %v603_v51  ;;  %v541_v56 = vpop.f32.mrb[3].mxu0  ;;  %v605_v57 = vpop.f32.mrb[3].mxu1 }
 0x102   : > { %v710_v58 = vadd.f32 %v1437_v44, %v671_v54  ;;  %v726_v59 = vadd.f32 %v1437_v44, %v687_v55  ;;  %v741_v60 = vmax.f32 %v709_v52, 0.0  ;;  %v757_v61 = vmax.f32 %v725_v53, 0.0 }
 0x104   : > { %v742_v62 = vmax.f32 %v710_v58, 0.0  ;;  %v758_v63 = vmax.f32 %v726_v59, 0.0 }
 0x105   : > { %v544_v0 = vpop.f32.mrb[4].mxu0  ;;  %v608_v1 = vpop.f32.mrb[4].mxu1 }
 0x106   : > { %v1128_v2 = vpack.c.bf16 %v742_v62, %v741_v60  ;;  %v1168_v3 = vpack.c.bf16 %v758_v63, %v757_v61  ;;  %v672_v4 = vmul.f32 %v1432_v42, %v544_v0  ;;  %v688_v5 = vmul.f32 %v1432_v42, %v608_v1  ;;  %v546_v6 = vpop.f32.mrb[5].mxu0  ;;  %v610_v7 = vpop.f32.mrb[5].mxu1 }
 0x107   : > { %v547_v8 = vpop.f32.mrb[6].mxu0  ;;  %v611_v9 = vpop.f32.mrb[6].mxu1 }
 0x108   : > { %1129 = vst [vmem:[%s1451_s23] sm:$0xff] %v1128_v2   ;;  %1212 = vst [vmem:[%s1451_s23 + $0x40] sm:$0xff] %v1168_v3   ;;  %v711_v10 = vadd.f32 %v1437_v44, %v672_v4  ;;  %v727_v11 = vadd.f32 %v1437_v44, %v688_v5  ;;  %v673_v12 = vmul.f32 %v1432_v42, %v547_v8  ;;  %v549_v14 = vpop.f32.mrb[7].mxu0  ;;  %v613_v15 = vpop.f32.mrb[7].mxu1 }
 0x109   : > { %v689_v13 = vmul.f32 %v1432_v42, %v611_v9 }
 0x10a   : > { %v712_v16 = vadd.f32 %v1437_v44, %v673_v12  ;;  %v743_v18 = vmax.f32 %v711_v10, 0.0  ;;  %v759_v19 = vmax.f32 %v727_v11, 0.0 }
 0x10b   : > { %v728_v17 = vadd.f32 %v1437_v44, %v689_v13 }
 0x10c   : > { %v744_v20 = vmax.f32 %v712_v16, 0.0 }
 0x10d   : > { %v760_v21 = vmax.f32 %v728_v17, 0.0  ;;  %v552_v22 = vpop.f32.mrb[8].mxu0  ;;  %v616_v23 = vpop.f32.mrb[8].mxu1 }
 0x10e   : > { %v1133_v24 = vpack.c.bf16 %v744_v20, %v743_v18  ;;  %v674_v26 = vmul.f32 %v1432_v42, %v552_v22  ;;  %v690_v27 = vmul.f32 %v1432_v42, %v616_v23  ;;  %v554_v28 = vpop.f32.mrb[9].mxu0  ;;  %v618_v29 = vpop.f32.mrb[9].mxu1 }
 0x10f   : > { %v1173_v25 = vpack.c.bf16 %v760_v21, %v759_v19  ;;  %v555_v30 = vpop.f32.mrb[10].mxu0  ;;  %v619_v31 = vpop.f32.mrb[10].mxu1 }
 0x110   : > { %1205 = vst [vmem:[%s1451_s23 + $0x8] sm:$0xff] %v1133_v24   ;;  %v713_v32 = vadd.f32 %v1437_v44, %v674_v26  ;;  %v729_v33 = vadd.f32 %v1437_v44, %v690_v27  ;;  %v675_v34 = vmul.f32 %v1432_v42, %v555_v30  ;;  %v691_v35 = vmul.f32 %v1432_v42, %v619_v31  ;;  %v557_v36 = vpop.f32.mrb[11].mxu0  ;;  %v621_v37 = vpop.f32.mrb[11].mxu1 }
 0x111   : > { %1213 = vst [vmem:[%s1451_s23 + $0x48] sm:$0xff] %v1173_v25  }
 0x112   : > { %v714_v38 = vadd.f32 %v1437_v44, %v675_v34  ;;  %v730_v39 = vadd.f32 %v1437_v44, %v691_v35  ;;  %v745_v40 = vmax.f32 %v713_v32, 0.0  ;;  %v761_v41 = vmax.f32 %v729_v33, 0.0 }
 0x114   : > { %v746_v43 = vmax.f32 %v714_v38, 0.0  ;;  %v762_v45 = vmax.f32 %v730_v39, 0.0 }
 0x115   : > { %v560_v46 = vpop.f32.mrb[12].mxu0  ;;  %v624_v47 = vpop.f32.mrb[12].mxu1 }
 0x116   : > { %v1138_v48 = vpack.c.bf16 %v746_v43, %v745_v40  ;;  %v1178_v49 = vpack.c.bf16 %v762_v45, %v761_v41  ;;  %v676_v50 = vmul.f32 %v1432_v42, %v560_v46  ;;  %v692_v51 = vmul.f32 %v1432_v42, %v624_v47  ;;  %v562_v52 = vpop.f32.mrb[13].mxu0  ;;  %v626_v53 = vpop.f32.mrb[13].mxu1 }
 0x117   : > { %v563_v54 = vpop.f32.mrb[14].mxu0  ;;  %v627_v55 = vpop.f32.mrb[14].mxu1 }
 0x118   : > { %1206 = vst [vmem:[%s1451_s23 + $0x10] sm:$0xff] %v1138_v48   ;;  %1214 = vst [vmem:[%s1451_s23 + $0x50] sm:$0xff] %v1178_v49   ;;  %v715_v56 = vadd.f32 %v1437_v44, %v676_v50  ;;  %v731_v57 = vadd.f32 %v1437_v44, %v692_v51  ;;  %v677_v58 = vmul.f32 %v1432_v42, %v563_v54  ;;  %v565_v60 = vpop.f32.mrb[15].mxu0  ;;  %v629_v61 = vpop.f32.mrb[15].mxu1 }
 0x119   : > { %v693_v59 = vmul.f32 %v1432_v42, %v627_v55 }
 0x11a   : > { %v716_v62 = vadd.f32 %v1437_v44, %v677_v58  ;;  %v747_v0 = vmax.f32 %v715_v56, 0.0  ;;  %v763_v1 = vmax.f32 %v731_v57, 0.0 }
 0x11b   : > { %v732_v63 = vadd.f32 %v1437_v44, %v693_v59 }
 0x11c   : > { %v748_v2 = vmax.f32 %v716_v62, 0.0 }
 0x11d   : > { %v764_v3 = vmax.f32 %v732_v63, 0.0  ;;  %v568_v4 = vpop.f32.mrb[16].mxu0  ;;  %v632_v5 = vpop.f32.mrb[16].mxu1 }
 0x11e   : > { %v1143_v6 = vpack.c.bf16 %v748_v2, %v747_v0  ;;  %v678_v8 = vmul.f32 %v1432_v42, %v568_v4  ;;  %v694_v9 = vmul.f32 %v1432_v42, %v632_v5  ;;  %v570_v10 = vpop.f32.mrb[17].mxu0  ;;  %v634_v11 = vpop.f32.mrb[17].mxu1 }
 0x11f   : > { %v1183_v7 = vpack.c.bf16 %v764_v3, %v763_v1  ;;  %v571_v12 = vpop.f32.mrb[18].mxu0  ;;  %v635_v13 = vpop.f32.mrb[18].mxu1 }
 0x120   : > { %1207 = vst [vmem:[%s1451_s23 + $0x18] sm:$0xff] %v1143_v6   ;;  %v717_v14 = vadd.f32 %v1437_v44, %v678_v8  ;;  %v733_v15 = vadd.f32 %v1437_v44, %v694_v9  ;;  %v679_v16 = vmul.f32 %v1432_v42, %v571_v12  ;;  %v695_v17 = vmul.f32 %v1432_v42, %v635_v13  ;;  %v573_v18 = vpop.f32.mrb[19].mxu0  ;;  %v637_v19 = vpop.f32.mrb[19].mxu1 }
 0x121   : > { %1215 = vst [vmem:[%s1451_s23 + $0x58] sm:$0xff] %v1183_v7  }
 0x122   : > { %v718_v20 = vadd.f32 %v1437_v44, %v679_v16  ;;  %v734_v21 = vadd.f32 %v1437_v44, %v695_v17  ;;  %v749_v22 = vmax.f32 %v717_v14, 0.0  ;;  %v765_v23 = vmax.f32 %v733_v15, 0.0 }
 0x124   : > { %v750_v24 = vmax.f32 %v718_v20, 0.0  ;;  %v766_v25 = vmax.f32 %v734_v21, 0.0 }
 0x125   : > { %v576_v26 = vpop.f32.mrb[20].mxu0  ;;  %v640_v27 = vpop.f32.mrb[20].mxu1 }
 0x126   : > { %v1148_v28 = vpack.c.bf16 %v750_v24, %v749_v22  ;;  %v1188_v29 = vpack.c.bf16 %v766_v25, %v765_v23  ;;  %v680_v30 = vmul.f32 %v1432_v42, %v576_v26  ;;  %v696_v31 = vmul.f32 %v1432_v42, %v640_v27  ;;  %v578_v32 = vpop.f32.mrb[21].mxu0  ;;  %v642_v33 = vpop.f32.mrb[21].mxu1 }
 0x127   : > { %v579_v34 = vpop.f32.mrb[22].mxu0  ;;  %v643_v35 = vpop.f32.mrb[22].mxu1 }
 0x128   : > { %1208 = vst [vmem:[%s1451_s23 + $0x20] sm:$0xff] %v1148_v28   ;;  %1216 = vst [vmem:[%s1451_s23 + $0x60] sm:$0xff] %v1188_v29   ;;  %v719_v36 = vadd.f32 %v1437_v44, %v680_v30  ;;  %v735_v37 = vadd.f32 %v1437_v44, %v696_v31  ;;  %v681_v38 = vmul.f32 %v1432_v42, %v579_v34  ;;  %v581_v40 = vpop.f32.mrb[23].mxu0  ;;  %v645_v41 = vpop.f32.mrb[23].mxu1 }
 0x129   : > { %v697_v39 = vmul.f32 %v1432_v42, %v643_v35 }
 0x12a   : > { %v720_v43 = vadd.f32 %v1437_v44, %v681_v38  ;;  %v751_v46 = vmax.f32 %v719_v36, 0.0  ;;  %v767_v47 = vmax.f32 %v735_v37, 0.0 }
 0x12b   : > { %v736_v45 = vadd.f32 %v1437_v44, %v697_v39 }
 0x12c   : > { %v752_v48 = vmax.f32 %v720_v43, 0.0 }
 0x12d   : > { %v768_v49 = vmax.f32 %v736_v45, 0.0  ;;  %v584_v50 = vpop.f32.mrb[24].mxu0  ;;  %v648_v51 = vpop.f32.mrb[24].mxu1 }
 0x12e   : > { %v1153_v52 = vpack.c.bf16 %v752_v48, %v751_v46  ;;  %v682_v54 = vmul.f32 %v1432_v42, %v584_v50  ;;  %v698_v55 = vmul.f32 %v1432_v42, %v648_v51  ;;  %v586_v56 = vpop.f32.mrb[25].mxu0  ;;  %v650_v57 = vpop.f32.mrb[25].mxu1 }
 0x12f   : > { %v1193_v53 = vpack.c.bf16 %v768_v49, %v767_v47  ;;  %v587_v58 = vpop.f32.mrb[26].mxu0  ;;  %v651_v59 = vpop.f32.mrb[26].mxu1 }
 0x130   : > { %1209 = vst [vmem:[%s1451_s23 + $0x28] sm:$0xff] %v1153_v52   ;;  %v721_v60 = vadd.f32 %v1437_v44, %v682_v54  ;;  %v737_v61 = vadd.f32 %v1437_v44, %v698_v55  ;;  %v683_v62 = vmul.f32 %v1432_v42, %v587_v58  ;;  %v699_v63 = vmul.f32 %v1432_v42, %v651_v59  ;;  %v589_v0 = vpop.f32.mrb[27].mxu0  ;;  %v653_v1 = vpop.f32.mrb[27].mxu1 }
 0x131   : > { %1217 = vst [vmem:[%s1451_s23 + $0x68] sm:$0xff] %v1193_v53  }
 0x132   : > { %v722_v2 = vadd.f32 %v1437_v44, %v683_v62  ;;  %v738_v3 = vadd.f32 %v1437_v44, %v699_v63  ;;  %v753_v4 = vmax.f32 %v721_v60, 0.0  ;;  %v769_v5 = vmax.f32 %v737_v61, 0.0 }
 0x134   : > { %v754_v6 = vmax.f32 %v722_v2, 0.0  ;;  %v770_v7 = vmax.f32 %v738_v3, 0.0 }
 0x135   : > { %v592_v8 = vpop.f32.mrb[28].mxu0  ;;  %v656_v9 = vpop.f32.mrb[28].mxu1 }
 0x136   : > { %v1158_v10 = vpack.c.bf16 %v754_v6, %v753_v4  ;;  %v1198_v11 = vpack.c.bf16 %v770_v7, %v769_v5  ;;  %v684_v12 = vmul.f32 %v1432_v42, %v592_v8  ;;  %v700_v13 = vmul.f32 %v1432_v42, %v656_v9  ;;  %v594_v14 = vpop.f32.mrb[29].mxu0  ;;  %v658_v15 = vpop.f32.mrb[29].mxu1 }
 0x137   : > { %v595_v16 = vpop.f32.mrb[30].mxu0  ;;  %v659_v17 = vpop.f32.mrb[30].mxu1 }
 0x138   : > { %1210 = vst [vmem:[%s1451_s23 + $0x30] sm:$0xff] %v1158_v10   ;;  %1218 = vst [vmem:[%s1451_s23 + $0x70] sm:$0xff] %v1198_v11   ;;  %v723_v18 = vadd.f32 %v1437_v44, %v684_v12  ;;  %v739_v19 = vadd.f32 %v1437_v44, %v700_v13  ;;  %v685_v20 = vmul.f32 %v1432_v42, %v595_v16  ;;  %v597_v22 = vpop.f32.mrb[31].mxu0  ;;  %v661_v23 = vpop.f32.mrb[31].mxu1 }
 0x139   : > { %v701_v21 = vmul.f32 %v1432_v42, %v659_v17 }
 0x13a   : > { %v724_v24 = vadd.f32 %v1437_v44, %v685_v20  ;;  %v755_v26 = vmax.f32 %v723_v18, 0.0  ;;  %v771_v27 = vmax.f32 %v739_v19, 0.0 }
 0x13b   : > { %v740_v25 = vadd.f32 %v1437_v44, %v701_v21 }
 0x13c   : > { %v756_v28 = vmax.f32 %v724_v24, 0.0 }
 0x13d   : > { %v772_v29 = vmax.f32 %v740_v25, 0.0 }
 0x13e   : > { %v1163_v30 = vpack.c.bf16 %v756_v28, %v755_v26 }
 0x13f   : > { %v1203_v31 = vpack.c.bf16 %v772_v29, %v771_v27 }
 0x140   : > { %1211 = vst [vmem:[%s1451_s23 + $0x38] sm:$0xff] %v1163_v30  }
 0x141   : > { %1219 = vst [vmem:[%s1451_s23 + $0x78] sm:$0xff] %v1203_v31  }
 0x142 PF: > { %s14_s15 = sadd.s32 1, %s1310_s15  }
 0x143   : > { %p11_p4 = scmp.ge.s32.totalorder %s14_s15, 4  }
 0x145   :  { %13 = sbr.rel (!%p11_p4) target bundleno = 1 (0x1), region = 66 }

// kernel: _lambda_.10
= control target key start
LH: loop header
LB: loop body
LE: loop exit
PB: predicated region body
PF: predicated region fallthrough
CT: control target
= control target key end

     0   :  { %vm314_vm0 = vcmask 261120   ;;  %s1207_s1 = inlined_call_operand.vmem [shape: bf16[288,128], index: 1, kind: input, shape index: {}]   ;;  %s1208_s0 = inlined_call_operand.vmem [shape: bf16[128,288], index: 0, kind: input, shape index: {}]   ;;  %s1209_s2 = inlined_call_operand.vmem [shape: f32[1,128], index: 2, kind: input, shape index: {}]   ;;  %s1210_s3 = inlined_call_operand.vmem [shape: f32[1,128], index: 3, kind: input, shape index: {}]   ;;  %s1211_s4 = inlined_call_operand.vmem [shape: bf16[128,128], index: 4, kind: output, shape index: {}]  }
   0x1   :  { %v920_v0 = vld [vmem:[%s1207_s1 + $0x40] sm:$0xff]   ;;  %v922_v2 = vld [vmem:[%s1207_s1 + $0x48] sm:$0xff]   ;;  %v924_v4 = vld [vmem:[%s1207_s1 + $0x50] sm:$0xff]  }
   0x2   :  { %v921_v1 = vld [vmem:[%s1207_s1] sm:$0xff]   ;;  %810 = vmatprep.subr.bf16.mxu0 %v920_v0  ;;  %904 = vmatprep.subr.bf16.mxu1 %v920_v0  ;;  %v923_v3 = vld [vmem:[%s1207_s1 + $0x8] sm:$0xff]   ;;  %v925_v5 = vld [vmem:[%s1207_s1 + $0x10] sm:$0xff]  }
   0x3   :  { %811 = vmatpush3.bf16.msra.mxu0 %v921_v1  ;;  %912 = vmatpush3.bf16.msra.mxu1 %v921_v1  ;;  %v926_v6 = vld [vmem:[%s1207_s1 + $0x58] sm:$0xff]   ;;  %v928_v8 = vld [vmem:[%s1207_s1 + $0x60] sm:$0xff]   ;;  %v930_v10 = vld [vmem:[%s1207_s1 + $0x68] sm:$0xff]  }
   0x4   :  { %812 = vmatprep.subr.bf16.mxu0 %v922_v2  ;;  %905 = vmatprep.subr.bf16.mxu1 %v922_v2  ;;  %v927_v7 = vld [vmem:[%s1207_s1 + $0x18] sm:$0xff]   ;;  %v929_v9 = vld [vmem:[%s1207_s1 + $0x20] sm:$0xff]   ;;  %v931_v13 = vld [vmem:[%s1207_s1 + $0x28] sm:$0xff]  }
   0x5   :  { %v938_v11 = vld [vmem:[%s1208_s0 + $0x4] ss:$12 sps:$4 sm:$0xff]   ;;  %v941_v12 = vld [vmem:[%s1208_s0 + $0x94] ss:$12 sps:$4 sm:$0xff]   ;;  %v934_v16 = vld [vmem:[%s1207_s1 + $0x78] sm:$0xff]  }
   0x6   :  { %v932_v14 = vld [vmem:[%s1207_s1 + $0x70] sm:$0xff]   ;;  %371 = vmatprep.mubr.bf16.mxu0 %v938_v11  ;;  %419 = vmatprep.mubr.bf16.mxu1 %v941_v12  ;;  %v935_v17 = vld [vmem:[%s1207_s1 + $0x38] sm:$0xff]   ;;  %v936_v18 = vld [vmem:[%s1208_s0] ss:$12 sps:$4 sm:$0xff]  }
   0x7   :  { %813 = vmatpush3.bf16.msra.mxu0 %v923_v3  ;;  %913 = vmatpush3.bf16.msra.mxu1 %v923_v3  ;;  %v933_v15 = vld [vmem:[%s1207_s1 + $0x30] sm:$0xff]   ;;  %v942_v19 = vld [vmem:[%s1207_s1 + $0x80] sm:$0xff]   ;;  %v943_v21 = vld [vmem:[%s1208_s0 + $0x1c] ss:$12 sps:$4 sm:$0xff]  }
   0x8   :  { %814 = vmatprep.subr.bf16.mxu0 %v924_v4  ;;  %906 = vmatprep.subr.bf16.mxu1 %v924_v4  ;;  %v939_v20 = vld [vmem:[%s1208_s0 + $0x90] ss:$12 sps:$4 sm:$0xff]   ;;  %v945_v22 = vld [vmem:[%s1208_s0 + $0xac] ss:$12 sps:$4 sm:$0xff]   ;;  %v948_v25 = vld [vmem:[%s1208_s0 + $0xa8] ss:$12 sps:$4 sm:$0xff]  }
   0x9   :  { %v949_v23 = vld [vmem:[%s1207_s1 + $0x88] sm:$0xff]   ;;  %v947_v24 = vld [vmem:[%s1208_s0 + $0x18] ss:$12 sps:$4 sm:$0xff]   ;;  %v950_v26 = vld [vmem:[%s1208_s0 + $0x34] ss:$12 sps:$4 sm:$0xff]  }
   0xa   :  { %v952_v27 = vld [vmem:[%s1208_s0 + $0x8] ss:$12 sps:$4 sm:$0xff]   ;;  %v953_v28 = vld [vmem:[%s1208_s0 + $0x30] ss:$12 sps:$4 sm:$0xff]   ;;  %v954_v29 = vld [vmem:[%s1208_s0 + $0x20] ss:$12 sps:$4 sm:$0xff]  }
   0xb   :  { %815 = vmatpush3.bf16.msra.mxu0 %v925_v5  ;;  %914 = vmatpush3.bf16.msra.mxu1 %v925_v5  ;;  %v955_v30 = vld [vmem:[%s1208_s0 + $0x4c] ss:$12 sps:$4 sm:$0xff]   ;;  %v958_v32 = vld [vmem:[%s1208_s0 + $0x48] ss:$12 sps:$4 sm:$0xff]   ;;  %v959_v33 = vld [vmem:[%s1208_s0 + $0x50] ss:$12 sps:$4 sm:$0xff]  }
   0xc   :  { %816 = vmatprep.subr.bf16.mxu0 %v926_v6  ;;  %907 = vmatprep.subr.bf16.mxu1 %v926_v6  ;;  %v957_v31 = vld [vmem:[%s1208_s0 + $0x38] ss:$12 sps:$4 sm:$0xff]   ;;  %v962_v35 = vld [vmem:[%s1208_s0 + $0x68] ss:$12 sps:$4 sm:$0xff]   ;;  %v963_v36 = vld [vmem:[%s1208_s0 + $0x60] ss:$12 sps:$4 sm:$0xff]  }
   0xd   :  { %v960_v34 = vld [vmem:[%s1208_s0 + $0x64] ss:$12 sps:$4 sm:$0xff]   ;;  %v964_v37 = vld [vmem:[%s1208_s0 + $0x80] ss:$12 sps:$4 sm:$0xff]   ;;  %v965_v38 = vld [vmem:[%s1208_s0 + $0x7c] ss:$12 sps:$4 sm:$0xff]  }
   0xe   :  { %v967_v39 = vld [vmem:[%s1208_s0 + $0x98] ss:$12 sps:$4 sm:$0xff]   ;;  %v969_v41 = vld [vmem:[%s1208_s0 + $0xb0] ss:$12 sps:$4 sm:$0xff]   ;;  %v1140_v4 = vld [vmem:[%s1209_s2] ss:$0 sm:$0xff] }
   0xf   :  { %817 = vmatpush3.bf16.msra.mxu0 %v927_v7  ;;  %915 = vmatpush3.bf16.msra.mxu1 %v927_v7  ;;  %v968_v40 = vld [vmem:[%s1208_s0 + $0x78] ss:$12 sps:$4 sm:$0xff]  }
  0x10   :  { %818 = vmatprep.subr.bf16.mxu0 %v928_v8  ;;  %908 = vmatprep.subr.bf16.mxu1 %v928_v8  ;;  %v1145_v8 = vld [vmem:[%s1210_s3] ss:$0 sm:$0xff] }
  0x13   :  { %819 = vmatpush3.bf16.msra.mxu0 %v929_v9  ;;  %916 = vmatpush3.bf16.msra.mxu1 %v929_v9 }
  0x14   :  { %820 = vmatprep.subr.bf16.mxu0 %v930_v10  ;;  %909 = vmatprep.subr.bf16.mxu1 %v930_v10 }
  0x17   :  { %821 = vmatpush3.bf16.msra.mxu0 %v931_v13  ;;  %917 = vmatpush3.bf16.msra.mxu1 %v931_v13 }
  0x18   :  { %822 = vmatprep.subr.bf16.mxu0 %v932_v14  ;;  %910 = vmatprep.subr.bf16.mxu1 %v932_v14 }
  0x1b   :  { %823 = vmatpush3.bf16.msra.mxu0 %v933_v15  ;;  %918 = vmatpush3.bf16.msra.mxu1 %v933_v15 }
  0x1c   :  { %824 = vmatprep.subr.bf16.mxu0 %v934_v16  ;;  %911 = vmatprep.subr.bf16.mxu1 %v934_v16 }
  0x1f   :  { %825 = vmatpush3.bf16.msra.mxu0 %v935_v17  ;;  %919 = vmatpush3.bf16.msra.mxu1 %v935_v17 }
  0x20   :  { %884 = vmatprep.subr.bf16.mxu1 %v942_v19 }
  0x22   :  { %372 = vmatmul.mubr.bf16.vlgmr.msra.gmra.mrb[0].mxu0 %v936_v18  ;;  %420 = vmatmul.mubr.bf16.vlgmr.msra.gmra.mrb[0].mxu1 %v939_v20 }
  0x23   :  { %885 = vmatpush3.bf16.msra.mxu1 %v942_v19  ;;  %379 = vmatprep.mubr.bf16.mxu0 %v943_v21 }
  0x24   :  { %427 = vmatprep.mubr.bf16.mxu1 %v945_v22  ;;  %886 = vmatprep.subr.bf16.mxu1 %v949_v23 }
  0x27   :  { %887 = vmatpush3.bf16.msra.mxu1 %v949_v23 }
  0x2a   :  { %380 = vmatmul.mubr.bf16.gmra.mrb[4].mxu0 %v947_v24  ;;  %428 = vmatmul.mubr.bf16.gmra.mrb[4].mxu1 %v948_v25 }
  0x2b   :  { %387 = vmatprep.mubr.bf16.mxu0 %v950_v26  ;;  %888 = vmatprep.mubr.msk.bf16.mxu1 %vm314_vm0, %v952_v27 }
  0x32   :  { %388 = vmatmul.mubr.bf16.gmra.mrb[8].mxu0 %v953_v28  ;;  %889 = vmatmul.mubr.msk.bf16.vlgmr.msra.gmra.mrb[8].mxu1 %vm314_vm0, %v954_v29 }
  0x33   :  { %395 = vmatprep.mubr.bf16.mxu0 %v955_v30  ;;  %892 = vmatprep.mubr.msk.bf16.mxu1 %vm314_vm0, %v957_v31 }
  0x3a   :  { %396 = vmatmul.mubr.bf16.gmra.mrb[12].mxu0 %v958_v32  ;;  %893 = vmatmul.mubr.msk.bf16.gmra.mrb[12].mxu1 %vm314_vm0, %v959_v33 }
  0x3b   :  { %403 = vmatprep.mubr.bf16.mxu0 %v960_v34  ;;  %896 = vmatprep.mubr.msk.bf16.mxu1 %vm314_vm0, %v962_v35 }
  0x42   :  { %404 = vmatmul.mubr.bf16.gmra.mrb[16].mxu0 %v963_v36  ;;  %897 = vmatmul.mubr.msk.bf16.gmra.mrb[16].mxu1 %vm314_vm0, %v964_v37 }
  0x43   :  { %411 = vmatprep.mubr.bf16.mxu0 %v965_v38  ;;  %900 = vmatprep.mubr.msk.bf16.mxu1 %vm314_vm0, %v967_v39 }
  0x4a   :  { %412 = vmatmul.mubr.bf16.gmra.mrb[20].mxu0 %v968_v40  ;;  %901 = vmatmul.mubr.msk.bf16.gmra.mrb[20].mxu1 %vm314_vm0, %v969_v41 }
  0xf5   :  { %v826_v42 = vpop.f32.mrb[0].mxu0  ;;  %v862_v43 = vpop.f32.mrb[0].mxu1 }
  0xf6   :  { %v827_v44 = vpop.f32.mrb[1].mxu0  ;;  %v863_v45 = vpop.f32.mrb[1].mxu1 }
  0xf7   :  { %v828_v46 = vadd.f32 %v827_v44, %v826_v42  ;;  %v1129_v47 = vadd.f32 %v863_v45, %v862_v43  ;;  %v829_v48 = vpop.f32.mrb[2].mxu0  ;;  %v865_v49 = vpop.f32.mrb[2].mxu1 }
  0xf8   :  { %v830_v50 = vpop.f32.mrb[3].mxu0  ;;  %v866_v51 = vpop.f32.mrb[3].mxu1 }
  0xf9   :  { %v831_v52 = vadd.f32 %v830_v50, %v829_v48  ;;  %v1131_v53 = vadd.f32 %v866_v51, %v865_v49 }
  0xfd   :  { %v832_v54 = vpop.f32.mrb[4].mxu0  ;;  %v868_v55 = vpop.f32.mrb[4].mxu1 }
  0xfe   :  { %v833_v56 = vpop.f32.mrb[5].mxu0  ;;  %v869_v57 = vpop.f32.mrb[5].mxu1 }
  0xff   :  { %v834_v58 = vadd.f32 %v833_v56, %v832_v54  ;;  %v1133_v59 = vadd.f32 %v869_v57, %v868_v55  ;;  %v835_v60 = vpop.f32.mrb[6].mxu0  ;;  %v871_v61 = vpop.f32.mrb[6].mxu1 }
 0x100   :  { %v836_v62 = vpop.f32.mrb[7].mxu0  ;;  %v872_v63 = vpop.f32.mrb[7].mxu1 }
 0x101   :  { %v837_v0 = vadd.f32 %v836_v62, %v835_v60  ;;  %v1135_v1 = vadd.f32 %v872_v63, %v871_v61 }
 0x105   :  { %v838_v2 = vpop.f32.mrb[8].mxu0  ;;  %v890_v3 = vpop.f32.mrb[8].mxu1 }
 0x106   :  { %v479_v5 = vadd.f32 %v890_v3, %v834_v58  ;;  %v839_v6 = vpop.f32.mrb[9].mxu0  ;;  %v470_v7 = vpop.f32.mrb[9].mxu1 }
 0x107   :  { %v840_v9 = vadd.f32 %v839_v6, %v838_v2  ;;  %v471_v10 = vadd.f32 %v828_v46, %v470_v7  ;;  %v841_v11 = vpop.f32.mrb[10].mxu0  ;;  %v891_v12 = vpop.f32.mrb[10].mxu1 }
 0x108   :  { %v542_v13 = vmul.f32 %v1140_v4, %v479_v5  ;;  %v482_v14 = vadd.f32 %v891_v12, %v837_v0  ;;  %v842_v15 = vpop.f32.mrb[11].mxu0  ;;  %v473_v16 = vpop.f32.mrb[11].mxu1 }
 0x109   :  { %v540_v17 = vmul.f32 %v1140_v4, %v471_v10  ;;  %v843_v18 = vadd.f32 %v842_v15, %v841_v11  ;;  %v474_v19 = vadd.f32 %v831_v52, %v473_v16 }
 0x10a   :  { %v565_v20 = vadd.f32 %v1145_v8, %v542_v13  ;;  %v543_v21 = vmul.f32 %v1140_v4, %v482_v14 }
 0x10b   :  { %v563_v22 = vadd.f32 %v1145_v8, %v540_v17  ;;  %v541_v23 = vmul.f32 %v1140_v4, %v474_v19 }
 0x10c   :  { %v566_v24 = vadd.f32 %v1145_v8, %v543_v21  ;;  %v581_v28 = vmax.f32 %v565_v20, 0.0 }
 0x10d   :  { %v564_v25 = vadd.f32 %v1145_v8, %v541_v23  ;;  %v844_v26 = vpop.f32.mrb[12].mxu0  ;;  %v894_v27 = vpop.f32.mrb[12].mxu1  ;;  %v579_v32 = vmax.f32 %v563_v22, 0.0 }
 0x10e   :  { %v582_v29 = vmax.f32 %v566_v24, 0.0  ;;  %v845_v30 = vpop.f32.mrb[13].mxu0  ;;  %v486_v31 = vpop.f32.mrb[13].mxu1 }
 0x10f   :  { %v580_v33 = vmax.f32 %v564_v25, 0.0  ;;  %v846_v34 = vadd.f32 %v845_v30, %v844_v26  ;;  %v487_v35 = vadd.f32 %v840_v9, %v486_v31  ;;  %v847_v36 = vpop.f32.mrb[14].mxu0  ;;  %v895_v37 = vpop.f32.mrb[14].mxu1 }
 0x110   :  { %v771_v38 = vpack.c.bf16 %v582_v29, %v581_v28  ;;  %v848_v39 = vpop.f32.mrb[15].mxu0  ;;  %v489_v40 = vpop.f32.mrb[15].mxu1 }
 0x111   :  { %v766_v41 = vpack.c.bf16 %v580_v33, %v579_v32  ;;  %v495_v42 = vadd.f32 %v894_v27, %v846_v34  ;;  %v544_v43 = vmul.f32 %v1140_v4, %v487_v35  ;;  %v849_v44 = vadd.f32 %v848_v39, %v847_v36 }
 0x112   :  { %803 = vst [vmem:[%s1211_s4 + $0x8] sm:$0xff] %v771_v38   ;;  %v490_v45 = vadd.f32 %v843_v18, %v489_v40 }
 0x113   :  { %767 = vst [vmem:[%s1211_s4] sm:$0xff] %v766_v41   ;;  %v546_v46 = vmul.f32 %v1140_v4, %v495_v42  ;;  %v498_v48 = vadd.f32 %v895_v37, %v849_v44  ;;  %v567_v49 = vadd.f32 %v1145_v8, %v544_v43 }
 0x114   :  { %v545_v50 = vmul.f32 %v1140_v4, %v490_v45 }
 0x115   :  { %v569_v51 = vadd.f32 %v1145_v8, %v546_v46  ;;  %v547_v52 = vmul.f32 %v1140_v4, %v498_v48  ;;  %v850_v54 = vpop.f32.mrb[16].mxu0  ;;  %v898_v55 = vpop.f32.mrb[16].mxu1  ;;  %v583_v0 = vmax.f32 %v567_v49, 0.0 }
 0x116   :  { %v568_v56 = vadd.f32 %v1145_v8, %v545_v50  ;;  %v851_v57 = vpop.f32.mrb[17].mxu0  ;;  %v502_v58 = vpop.f32.mrb[17].mxu1 }
 0x117   :  { %v570_v60 = vadd.f32 %v1145_v8, %v547_v52  ;;  %v852_v61 = vadd.f32 %v851_v57, %v850_v54  ;;  %v853_v62 = vpop.f32.mrb[18].mxu0  ;;  %v899_v63 = vpop.f32.mrb[18].mxu1  ;;  %v585_v6 = vmax.f32 %v569_v51, 0.0 }
 0x118   :  { %v584_v2 = vmax.f32 %v568_v56, 0.0  ;;  %v854_v3 = vpop.f32.mrb[19].mxu0  ;;  %v505_v5 = vpop.f32.mrb[19].mxu1 }
 0x119   :  { %v586_v7 = vmax.f32 %v570_v60, 0.0  ;;  %v503_v9 = vadd.f32 %v852_v61, %v502_v58  ;;  %v855_v10 = vadd.f32 %v854_v3, %v853_v62 }
 0x11a   :  { %v776_v11 = vpack.c.bf16 %v584_v2, %v583_v0 }
 0x11b   :  { %v781_v12 = vpack.c.bf16 %v586_v7, %v585_v6  ;;  %v548_v13 = vmul.f32 %v1140_v4, %v503_v9  ;;  %v506_v14 = vadd.f32 %v855_v10, %v505_v5 }
 0x11c   :  { %804 = vst [vmem:[%s1211_s4 + $0x10] sm:$0xff] %v776_v11  }
 0x11d   :  { %805 = vst [vmem:[%s1211_s4 + $0x18] sm:$0xff] %v781_v12   ;;  %v571_v15 = vadd.f32 %v1145_v8, %v548_v13  ;;  %v549_v16 = vmul.f32 %v1140_v4, %v506_v14  ;;  %v856_v17 = vpop.f32.mrb[20].mxu0  ;;  %v902_v18 = vpop.f32.mrb[20].mxu1 }
 0x11e   :  { %v527_v19 = vadd.f32 %v902_v18, %v1133_v59  ;;  %v857_v20 = vpop.f32.mrb[21].mxu0  ;;  %v518_v21 = vpop.f32.mrb[21].mxu1 }
 0x11f   :  { %v572_v22 = vadd.f32 %v1145_v8, %v549_v16  ;;  %v858_v23 = vadd.f32 %v857_v20, %v856_v17  ;;  %v519_v24 = vadd.f32 %v1129_v47, %v518_v21  ;;  %v859_v25 = vpop.f32.mrb[22].mxu0  ;;  %v903_v26 = vpop.f32.mrb[22].mxu1  ;;  %v587_v27 = vmax.f32 %v571_v15, 0.0 }
 0x120   :  { %v554_v28 = vmul.f32 %v1140_v4, %v527_v19  ;;  %v530_v29 = vadd.f32 %v903_v26, %v1135_v1  ;;  %v860_v30 = vpop.f32.mrb[23].mxu0  ;;  %v521_v31 = vpop.f32.mrb[23].mxu1 }
 0x121   :  { %v588_v32 = vmax.f32 %v572_v22, 0.0  ;;  %v511_v33 = vadd.f32 %v898_v55, %v858_v23  ;;  %v552_v59 = vmul.f32 %v1140_v4, %v519_v24  ;;  %v861_v34 = vadd.f32 %v860_v30, %v859_v25 }
 0x122   :  { %v577_v35 = vadd.f32 %v1145_v8, %v554_v28  ;;  %v555_v36 = vmul.f32 %v1140_v4, %v530_v29  ;;  %v522_v47 = vadd.f32 %v1131_v53, %v521_v31 }
 0x123   :  { %v786_v37 = vpack.c.bf16 %v588_v32, %v587_v27  ;;  %v550_v38 = vmul.f32 %v1140_v4, %v511_v33  ;;  %v514_v39 = vadd.f32 %v899_v63, %v861_v34  ;;  %v575_v40 = vadd.f32 %v1145_v8, %v552_v59 }
 0x124   :  { %v578_v1 = vadd.f32 %v1145_v8, %v555_v36  ;;  %v553_v41 = vmul.f32 %v1140_v4, %v522_v47  ;;  %v593_v44 = vmax.f32 %v577_v35, 0.0 }
 0x125   :  { %806 = vst [vmem:[%s1211_s4 + $0x20] sm:$0xff] %v786_v37   ;;  %v573_v42 = vadd.f32 %v1145_v8, %v550_v38  ;;  %v551_v43 = vmul.f32 %v1140_v4, %v514_v39  ;;  %v591_v48 = vmax.f32 %v575_v40, 0.0 }
 0x126   :  { %v594_v53 = vmax.f32 %v578_v1, 0.0  ;;  %v576_v45 = vadd.f32 %v1145_v8, %v553_v41 }
 0x127   :  { %v574_v46 = vadd.f32 %v1145_v8, %v551_v43  ;;  %v589_v51 = vmax.f32 %v573_v42, 0.0 }
 0x128   :  { %v801_v49 = vpack.c.bf16 %v594_v53, %v593_v44  ;;  %v592_v50 = vmax.f32 %v576_v45, 0.0 }
 0x129   :  { %v590_v52 = vmax.f32 %v574_v46, 0.0 }
 0x12a   :  { %809 = vst [vmem:[%s1211_s4 + $0x38] sm:$0xff] %v801_v49   ;;  %v796_v54 = vpack.c.bf16 %v592_v50, %v591_v48 }
 0x12b   :  { %v791_v55 = vpack.c.bf16 %v590_v52, %v589_v51 }
 0x12c   :  { %808 = vst [vmem:[%s1211_s4 + $0x30] sm:$0xff] %v796_v54  }
 0x12d   :  { %807 = vst [vmem:[%s1211_s4 + $0x28] sm:$0xff] %v791_v55  }

// kernel: _lambda_.11
= control target key start
LH: loop header
LB: loop body
LE: loop exit
PB: predicated region body
PF: predicated region fallthrough
CT: control target
= control target key end

     0   :  { %vm368_vm0 = vcmask 523264   ;;  %s940_s1 = inlined_call_operand.vmem [shape: bf16[576,128], index: 1, kind: input, shape index: {}]   ;;  %s941_s0 = inlined_call_operand.vmem [shape: bf16[32,576], index: 0, kind: input, shape index: {}]   ;;  %s942_s2 = inlined_call_operand.vmem [shape: f32[1,128], index: 2, kind: input, shape index: {}]   ;;  %s943_s3 = inlined_call_operand.vmem [shape: f32[1,128], index: 3, kind: input, shape index: {}]   ;;  %s944_s4 = inlined_call_operand.vmem [shape: bf16[32,128], index: 4, kind: output, shape index: {}]  }
   0x1   :  { %v715_v0 = vld [vmem:[%s940_s1 + $0x40] sm:$0xff]   ;;  %v719_v4 = vld [vmem:[%s940_s1 + $0x48] sm:$0xff]   ;;  %v723_v8 = vld [vmem:[%s940_s1 + $0x50] sm:$0xff]  }
   0x2   :  { %v716_v1 = vld [vmem:[%s940_s1 + $0xc0] sm:$0xff]   ;;  %641 = vmatprep.subr.bf16.mxu0 %v715_v0  ;;  %v720_v5 = vld [vmem:[%s940_s1 + $0xc8] sm:$0xff]   ;;  %v724_v9 = vld [vmem:[%s940_s1 + $0xd0] sm:$0xff]  }
   0x3   :  { %v717_v2 = vld [vmem:[%s940_s1] sm:$0xff]   ;;  %669 = vmatprep.subr.bf16.mxu1 %v716_v1  ;;  %v721_v6 = vld [vmem:[%s940_s1 + $0x8] sm:$0xff]   ;;  %v725_v10 = vld [vmem:[%s940_s1 + $0x10] sm:$0xff]  }
   0x4   :  { %v718_v3 = vld [vmem:[%s940_s1 + $0x80] sm:$0xff]   ;;  %642 = vmatpush3.bf16.msra.mxu0 %v717_v2  ;;  %v722_v7 = vld [vmem:[%s940_s1 + $0x88] sm:$0xff]   ;;  %v726_v11 = vld [vmem:[%s940_s1 + $0x90] sm:$0xff]  }
   0x5   :  { %670 = vmatpush3.bf16.msra.mxu1 %v718_v3  ;;  %643 = vmatprep.subr.bf16.mxu0 %v719_v4  ;;  %v727_v12 = vld [vmem:[%s940_s1 + $0x58] sm:$0xff]   ;;  %v731_v16 = vld [vmem:[%s940_s1 + $0x60] sm:$0xff]   ;;  %v735_v20 = vld [vmem:[%s940_s1 + $0x68] sm:$0xff]  }
   0x6   :  { %671 = vmatprep.subr.bf16.mxu1 %v720_v5  ;;  %v728_v13 = vld [vmem:[%s940_s1 + $0xd8] sm:$0xff]   ;;  %v732_v17 = vld [vmem:[%s940_s1 + $0xe0] sm:$0xff]   ;;  %v736_v21 = vld [vmem:[%s940_s1 + $0xe8] sm:$0xff]  }
   0x7   :  { %v729_v14 = vld [vmem:[%s940_s1 + $0x18] sm:$0xff]   ;;  %v733_v18 = vld [vmem:[%s940_s1 + $0x20] sm:$0xff]   ;;  %v737_v22 = vld [vmem:[%s940_s1 + $0x28] sm:$0xff]  }
   0x8   :  { %644 = vmatpush3.bf16.msra.mxu0 %v721_v6  ;;  %v730_v15 = vld [vmem:[%s940_s1 + $0x98] sm:$0xff]   ;;  %v734_v19 = vld [vmem:[%s940_s1 + $0xa0] sm:$0xff]   ;;  %v738_v23 = vld [vmem:[%s940_s1 + $0xa8] sm:$0xff]  }
   0x9   :  { %672 = vmatpush3.bf16.msra.mxu1 %v722_v7  ;;  %645 = vmatprep.subr.bf16.mxu0 %v723_v8  ;;  %v739_v24 = vld [vmem:[%s940_s1 + $0x70] sm:$0xff]   ;;  %v743_v28 = vld [vmem:[%s940_s1 + $0x78] sm:$0xff]   ;;  %v752_v35 = vld [vmem:[%s941_s0 + $0xc] ss:$20 sps:$4 sm:$0xff]  }
   0xa   :  { %673 = vmatprep.subr.bf16.mxu1 %v724_v9  ;;  %v740_v25 = vld [vmem:[%s940_s1 + $0xf0] sm:$0xff]   ;;  %v744_v29 = vld [vmem:[%s940_s1 + $0xf8] sm:$0xff]   ;;  %v753_v36 = vld [vmem:[%s940_s1 + $0x100] sm:$0xff]   ;;  %456 = vmatprep.mubr.bf16.mxu1 %v752_v35 }
   0xb   :  { %v741_v26 = vld [vmem:[%s940_s1 + $0x30] sm:$0xff]   ;;  %v745_v30 = vld [vmem:[%s940_s1 + $0x38] sm:$0xff]   ;;  %v754_v37 = vld [vmem:[%s940_s1 + $0x108] sm:$0xff]  }
   0xc   :  { %646 = vmatpush3.bf16.msra.mxu0 %v725_v10  ;;  %v742_v27 = vld [vmem:[%s940_s1 + $0xb0] sm:$0xff]   ;;  %v746_v31 = vld [vmem:[%s940_s1 + $0xb8] sm:$0xff]   ;;  %v755_v38 = vld [vmem:[%s941_s0 + $0x2c] ss:$20 sps:$4 sm:$0xff]  }
   0xd   :  { %674 = vmatpush3.bf16.msra.mxu1 %v726_v11  ;;  %647 = vmatprep.subr.bf16.mxu0 %v727_v12  ;;  %v747_v32 = vld [vmem:[%s941_s0] ss:$20 sps:$4 sm:$0xff]   ;;  %v749_v33 = vld [vmem:[%s941_s0 + $0x4] ss:$20 sps:$4 sm:$0xff]   ;;  %v750_v34 = vld [vmem:[%s941_s0 + $0x8] ss:$20 sps:$4 sm:$0xff]  }
   0xe   :  { %675 = vmatprep.subr.bf16.mxu1 %v728_v13  ;;  %407 = vmatprep.mubr.bf16.mxu0 %v749_v33  ;;  %v757_v39 = vld [vmem:[%s941_s0 + $0x34] ss:$20 sps:$4 sm:$0xff]   ;;  %v760_v42 = vld [vmem:[%s941_s0 + $0x30] ss:$20 sps:$4 sm:$0xff]   ;;  %v762_v44 = vld [vmem:[%s940_s1 + $0x118] sm:$0xff]  }
   0xf   :  { %v759_v40 = vld [vmem:[%s941_s0 + $0x28] ss:$20 sps:$4 sm:$0xff]   ;;  %v761_v41 = vld [vmem:[%s940_s1 + $0x110] sm:$0xff]   ;;  %v764_v45 = vld [vmem:[%s941_s0 + $0x38] ss:$20 sps:$4 sm:$0xff]  }
  0x10   :  { %648 = vmatpush3.bf16.msra.mxu0 %v729_v14  ;;  %v763_v43 = vld [vmem:[%s941_s0 + $0x10] ss:$20 sps:$4 sm:$0xff]   ;;  %v620_v11 = vld [vmem:[%s942_s2] ss:$0 sm:$0xff] }
  0x11   :  { %676 = vmatpush3.bf16.msra.mxu1 %v730_v15  ;;  %649 = vmatprep.subr.bf16.mxu0 %v731_v16  ;;  %v621_v14 = vld [vmem:[%s943_s3] ss:$0 sm:$0xff] }
  0x12   :  { %677 = vmatprep.subr.bf16.mxu1 %v732_v17 }
  0x14   :  { %650 = vmatpush3.bf16.msra.mxu0 %v733_v18 }
  0x15   :  { %678 = vmatpush3.bf16.msra.mxu1 %v734_v19  ;;  %651 = vmatprep.subr.bf16.mxu0 %v735_v20 }
  0x16   :  { %679 = vmatprep.subr.bf16.mxu1 %v736_v21 }
  0x18   :  { %652 = vmatpush3.bf16.msra.mxu0 %v737_v22 }
  0x19   :  { %680 = vmatpush3.bf16.msra.mxu1 %v738_v23  ;;  %653 = vmatprep.subr.bf16.mxu0 %v739_v24 }
  0x1a   :  { %681 = vmatprep.subr.bf16.mxu1 %v740_v25 }
  0x1c   :  { %654 = vmatpush3.bf16.msra.mxu0 %v741_v26 }
  0x1d   :  { %682 = vmatpush3.bf16.msra.mxu1 %v742_v27  ;;  %655 = vmatprep.subr.bf16.mxu0 %v743_v28 }
  0x1e   :  { %683 = vmatprep.subr.bf16.mxu1 %v744_v29 }
  0x20   :  { %656 = vmatpush3.bf16.msra.mxu0 %v745_v30 }
  0x21   :  { %684 = vmatpush3.bf16.msra.mxu1 %v746_v31  ;;  %703 = vmatprep.subr.bf16.mxu0 %v753_v36 }
  0x23   :  { %408 = vmatmul.mubr.bf16.vlgmr.msra.gmra.mrb[0].mxu0 %v747_v32 }
  0x24   :  { %457 = vmatmul.mubr.bf16.vlgmr.msra.gmra.mrb[0].mxu1 %v750_v34  ;;  %704 = vmatpush3.bf16.msra.mxu0 %v753_v36 }
  0x25   :  { %705 = vmatprep.subr.bf16.mxu0 %v754_v37  ;;  %415 = vmatprep.mubr.bf16.mxu0 %v755_v38 }
  0x26   :  { %464 = vmatprep.mubr.bf16.mxu1 %v757_v39 }
  0x28   :  { %706 = vmatpush3.bf16.msra.mxu0 %v754_v37 }
  0x29   :  { %707 = vmatprep.subr.bf16.mxu0 %v761_v41 }
  0x2b   :  { %416 = vmatmul.mubr.bf16.gmra.mrb[4].mxu0 %v759_v40 }
  0x2c   :  { %465 = vmatmul.mubr.bf16.gmra.mrb[4].mxu1 %v760_v42  ;;  %711 = vmatprep.mubr.msk.bf16.mxu0 %vm368_vm0, %v763_v43 }
  0x2d   :  { %708 = vmatpush3.bf16.msra.mxu0 %v761_v41 }
  0x2e   :  { %709 = vmatprep.subr.bf16.mxu0 %v762_v44 }
  0x31   :  { %710 = vmatpush3.bf16.msra.mxu0 %v762_v44 }
  0x34   :  { %712 = vmatmul.mubr.msk.bf16.vlgmr.msra.gmra.mrb[8].mxu0 %vm368_vm0, %v764_v45 }
  0xf6   :  { %v657_v46 = vpop.f32.mrb[0].mxu0 }
  0xf7   :  { %v685_v47 = vpop.f32.mrb[0].mxu1  ;;  %v658_v48 = vpop.f32.mrb[1].mxu0 }
  0xf8   :  { %v659_v49 = vadd.f32 %v658_v48, %v657_v46  ;;  %v686_v50 = vpop.f32.mrb[1].mxu1  ;;  %v660_v51 = vpop.f32.mrb[2].mxu0 }
  0xf9   :  { %v687_v52 = vadd.f32 %v686_v50, %v685_v47  ;;  %v688_v53 = vpop.f32.mrb[2].mxu1  ;;  %v661_v54 = vpop.f32.mrb[3].mxu0 }
  0xfa   :  { %v662_v55 = vadd.f32 %v661_v54, %v660_v51  ;;  %v689_v56 = vpop.f32.mrb[3].mxu1 }
  0xfb   :  { %v690_v57 = vadd.f32 %v689_v56, %v688_v53  ;;  %v459_v58 = vadd.f32 %v687_v52, %v659_v49 }
  0xfd   :  { %v462_v59 = vadd.f32 %v690_v57, %v662_v55 }
  0xfe   :  { %v663_v60 = vpop.f32.mrb[4].mxu0 }
  0xff   :  { %v691_v61 = vpop.f32.mrb[4].mxu1  ;;  %v664_v62 = vpop.f32.mrb[5].mxu0 }
 0x100   :  { %v665_v63 = vadd.f32 %v664_v62, %v663_v60  ;;  %v692_v0 = vpop.f32.mrb[5].mxu1  ;;  %v666_v1 = vpop.f32.mrb[6].mxu0 }
 0x101   :  { %v693_v2 = vadd.f32 %v692_v0, %v691_v61  ;;  %v694_v3 = vpop.f32.mrb[6].mxu1  ;;  %v667_v4 = vpop.f32.mrb[7].mxu0 }
 0x102   :  { %v668_v5 = vadd.f32 %v667_v4, %v666_v1  ;;  %v695_v6 = vpop.f32.mrb[7].mxu1 }
 0x103   :  { %v696_v7 = vadd.f32 %v695_v6, %v694_v3  ;;  %v467_v8 = vadd.f32 %v693_v2, %v665_v63 }
 0x105   :  { %v470_v9 = vadd.f32 %v696_v7, %v668_v5 }
 0x107   :  { %v713_v10 = vpop.f32.mrb[8].mxu0 }
 0x108   :  { %v516_v12 = vadd.f32 %v713_v10, %v467_v8  ;;  %v507_v13 = vpop.f32.mrb[9].mxu0 }
 0x109   :  { %v508_v15 = vadd.f32 %v507_v13, %v459_v58  ;;  %v714_v16 = vpop.f32.mrb[10].mxu0 }
 0x10a   :  { %v531_v17 = vmul.f32 %v620_v11, %v516_v12  ;;  %v519_v18 = vadd.f32 %v714_v16, %v470_v9  ;;  %v510_v19 = vpop.f32.mrb[11].mxu0 }
 0x10b   :  { %v529_v20 = vmul.f32 %v620_v11, %v508_v15  ;;  %v511_v21 = vadd.f32 %v510_v19, %v462_v59 }
 0x10c   :  { %v542_v22 = vadd.f32 %v621_v14, %v531_v17  ;;  %v532_v23 = vmul.f32 %v620_v11, %v519_v18 }
 0x10d   :  { %v540_v24 = vadd.f32 %v621_v14, %v529_v20  ;;  %v530_v25 = vmul.f32 %v620_v11, %v511_v21 }
 0x10e   :  { %v543_v26 = vadd.f32 %v621_v14, %v532_v23  ;;  %v546_v28 = vmax.f32 %v542_v22, 0.0 }
 0x10f   :  { %v541_v27 = vadd.f32 %v621_v14, %v530_v25  ;;  %v544_v30 = vmax.f32 %v540_v24, 0.0 }
 0x110   :  { %v547_v29 = vmax.f32 %v543_v26, 0.0 }
 0x111   :  { %v545_v31 = vmax.f32 %v541_v27, 0.0 }
 0x112   :  { %v638_v32 = vpack.c.bf16 %v547_v29, %v546_v28 }
 0x113   :  { %v633_v33 = vpack.c.bf16 %v545_v31, %v544_v30 }
 0x114   :  { %640 = vst [vmem:[%s944_s4 + $0x8] sm:$0xff] %v638_v32  }
 0x115   :  { %634 = vst [vmem:[%s944_s4] sm:$0xff] %v633_v33  }

// kernel: _lambda_.12
= control target key start
LH: loop header
LB: loop body
LE: loop exit
PB: predicated region body
PF: predicated region fallthrough
CT: control target
= control target key end

     0   :  { %v621_v36 = vmov 0.0   ;;  %vm622_vm0 = vmmov 0   ;;  %vm326_vm1 = vcmask 523264   ;;  %s774_s1 = inlined_call_operand.vmem [shape: bf16[576,128], index: 1, kind: input, shape index: {}]   ;;  %s775_s0 = inlined_call_operand.vmem [shape: bf16[8,576], index: 0, kind: input, shape index: {}]   ;;  %s776_s2 = inlined_call_operand.vmem [shape: f32[1,128], index: 2, kind: input, shape index: {}]   ;;  %s777_s3 = inlined_call_operand.vmem [shape: f32[1,128], index: 3, kind: input, shape index: {}]   ;;  %s778_s4 = inlined_call_operand.vmem [shape: bf16[8,128], index: 4, kind: output, shape index: {}]  }
   0x1   :  { %v580_v0 = vld [vmem:[%s774_s1 + $0x40] sm:$0xff]   ;;  %v584_v4 = vld [vmem:[%s774_s1 + $0x48] sm:$0xff]   ;;  %v588_v8 = vld [vmem:[%s774_s1 + $0x50] sm:$0xff]  }
   0x2   :  { %v581_v1 = vld [vmem:[%s774_s1 + $0xc0] sm:$0xff]   ;;  %517 = vmatprep.subr.bf16.mxu0 %v580_v0  ;;  %v585_v5 = vld [vmem:[%s774_s1 + $0xc8] sm:$0xff]   ;;  %v589_v9 = vld [vmem:[%s774_s1 + $0xd0] sm:$0xff]  }
   0x3   :  { %v582_v2 = vld [vmem:[%s774_s1] sm:$0xff]   ;;  %539 = vmatprep.subr.bf16.mxu1 %v581_v1  ;;  %v586_v6 = vld [vmem:[%s774_s1 + $0x8] sm:$0xff]   ;;  %v590_v10 = vld [vmem:[%s774_s1 + $0x10] sm:$0xff]  }
   0x4   :  { %v583_v3 = vld [vmem:[%s774_s1 + $0x80] sm:$0xff]   ;;  %518 = vmatpush3.bf16.msra.mxu0 %v582_v2  ;;  %v587_v7 = vld [vmem:[%s774_s1 + $0x88] sm:$0xff]   ;;  %v591_v11 = vld [vmem:[%s774_s1 + $0x90] sm:$0xff]  }
   0x5   :  { %540 = vmatpush3.bf16.msra.mxu1 %v583_v3  ;;  %519 = vmatprep.subr.bf16.mxu0 %v584_v4  ;;  %v592_v12 = vld [vmem:[%s774_s1 + $0x58] sm:$0xff]   ;;  %v596_v16 = vld [vmem:[%s774_s1 + $0x60] sm:$0xff]   ;;  %v600_v20 = vld [vmem:[%s774_s1 + $0x68] sm:$0xff]  }
   0x6   :  { %541 = vmatprep.subr.bf16.mxu1 %v585_v5  ;;  %v593_v13 = vld [vmem:[%s774_s1 + $0xd8] sm:$0xff]   ;;  %v597_v17 = vld [vmem:[%s774_s1 + $0xe0] sm:$0xff]   ;;  %v601_v21 = vld [vmem:[%s774_s1 + $0xe8] sm:$0xff]  }
   0x7   :  { %v594_v14 = vld [vmem:[%s774_s1 + $0x18] sm:$0xff]   ;;  %v598_v18 = vld [vmem:[%s774_s1 + $0x20] sm:$0xff]   ;;  %v602_v22 = vld [vmem:[%s774_s1 + $0x28] sm:$0xff]  }
   0x8   :  { %520 = vmatpush3.bf16.msra.mxu0 %v586_v6  ;;  %v595_v15 = vld [vmem:[%s774_s1 + $0x98] sm:$0xff]   ;;  %v599_v19 = vld [vmem:[%s774_s1 + $0xa0] sm:$0xff]   ;;  %v603_v23 = vld [vmem:[%s774_s1 + $0xa8] sm:$0xff]  }
   0x9   :  { %542 = vmatpush3.bf16.msra.mxu1 %v587_v7  ;;  %521 = vmatprep.subr.bf16.mxu0 %v588_v8  ;;  %v604_v24 = vld [vmem:[%s774_s1 + $0x70] sm:$0xff]   ;;  %v608_v28 = vld [vmem:[%s774_s1 + $0x78] sm:$0xff]   ;;  %v18_v32 = vld [vmem:[%s775_s0] sm:$0xff] }
   0xa   :  { %543 = vmatprep.subr.bf16.mxu1 %v589_v9  ;;  %v605_v25 = vld [vmem:[%s774_s1 + $0xf0] sm:$0xff]   ;;  %v609_v29 = vld [vmem:[%s774_s1 + $0xf8] sm:$0xff]   ;;  %v473_v33 = vcombine.low %v18_v32, %v18_v32  ;;  %v474_v34 = vcombine.high %v18_v32, %v18_v32  ;;  %v19_v35 = vld [vmem:[%s775_s0 + $0x8] sm:$0xff] }
   0xb   :  { %v606_v26 = vld [vmem:[%s774_s1 + $0x30] sm:$0xff]   ;;  %v610_v30 = vld [vmem:[%s774_s1 + $0x38] sm:$0xff]   ;;  %v475_v37 = vcombine.low %v19_v35, %v19_v35  ;;  %v476_v38 = vcombine.high %v19_v35, %v19_v35  ;;  %v617_v39 = vld [vmem:[%s774_s1 + $0x100] sm:$0xff]  }
   0xc   :  { %522 = vmatpush3.bf16.msra.mxu0 %v590_v10  ;;  %v607_v27 = vld [vmem:[%s774_s1 + $0xb0] sm:$0xff]   ;;  %v611_v31 = vld [vmem:[%s774_s1 + $0xb8] sm:$0xff]   ;;  %362 = vmatprep.mubr.bf16.mxu0 %v474_v34  ;;  %v618_v40 = vld [vmem:[%s774_s1 + $0x108] sm:$0xff]  }
   0xd   :  { %544 = vmatpush3.bf16.msra.mxu1 %v591_v11  ;;  %523 = vmatprep.subr.bf16.mxu0 %v592_v12  ;;  %v619_v41 = vld [vmem:[%s774_s1 + $0x110] sm:$0xff]   ;;  %v620_v42 = vld [vmem:[%s774_s1 + $0x118] sm:$0xff]   ;;  %v515_v56 = vld [vmem:[%s776_s2] ss:$0 sm:$0xff] }
   0xe   :  { %545 = vmatprep.subr.bf16.mxu1 %v593_v13  ;;  %402 = vmatprep.mubr.bf16.mxu1 %v476_v38  ;;  %v614_v43 = vld [vmem:[%s775_s0 + $0x10] ss:$0 sps:$4 sm:$0xff]   ;;  %v516_v59 = vld [vmem:[%s777_s3] ss:$0 sm:$0xff] }
  0x10   :  { %524 = vmatpush3.bf16.msra.mxu0 %v594_v14 }
  0x11   :  { %546 = vmatpush3.bf16.msra.mxu1 %v595_v15  ;;  %525 = vmatprep.subr.bf16.mxu0 %v596_v16 }
  0x12   :  { %547 = vmatprep.subr.bf16.mxu1 %v597_v17 }
  0x14   :  { %526 = vmatpush3.bf16.msra.mxu0 %v598_v18 }
  0x15   :  { %548 = vmatpush3.bf16.msra.mxu1 %v599_v19  ;;  %527 = vmatprep.subr.bf16.mxu0 %v600_v20 }
  0x16   :  { %549 = vmatprep.subr.bf16.mxu1 %v601_v21 }
  0x18   :  { %528 = vmatpush3.bf16.msra.mxu0 %v602_v22 }
  0x19   :  { %550 = vmatpush3.bf16.msra.mxu1 %v603_v23  ;;  %529 = vmatprep.subr.bf16.mxu0 %v604_v24 }
  0x1a   :  { %551 = vmatprep.subr.bf16.mxu1 %v605_v25 }
  0x1c   :  { %530 = vmatpush3.bf16.msra.mxu0 %v606_v26 }
  0x1d   :  { %552 = vmatpush3.bf16.msra.mxu1 %v607_v27  ;;  %531 = vmatprep.subr.bf16.mxu0 %v608_v28 }
  0x1e   :  { %553 = vmatprep.subr.bf16.mxu1 %v609_v29 }
  0x20   :  { %532 = vmatpush3.bf16.msra.mxu0 %v610_v30 }
  0x21   :  { %554 = vmatpush3.bf16.msra.mxu1 %v611_v31  ;;  %566 = vmatprep.subr.bf16.mxu0 %v621_v36 }
  0x23   :  { %363 = vmatmul.mubr.bf16.vlgmr.msra.gmra.mrb[0].mxu0 %v473_v33 }
  0x24   :  { %403 = vmatmul.mubr.bf16.vlgmr.msra.gmra.mrb[0].mxu1 %v475_v37  ;;  %567 = vmatpush3.bf16.msra.mxu0 %v617_v39 }
  0x25   :  { %568 = vmatprep.subr.bf16.mxu0 %v621_v36  ;;  %574 = vmatprep.mubr.msk.bf16.mxu0 %vm622_vm0, %v621_v36 }
  0x28   :  { %569 = vmatpush3.bf16.msra.mxu0 %v618_v40 }
  0x29   :  { %570 = vmatprep.subr.bf16.mxu0 %v621_v36 }
  0x2c   :  { %571 = vmatpush3.bf16.msra.mxu0 %v619_v41 }
  0x2d   :  { %572 = vmatprep.subr.bf16.mxu0 %v621_v36 }
  0x30   :  { %573 = vmatpush3.bf16.msra.mxu0 %v620_v42 }
  0x33   :  { %575 = vmatmul.mubr.msk.bf16.vlgmr.msra.gmra.mrb[4].mxu0 %vm326_vm1, %v614_v43 }
  0xf6   :  { %v533_v44 = vpop.f32.mrb[0].mxu0 }
  0xf7   :  { %v555_v45 = vpop.f32.mrb[0].mxu1  ;;  %v534_v46 = vpop.f32.mrb[1].mxu0 }
  0xf8   :  { %v535_v47 = vadd.f32 %v534_v46, %v533_v44  ;;  %v556_v48 = vpop.f32.mrb[1].mxu1  ;;  %v536_v49 = vpop.f32.mrb[2].mxu0 }
  0xf9   :  { %v557_v50 = vadd.f32 %v556_v48, %v555_v45  ;;  %v537_v51 = vpop.f32.mrb[3].mxu0  ;;  %v558_v52 = vpop.f32.mrb[2].mxu1 }
  0xfa   :  { %v559_v53 = vpop.f32.mrb[3].mxu1 }
  0xfb   :  { %v405_v54 = vadd.f32 %v557_v50, %v535_v47 }
 0x106   :  { %v444_v55 = vpop.f32.mrb[4].mxu0 }
 0x107   :  { %v445_v57 = vadd.f32 %v444_v55, %v405_v54  ;;  %v576_v58 = vpop.f32.mrb[5].mxu0 }
 0x108   :  { %v447_v60 = vpop.f32.mrb[6].mxu0 }
 0x109   :  { %v457_v61 = vmul.f32 %v515_v56, %v445_v57  ;;  %v577_v62 = vpop.f32.mrb[7].mxu0 }
 0x10b   :  { %v465_v63 = vadd.f32 %v516_v59, %v457_v61 }
 0x10d   :  { %v466_v0 = vmax.f32 %v465_v63, 0.0 }
 0x10f   :  { %v467_v1 = vpack.c.bf16 %v466_v0, %v466_v0 }
 0x111   :  { %468 = vst [vmem:[%s778_s4] sm:$0xf] %v467_v1 }

// kernel: _lambda_.14
= control target key start
LH: loop header
LB: loop body
LE: loop exit
PB: predicated region body
PF: predicated region fallthrough
CT: control target
= control target key end

     0   :  { %v260_v35 = vlaneseq  ;;  %s520_s1 = inlined_call_operand.vmem [shape: bf16[256,256], index: 1, kind: input, shape index: {}]   ;;  %s521_s0 = inlined_call_operand.vmem [shape: bf16[8,256], index: 0, kind: input, shape index: {}]   ;;  %s522_s2 = inlined_call_operand.vmem [shape: f32[1,256], index: 2, kind: input, shape index: {}]   ;;  %s523_s3 = inlined_call_operand.vmem [shape: f32[1,256], index: 3, kind: input, shape index: {}]   ;;  %s524_s4 = inlined_call_operand.vmem [shape: bf16[8,256], index: 4, kind: output, shape index: {}]  }
   0x1   :  { %v337_v0 = vld [vmem:[%s520_s1 + $0x4] ss:$8 sps:$4 sm:$0xff]   ;;  %v339_v1 = vld [vmem:[%s520_s1] ss:$8 sps:$4 sm:$0xff]   ;;  %v340_v2 = vld [vmem:[%s520_s1 + $0x14] ss:$8 sps:$4 sm:$0xff]  }
   0x2   :  { %217 = vmatprep.subr.bf16.mxu0 %v337_v0  ;;  %v342_v3 = vld [vmem:[%s520_s1 + $0x10] ss:$8 sps:$4 sm:$0xff]   ;;  %v343_v4 = vld [vmem:[%s520_s1 + $0x24] ss:$8 sps:$4 sm:$0xff]   ;;  %v345_v5 = vld [vmem:[%s520_s1 + $0x20] ss:$8 sps:$4 sm:$0xff]  }
   0x3   :  { %218 = vmatpush1.bf16.msra.mxu0 %v339_v1  ;;  %v346_v6 = vld [vmem:[%s520_s1 + $0x34] ss:$8 sps:$4 sm:$0xff]   ;;  %v348_v7 = vld [vmem:[%s520_s1 + $0x30] ss:$8 sps:$4 sm:$0xff]   ;;  %v349_v8 = vld [vmem:[%s520_s1 + $0x44] ss:$8 sps:$4 sm:$0xff]  }
   0x4   :  { %219 = vmatprep.subr.bf16.mxu0 %v340_v2  ;;  %v351_v9 = vld [vmem:[%s520_s1 + $0x40] ss:$8 sps:$4 sm:$0xff]   ;;  %v352_v10 = vld [vmem:[%s520_s1 + $0x54] ss:$8 sps:$4 sm:$0xff]   ;;  %v354_v11 = vld [vmem:[%s520_s1 + $0x50] ss:$8 sps:$4 sm:$0xff]  }
   0x5   :  { %v355_v12 = vld [vmem:[%s520_s1 + $0x64] ss:$8 sps:$4 sm:$0xff]   ;;  %v357_v15 = vld [vmem:[%s520_s1 + $0x60] ss:$8 sps:$4 sm:$0xff]   ;;  %v358_v16 = vld [vmem:[%s520_s1 + $0x74] ss:$8 sps:$4 sm:$0xff]  }
   0x6   :  { %v17_v13 = vld [vmem:[%s521_s0] sm:$0xff]  ;;  %v360_v17 = vld [vmem:[%s520_s1 + $0x70] ss:$8 sps:$4 sm:$0xff]   ;;  %v364_v20 = vld [vmem:[%s520_s1 + $0x94] ss:$8 sps:$4 sm:$0xff]   ;;  %v261_v36 = vshrl.u32 %v260_v35, 7 }
   0x7   :  { %220 = vmatpush1.bf16.msra.mxu0 %v342_v3  ;;  %v302_v14 = vcombine.high %v17_v13, %v17_v13  ;;  %v361_v18 = vld [vmem:[%s520_s1 + $0x84] ss:$8 sps:$4 sm:$0xff]   ;;  %v363_v19 = vld [vmem:[%s520_s1 + $0x80] ss:$8 sps:$4 sm:$0xff]   ;;  %v366_v21 = vld [vmem:[%s520_s1 + $0x90] ss:$8 sps:$4 sm:$0xff]   ;;  %v301_v34 = vcombine.low %v17_v13, %v17_v13 }
   0x8   :  { %221 = vmatprep.subr.bf16.mxu0 %v343_v4  ;;  %v367_v22 = vld [vmem:[%s520_s1 + $0xa4] ss:$8 sps:$4 sm:$0xff]   ;;  %v369_v23 = vld [vmem:[%s520_s1 + $0xa0] ss:$8 sps:$4 sm:$0xff]   ;;  %v370_v24 = vld [vmem:[%s520_s1 + $0xb4] ss:$8 sps:$4 sm:$0xff]  }
   0x9   :  { %249 = vmatprep.mubr.bf16.mxu0 %v302_v14  ;;  %v372_v25 = vld [vmem:[%s520_s1 + $0xb0] ss:$8 sps:$4 sm:$0xff]   ;;  %v373_v26 = vld [vmem:[%s520_s1 + $0xc4] ss:$8 sps:$4 sm:$0xff]   ;;  %v375_v27 = vld [vmem:[%s520_s1 + $0xc0] ss:$8 sps:$4 sm:$0xff]  }
   0xa   :  { %v376_v28 = vld [vmem:[%s520_s1 + $0xd4] ss:$8 sps:$4 sm:$0xff]   ;;  %v378_v29 = vld [vmem:[%s520_s1 + $0xd0] ss:$8 sps:$4 sm:$0xff]   ;;  %v379_v30 = vld [vmem:[%s520_s1 + $0xe4] ss:$8 sps:$4 sm:$0xff]  }
   0xb   :  { %222 = vmatpush1.bf16.msra.mxu0 %v345_v5  ;;  %v381_v31 = vld [vmem:[%s520_s1 + $0xe0] ss:$8 sps:$4 sm:$0xff]   ;;  %v382_v32 = vld [vmem:[%s520_s1 + $0xf4] ss:$8 sps:$4 sm:$0xff]   ;;  %v384_v33 = vld [vmem:[%s520_s1 + $0xf0] ss:$8 sps:$4 sm:$0xff]  }
   0xc   :  { %223 = vmatprep.subr.bf16.mxu0 %v346_v6  ;;  %v262_v37 = vsub.s32 0, %v261_v36  ;;  %v258_v38 = vld [vmem:[%s522_s2] sm:$0x3]  ;;  %v266_v39 = vsub.s32 1, %v261_v36 }
   0xd   :  { %v272_v40 = vld [vmem:[%s523_s3] sm:$0x3] }
   0xe   :  { %v263_v41 = vrot.slane %v258_v38, %v262_v37  ;;  %v267_v42 = vrot.slane %v258_v38, %v266_v39  ;;  %v277_v43 = vrot.slane %v272_v40, %v262_v37  ;;  %v281_v45 = vrot.slane %v272_v40, %v266_v39 }
   0xf   :  { %224 = vmatpush1.bf16.msra.mxu0 %v348_v7 }
  0x10   :  { %225 = vmatprep.subr.bf16.mxu0 %v349_v8 }
  0x13   :  { %226 = vmatpush1.bf16.msra.mxu0 %v351_v9 }
  0x14   :  { %227 = vmatprep.subr.bf16.mxu0 %v352_v10 }
  0x17   :  { %228 = vmatpush1.bf16.msra.mxu0 %v354_v11 }
  0x18   :  { %229 = vmatprep.subr.bf16.mxu0 %v355_v12 }
  0x1b   :  { %230 = vmatpush1.bf16.msra.mxu0 %v357_v15 }
  0x1c   :  { %231 = vmatprep.subr.bf16.mxu0 %v358_v16 }
  0x1f   :  { %232 = vmatpush1.bf16.msra.mxu0 %v360_v17 }
  0x20   :  { %233 = vmatprep.subr.bf16.mxu0 %v361_v18 }
  0x23   :  { %234 = vmatpush1.bf16.msra.mxu0 %v363_v19 }
  0x24   :  { %235 = vmatprep.subr.bf16.mxu0 %v364_v20 }
  0x27   :  { %236 = vmatpush1.bf16.msra.mxu0 %v366_v21 }
  0x28   :  { %237 = vmatprep.subr.bf16.mxu0 %v367_v22 }
  0x2b   :  { %238 = vmatpush1.bf16.msra.mxu0 %v369_v23 }
  0x2c   :  { %239 = vmatprep.subr.bf16.mxu0 %v370_v24 }
  0x2f   :  { %240 = vmatpush1.bf16.msra.mxu0 %v372_v25 }
  0x30   :  { %241 = vmatprep.subr.bf16.mxu0 %v373_v26 }
  0x33   :  { %242 = vmatpush1.bf16.msra.mxu0 %v375_v27 }
  0x34   :  { %243 = vmatprep.subr.bf16.mxu0 %v376_v28 }
  0x37   :  { %244 = vmatpush1.bf16.msra.mxu0 %v378_v29 }
  0x38   :  { %245 = vmatprep.subr.bf16.mxu0 %v379_v30 }
  0x3b   :  { %246 = vmatpush1.bf16.msra.mxu0 %v381_v31 }
  0x3c   :  { %247 = vmatprep.subr.bf16.mxu0 %v382_v32 }
  0x3f   :  { %248 = vmatpush1.bf16.msra.mxu0 %v384_v33 }
  0x42   :  { %250 = vmatmul.mubr.bf16.vlgmr.msra.gmra.mrb[0].mxu0 %v301_v34 }
 0x115   :  { %v251_v44 = vpop.f32.mrb[0].mxu0 }
 0x116   :  { %v270_v46 = vmul.f32 %v263_v41, %v251_v44  ;;  %v253_v47 = vpop.f32.mrb[1].mxu0 }
 0x117   :  { %v271_v48 = vmul.f32 %v267_v42, %v253_v47  ;;  %v255_v49 = vpop.f32.mrb[2].mxu0 }
 0x118   :  { %v284_v50 = vadd.f32 %v277_v43, %v270_v46  ;;  %v256_v51 = vpop.f32.mrb[3].mxu0 }
 0x119   :  { %v285_v52 = vadd.f32 %v281_v45, %v271_v48 }
 0x11a   :  { %v286_v53 = vmax.f32 %v284_v50, 0.0 }
 0x11b   :  { %v287_v54 = vmax.f32 %v285_v52, 0.0 }
 0x11d   :  { %v336_v55 = vpack.c.bf16 %v287_v54, %v286_v53 }
 0x11f   :  { %296 = vst [vmem:[%s524_s4] sm:$0xff] %v336_v55 }

// kernel: _lambda_.13
= control target key start
LH: loop header
LB: loop body
LE: loop exit
PB: predicated region body
PF: predicated region fallthrough
CT: control target
= control target key end

     0   :  { %s2056_s1 = inlined_call_operand.vmem [shape: bf16[1152,256], index: 1, kind: input, shape index: {}]   ;;  %s2057_s0 = inlined_call_operand.vmem [shape: bf16[8,1152], index: 0, kind: input, shape index: {}]   ;;  %s2058_s2 = inlined_call_operand.vmem [shape: f32[1,256], index: 2, kind: input, shape index: {}]   ;;  %s2059_s3 = inlined_call_operand.vmem [shape: f32[1,256], index: 3, kind: input, shape index: {}]   ;;  %s2060_s4 = inlined_call_operand.vmem [shape: bf16[8,256], index: 4, kind: output, shape index: {}]  }
   0x1   :  { %v1337_v0 = vld [vmem:[%s2056_s1 + $0x4] ss:$8 sps:$4 sm:$0xff]   ;;  %v1341_v2 = vld [vmem:[%s2056_s1] ss:$8 sps:$4 sm:$0xff]   ;;  %v1343_v4 = vld [vmem:[%s2056_s1 + $0x14] ss:$8 sps:$4 sm:$0xff]  }
   0x2   :  { %v1339_v1 = vld [vmem:[%s2056_s1 + $0x204] ss:$8 sps:$4 sm:$0xff]   ;;  %919 = vmatprep.subr.bf16.mxu1 %v1337_v0  ;;  %v1342_v3 = vld [vmem:[%s2056_s1 + $0x200] ss:$8 sps:$4 sm:$0xff]   ;;  %v1345_v5 = vld [vmem:[%s2056_s1 + $0x214] ss:$8 sps:$4 sm:$0xff]  }
   0x3   :  { %1001 = vmatprep.subr.bf16.mxu0 %v1339_v1  ;;  %920 = vmatpush1.bf16.msra.mxu1 %v1341_v2  ;;  %v1347_v6 = vld [vmem:[%s2056_s1 + $0x10] ss:$8 sps:$4 sm:$0xff]   ;;  %v1349_v8 = vld [vmem:[%s2056_s1 + $0x24] ss:$8 sps:$4 sm:$0xff]   ;;  %v1353_v10 = vld [vmem:[%s2056_s1 + $0x20] ss:$8 sps:$4 sm:$0xff]  }
   0x4   :  { %1002 = vmatpush1.bf16.msra.mxu0 %v1342_v3  ;;  %921 = vmatprep.subr.bf16.mxu1 %v1343_v4  ;;  %v1348_v7 = vld [vmem:[%s2056_s1 + $0x210] ss:$8 sps:$4 sm:$0xff]   ;;  %v1351_v9 = vld [vmem:[%s2056_s1 + $0x224] ss:$8 sps:$4 sm:$0xff]   ;;  %v1354_v11 = vld [vmem:[%s2056_s1 + $0x220] ss:$8 sps:$4 sm:$0xff]  }
   0x5   :  { %1003 = vmatprep.subr.bf16.mxu0 %v1345_v5  ;;  %v1355_v12 = vld [vmem:[%s2056_s1 + $0x34] ss:$8 sps:$4 sm:$0xff]   ;;  %v1359_v14 = vld [vmem:[%s2056_s1 + $0x30] ss:$8 sps:$4 sm:$0xff]   ;;  %v1361_v16 = vld [vmem:[%s2056_s1 + $0x44] ss:$8 sps:$4 sm:$0xff]  }
   0x6   :  { %v1357_v13 = vld [vmem:[%s2056_s1 + $0x234] ss:$8 sps:$4 sm:$0xff]   ;;  %v1360_v15 = vld [vmem:[%s2056_s1 + $0x230] ss:$8 sps:$4 sm:$0xff]   ;;  %v1363_v17 = vld [vmem:[%s2056_s1 + $0x244] ss:$8 sps:$4 sm:$0xff]  }
   0x7   :  { %922 = vmatpush1.bf16.msra.mxu1 %v1347_v6  ;;  %v1365_v18 = vld [vmem:[%s2056_s1 + $0x40] ss:$8 sps:$4 sm:$0xff]   ;;  %v1367_v20 = vld [vmem:[%s2056_s1 + $0x54] ss:$8 sps:$4 sm:$0xff]   ;;  %v1371_v22 = vld [vmem:[%s2056_s1 + $0x50] ss:$8 sps:$4 sm:$0xff]  }
   0x8   :  { %1004 = vmatpush1.bf16.msra.mxu0 %v1348_v7  ;;  %923 = vmatprep.subr.bf16.mxu1 %v1349_v8  ;;  %v1366_v19 = vld [vmem:[%s2056_s1 + $0x240] ss:$8 sps:$4 sm:$0xff]   ;;  %v1369_v21 = vld [vmem:[%s2056_s1 + $0x254] ss:$8 sps:$4 sm:$0xff]   ;;  %v1372_v23 = vld [vmem:[%s2056_s1 + $0x250] ss:$8 sps:$4 sm:$0xff]  }
   0x9   :  { %1005 = vmatprep.subr.bf16.mxu0 %v1351_v9  ;;  %v1373_v24 = vld [vmem:[%s2056_s1 + $0x64] ss:$8 sps:$4 sm:$0xff]   ;;  %v1377_v26 = vld [vmem:[%s2056_s1 + $0x60] ss:$8 sps:$4 sm:$0xff]   ;;  %v1379_v28 = vld [vmem:[%s2056_s1 + $0x74] ss:$8 sps:$4 sm:$0xff]  }
   0xa   :  { %v1375_v25 = vld [vmem:[%s2056_s1 + $0x264] ss:$8 sps:$4 sm:$0xff]   ;;  %v1378_v27 = vld [vmem:[%s2056_s1 + $0x260] ss:$8 sps:$4 sm:$0xff]   ;;  %v1381_v29 = vld [vmem:[%s2056_s1 + $0x274] ss:$8 sps:$4 sm:$0xff]  }
   0xb   :  { %924 = vmatpush1.bf16.msra.mxu1 %v1353_v10  ;;  %v1383_v30 = vld [vmem:[%s2056_s1 + $0x70] ss:$8 sps:$4 sm:$0xff]   ;;  %v1385_v32 = vld [vmem:[%s2056_s1 + $0x84] ss:$8 sps:$4 sm:$0xff]   ;;  %v1389_v34 = vld [vmem:[%s2056_s1 + $0x80] ss:$8 sps:$4 sm:$0xff]  }
   0xc   :  { %1006 = vmatpush1.bf16.msra.mxu0 %v1354_v11  ;;  %925 = vmatprep.subr.bf16.mxu1 %v1355_v12  ;;  %v1384_v31 = vld [vmem:[%s2056_s1 + $0x270] ss:$8 sps:$4 sm:$0xff]   ;;  %v1387_v33 = vld [vmem:[%s2056_s1 + $0x284] ss:$8 sps:$4 sm:$0xff]   ;;  %v1390_v35 = vld [vmem:[%s2056_s1 + $0x280] ss:$8 sps:$4 sm:$0xff]  }
   0xd   :  { %1007 = vmatprep.subr.bf16.mxu0 %v1357_v13  ;;  %v1391_v36 = vld [vmem:[%s2056_s1 + $0x94] ss:$8 sps:$4 sm:$0xff]   ;;  %v1395_v38 = vld [vmem:[%s2056_s1 + $0x90] ss:$8 sps:$4 sm:$0xff]   ;;  %v1397_v40 = vld [vmem:[%s2056_s1 + $0xa4] ss:$8 sps:$4 sm:$0xff]  }
   0xe   :  { %v1393_v37 = vld [vmem:[%s2056_s1 + $0x294] ss:$8 sps:$4 sm:$0xff]   ;;  %v1396_v39 = vld [vmem:[%s2056_s1 + $0x290] ss:$8 sps:$4 sm:$0xff]   ;;  %v1399_v41 = vld [vmem:[%s2056_s1 + $0x2a4] ss:$8 sps:$4 sm:$0xff]  }
   0xf   :  { %926 = vmatpush1.bf16.msra.mxu1 %v1359_v14  ;;  %v1401_v42 = vld [vmem:[%s2056_s1 + $0xa0] ss:$8 sps:$4 sm:$0xff]   ;;  %v1403_v44 = vld [vmem:[%s2056_s1 + $0xb4] ss:$8 sps:$4 sm:$0xff]   ;;  %v1407_v47 = vld [vmem:[%s2056_s1 + $0xb0] ss:$8 sps:$4 sm:$0xff]  }
  0x10   :  { %1008 = vmatpush1.bf16.msra.mxu0 %v1360_v15  ;;  %927 = vmatprep.subr.bf16.mxu1 %v1361_v16  ;;  %v1402_v43 = vld [vmem:[%s2056_s1 + $0x2a0] ss:$8 sps:$4 sm:$0xff]   ;;  %v1405_v45 = vld [vmem:[%s2056_s1 + $0x2b4] ss:$8 sps:$4 sm:$0xff]   ;;  %v1408_v49 = vld [vmem:[%s2056_s1 + $0x2b0] ss:$8 sps:$4 sm:$0xff]  }
  0x11   :  { %1009 = vmatprep.subr.bf16.mxu0 %v1363_v17  ;;  %v18_v46 = vld [vmem:[%s2057_s0] sm:$0xff]  ;;  %v20_v50 = vld [vmem:[%s2057_s0 + $0x10] sm:$0xff] }
  0x12   :  { %v1168_v48 = vcombine.high %v18_v46, %v18_v46  ;;  %v1409_v51 = vld [vmem:[%s2056_s1 + $0xc4] ss:$8 sps:$4 sm:$0xff]   ;;  %v1172_v53 = vcombine.high %v20_v50, %v20_v50  ;;  %v1413_v54 = vld [vmem:[%s2056_s1 + $0xc0] ss:$8 sps:$4 sm:$0xff]   ;;  %v1415_v56 = vld [vmem:[%s2056_s1 + $0xd4] ss:$8 sps:$4 sm:$0xff]   ;;  %v1167_v6 = vcombine.low %v18_v46, %v18_v46  ;;  %v1171_v7 = vcombine.low %v20_v50, %v20_v50 }
  0x13   :  { %928 = vmatpush1.bf16.msra.mxu1 %v1365_v18  ;;  %v1411_v52 = vld [vmem:[%s2056_s1 + $0x2c4] ss:$8 sps:$4 sm:$0xff]   ;;  %v1414_v55 = vld [vmem:[%s2056_s1 + $0x2c0] ss:$8 sps:$4 sm:$0xff]   ;;  %v1417_v57 = vld [vmem:[%s2056_s1 + $0x2d4] ss:$8 sps:$4 sm:$0xff]  }
  0x14   :  { %1010 = vmatpush1.bf16.msra.mxu0 %v1366_v19  ;;  %929 = vmatprep.subr.bf16.mxu1 %v1367_v20  ;;  %v1419_v58 = vld [vmem:[%s2056_s1 + $0xd0] ss:$8 sps:$4 sm:$0xff]   ;;  %v1421_v60 = vld [vmem:[%s2056_s1 + $0xe4] ss:$8 sps:$4 sm:$0xff]   ;;  %v1425_v62 = vld [vmem:[%s2056_s1 + $0xe0] ss:$8 sps:$4 sm:$0xff]  }
  0x15   :  { %1011 = vmatprep.subr.bf16.mxu0 %v1369_v21  ;;  %951 = vmatprep.mubr.bf16.mxu1 %v1168_v48  ;;  %v1420_v59 = vld [vmem:[%s2056_s1 + $0x2d0] ss:$8 sps:$4 sm:$0xff]   ;;  %v1423_v61 = vld [vmem:[%s2056_s1 + $0x2e4] ss:$8 sps:$4 sm:$0xff]   ;;  %v1426_v63 = vld [vmem:[%s2056_s1 + $0x2e0] ss:$8 sps:$4 sm:$0xff]  }
  0x16   :  { %1033 = vmatprep.mubr.bf16.mxu0 %v1172_v53  ;;  %v1427_v0 = vld [vmem:[%s2056_s1 + $0xf4] ss:$8 sps:$4 sm:$0xff]   ;;  %v1431_v2 = vld [vmem:[%s2056_s1 + $0xf0] ss:$8 sps:$4 sm:$0xff]   ;;  %v1437_v4 = vld [vmem:[%s2056_s1 + $0x104] ss:$8 sps:$4 sm:$0xff]  }
  0x17   :  { %930 = vmatpush1.bf16.msra.mxu1 %v1371_v22  ;;  %v1429_v1 = vld [vmem:[%s2056_s1 + $0x2f4] ss:$8 sps:$4 sm:$0xff]   ;;  %v1432_v3 = vld [vmem:[%s2056_s1 + $0x2f0] ss:$8 sps:$4 sm:$0xff]   ;;  %v1442_v5 = vld [vmem:[%s2056_s1 + $0x304] ss:$8 sps:$4 sm:$0xff]  }
  0x18   :  { %1012 = vmatpush1.bf16.msra.mxu0 %v1372_v23  ;;  %931 = vmatprep.subr.bf16.mxu1 %v1373_v24  ;;  %v1435_v8 = vld [vmem:[%s2056_s1 + $0x100] ss:$8 sps:$4 sm:$0xff]   ;;  %v1445_v10 = vld [vmem:[%s2056_s1 + $0x114] ss:$8 sps:$4 sm:$0xff]   ;;  %v1443_v12 = vld [vmem:[%s2056_s1 + $0x110] ss:$8 sps:$4 sm:$0xff]  }
  0x19   :  { %1013 = vmatprep.subr.bf16.mxu0 %v1375_v25  ;;  %v1440_v9 = vld [vmem:[%s2056_s1 + $0x300] ss:$8 sps:$4 sm:$0xff]   ;;  %v1448_v11 = vld [vmem:[%s2056_s1 + $0x314] ss:$8 sps:$4 sm:$0xff]   ;;  %v1446_v13 = vld [vmem:[%s2056_s1 + $0x310] ss:$8 sps:$4 sm:$0xff]  }
  0x1a   :  { %v1451_v14 = vld [vmem:[%s2056_s1 + $0x124] ss:$8 sps:$4 sm:$0xff]   ;;  %v1449_v16 = vld [vmem:[%s2056_s1 + $0x120] ss:$8 sps:$4 sm:$0xff]   ;;  %v1457_v18 = vld [vmem:[%s2056_s1 + $0x134] ss:$8 sps:$4 sm:$0xff]  }
  0x1b   :  { %932 = vmatpush1.bf16.msra.mxu1 %v1377_v26  ;;  %v1454_v15 = vld [vmem:[%s2056_s1 + $0x324] ss:$8 sps:$4 sm:$0xff]   ;;  %v1452_v17 = vld [vmem:[%s2056_s1 + $0x320] ss:$8 sps:$4 sm:$0xff]   ;;  %v1460_v19 = vld [vmem:[%s2056_s1 + $0x334] ss:$8 sps:$4 sm:$0xff]  }
  0x1c   :  { %1014 = vmatpush1.bf16.msra.mxu0 %v1378_v27  ;;  %933 = vmatprep.subr.bf16.mxu1 %v1379_v28  ;;  %v1455_v20 = vld [vmem:[%s2056_s1 + $0x130] ss:$8 sps:$4 sm:$0xff]   ;;  %v1463_v22 = vld [vmem:[%s2056_s1 + $0x144] ss:$8 sps:$4 sm:$0xff]   ;;  %v1461_v24 = vld [vmem:[%s2056_s1 + $0x140] ss:$8 sps:$4 sm:$0xff]  }
  0x1d   :  { %1015 = vmatprep.subr.bf16.mxu0 %v1381_v29  ;;  %v1458_v21 = vld [vmem:[%s2056_s1 + $0x330] ss:$8 sps:$4 sm:$0xff]   ;;  %v1466_v23 = vld [vmem:[%s2056_s1 + $0x344] ss:$8 sps:$4 sm:$0xff]   ;;  %v1464_v25 = vld [vmem:[%s2056_s1 + $0x340] ss:$8 sps:$4 sm:$0xff]  }
  0x1e   :  { %v1469_v26 = vld [vmem:[%s2056_s1 + $0x154] ss:$8 sps:$4 sm:$0xff]   ;;  %v1467_v28 = vld [vmem:[%s2056_s1 + $0x150] ss:$8 sps:$4 sm:$0xff]   ;;  %v1499_v50 = vld [vmem:[%s2056_s1 + $0x1a4] ss:$8 sps:$4 sm:$0xff]  }
  0x1f   :  { %934 = vmatpush1.bf16.msra.mxu1 %v1383_v30  ;;  %v1472_v27 = vld [vmem:[%s2056_s1 + $0x354] ss:$8 sps:$4 sm:$0xff]   ;;  %v1470_v29 = vld [vmem:[%s2056_s1 + $0x350] ss:$8 sps:$4 sm:$0xff]   ;;  %v1475_v30 = vld [vmem:[%s2056_s1 + $0x164] ss:$8 sps:$4 sm:$0xff]  }
  0x20   :  { %1016 = vmatpush1.bf16.msra.mxu0 %v1384_v31  ;;  %935 = vmatprep.subr.bf16.mxu1 %v1385_v32  ;;  %v1478_v31 = vld [vmem:[%s2056_s1 + $0x364] ss:$8 sps:$4 sm:$0xff]   ;;  %v1493_v46 = vld [vmem:[%s2056_s1 + $0x194] ss:$8 sps:$4 sm:$0xff]   ;;  %v1491_v48 = vld [vmem:[%s2056_s1 + $0x190] ss:$8 sps:$4 sm:$0xff]  }
  0x21   :  { %1017 = vmatprep.subr.bf16.mxu0 %v1387_v33  ;;  %v1867_v32 = vld [vmem:[%s2057_s0 + $0x8] sm:$0xff]  ;;  %v1872_v33 = vld [vmem:[%s2057_s0 + $0x18] sm:$0xff] }
  0x22   :  { %v1500_v53 = vld [vmem:[%s2056_s1 + $0x3a0] ss:$8 sps:$4 sm:$0xff]  }
  0x23   :  { %936 = vmatpush1.bf16.msra.mxu1 %v1389_v34  ;;  %v1473_v34 = vld [vmem:[%s2056_s1 + $0x160] ss:$8 sps:$4 sm:$0xff]  }
  0x24   :  { %1018 = vmatpush1.bf16.msra.mxu0 %v1390_v35  ;;  %937 = vmatprep.subr.bf16.mxu1 %v1391_v36  ;;  %v1476_v35 = vld [vmem:[%s2056_s1 + $0x360] ss:$8 sps:$4 sm:$0xff]   ;;  %v1170_v36 = vcombine.high %v1867_v32, %v1867_v32 }
  0x25   :  { %1019 = vmatprep.subr.bf16.mxu0 %v1393_v37  ;;  %v1174_v37 = vcombine.high %v1872_v33, %v1872_v33 }
  0x27   :  { %938 = vmatpush1.bf16.msra.mxu1 %v1395_v38  ;;  %v1481_v38 = vld [vmem:[%s2056_s1 + $0x174] ss:$8 sps:$4 sm:$0xff]  }
  0x28   :  { %1020 = vmatpush1.bf16.msra.mxu0 %v1396_v39  ;;  %939 = vmatprep.subr.bf16.mxu1 %v1397_v40  ;;  %v1484_v39 = vld [vmem:[%s2056_s1 + $0x374] ss:$8 sps:$4 sm:$0xff]   ;;  %v1479_v40 = vld [vmem:[%s2056_s1 + $0x170] ss:$8 sps:$4 sm:$0xff]  }
  0x29   :  { %1021 = vmatprep.subr.bf16.mxu0 %v1399_v41  ;;  %v1482_v41 = vld [vmem:[%s2056_s1 + $0x370] ss:$8 sps:$4 sm:$0xff]  }
  0x2b   :  { %940 = vmatpush1.bf16.msra.mxu1 %v1401_v42  ;;  %v1487_v42 = vld [vmem:[%s2056_s1 + $0x184] ss:$8 sps:$4 sm:$0xff]  }
  0x2c   :  { %1022 = vmatpush1.bf16.msra.mxu0 %v1402_v43  ;;  %941 = vmatprep.subr.bf16.mxu1 %v1403_v44  ;;  %v1490_v43 = vld [vmem:[%s2056_s1 + $0x384] ss:$8 sps:$4 sm:$0xff]   ;;  %v1485_v44 = vld [vmem:[%s2056_s1 + $0x180] ss:$8 sps:$4 sm:$0xff]  }
  0x2d   :  { %1023 = vmatprep.subr.bf16.mxu0 %v1405_v45  ;;  %v1488_v45 = vld [vmem:[%s2056_s1 + $0x380] ss:$8 sps:$4 sm:$0xff]  }
  0x2f   :  { %942 = vmatpush1.bf16.msra.mxu1 %v1407_v47  ;;  %v1496_v47 = vld [vmem:[%s2056_s1 + $0x394] ss:$8 sps:$4 sm:$0xff]  }
  0x30   :  { %1024 = vmatpush1.bf16.msra.mxu0 %v1408_v49  ;;  %943 = vmatprep.subr.bf16.mxu1 %v1409_v51  ;;  %v1494_v49 = vld [vmem:[%s2056_s1 + $0x390] ss:$8 sps:$4 sm:$0xff]   ;;  %v1502_v51 = vld [vmem:[%s2056_s1 + $0x3a4] ss:$8 sps:$4 sm:$0xff]  }
  0x31   :  { %1025 = vmatprep.subr.bf16.mxu0 %v1411_v52  ;;  %v1497_v52 = vld [vmem:[%s2056_s1 + $0x1a0] ss:$8 sps:$4 sm:$0xff]  }
  0x33   :  { %944 = vmatpush1.bf16.msra.mxu1 %v1413_v54  ;;  %v1505_v54 = vld [vmem:[%s2056_s1 + $0x1b4] ss:$8 sps:$4 sm:$0xff]  }
  0x34   :  { %1026 = vmatpush1.bf16.msra.mxu0 %v1414_v55  ;;  %945 = vmatprep.subr.bf16.mxu1 %v1415_v56  ;;  %v1508_v55 = vld [vmem:[%s2056_s1 + $0x3b4] ss:$8 sps:$4 sm:$0xff]   ;;  %v1503_v56 = vld [vmem:[%s2056_s1 + $0x1b0] ss:$8 sps:$4 sm:$0xff]  }
  0x35   :  { %1027 = vmatprep.subr.bf16.mxu0 %v1417_v57  ;;  %v1506_v57 = vld [vmem:[%s2056_s1 + $0x3b0] ss:$8 sps:$4 sm:$0xff]  }
  0x37   :  { %946 = vmatpush1.bf16.msra.mxu1 %v1419_v58  ;;  %v1511_v58 = vld [vmem:[%s2056_s1 + $0x1c4] ss:$8 sps:$4 sm:$0xff]  }
  0x38   :  { %1028 = vmatpush1.bf16.msra.mxu0 %v1420_v59  ;;  %947 = vmatprep.subr.bf16.mxu1 %v1421_v60  ;;  %v1514_v59 = vld [vmem:[%s2056_s1 + $0x3c4] ss:$8 sps:$4 sm:$0xff]   ;;  %v1509_v60 = vld [vmem:[%s2056_s1 + $0x1c0] ss:$8 sps:$4 sm:$0xff]  }
  0x39   :  { %1029 = vmatprep.subr.bf16.mxu0 %v1423_v61  ;;  %v1512_v61 = vld [vmem:[%s2056_s1 + $0x3c0] ss:$8 sps:$4 sm:$0xff]  }
  0x3b   :  { %948 = vmatpush1.bf16.msra.mxu1 %v1425_v62  ;;  %v1517_v62 = vld [vmem:[%s2056_s1 + $0x1d4] ss:$8 sps:$4 sm:$0xff]  }
  0x3c   :  { %1030 = vmatpush1.bf16.msra.mxu0 %v1426_v63  ;;  %949 = vmatprep.subr.bf16.mxu1 %v1427_v0  ;;  %v1520_v63 = vld [vmem:[%s2056_s1 + $0x3d4] ss:$8 sps:$4 sm:$0xff]   ;;  %v1515_v0 = vld [vmem:[%s2056_s1 + $0x1d0] ss:$8 sps:$4 sm:$0xff]  }
  0x3d   :  { %1031 = vmatprep.subr.bf16.mxu0 %v1429_v1  ;;  %v1518_v1 = vld [vmem:[%s2056_s1 + $0x3d0] ss:$8 sps:$4 sm:$0xff]  }
  0x3f   :  { %950 = vmatpush1.bf16.msra.mxu1 %v1431_v2  ;;  %v1523_v2 = vld [vmem:[%s2056_s1 + $0x1e4] ss:$8 sps:$4 sm:$0xff]  }
  0x40   :  { %1032 = vmatpush1.bf16.msra.mxu0 %v1432_v3  ;;  %960 = vmatprep.subr.bf16.mxu1 %v1437_v4  ;;  %v1526_v3 = vld [vmem:[%s2056_s1 + $0x3e4] ss:$8 sps:$4 sm:$0xff]   ;;  %v1521_v4 = vld [vmem:[%s2056_s1 + $0x1e0] ss:$8 sps:$4 sm:$0xff]  }
  0x41   :  { %1042 = vmatprep.subr.bf16.mxu0 %v1442_v5  ;;  %v1524_v5 = vld [vmem:[%s2056_s1 + $0x3e0] ss:$8 sps:$4 sm:$0xff]  }
  0x42   :  { %952 = vmatmul.mubr.bf16.vlgmr.msra.gmra.mrb[0].mxu1 %v1167_v6  ;;  %v1529_v6 = vld [vmem:[%s2056_s1 + $0x1f4] ss:$8 sps:$4 sm:$0xff]  }
  0x43   :  { %1034 = vmatmul.mubr.bf16.vlgmr.msra.gmra.mrb[0].mxu0 %v1171_v7  ;;  %961 = vmatpush1.bf16.msra.mxu1 %v1435_v8  ;;  %v1532_v7 = vld [vmem:[%s2056_s1 + $0x3f4] ss:$8 sps:$4 sm:$0xff]   ;;  %v1527_v8 = vld [vmem:[%s2056_s1 + $0x1f0] ss:$8 sps:$4 sm:$0xff]  }
  0x44   :  { %1043 = vmatpush1.bf16.msra.mxu0 %v1440_v9  ;;  %962 = vmatprep.subr.bf16.mxu1 %v1445_v10  ;;  %v1530_v9 = vld [vmem:[%s2056_s1 + $0x3f0] ss:$8 sps:$4 sm:$0xff]   ;;  %v1539_v10 = vld [vmem:[%s2056_s1 + $0x404] ss:$8 sps:$4 sm:$0xff]  }
  0x45   :  { %1044 = vmatprep.subr.bf16.mxu0 %v1448_v11  ;;  %992 = vmatprep.mubr.bf16.mxu1 %v1170_v36  ;;  %v1169_v11 = vcombine.low %v1867_v32, %v1867_v32 }
  0x46   :  { %1074 = vmatprep.mubr.bf16.mxu0 %v1174_v37  ;;  %v1124_v37 = vld [vmem:[%s2058_s2] sm:$0x3] }
  0x47   :  { %963 = vmatpush1.bf16.msra.mxu1 %v1443_v12  ;;  %v1173_v12 = vcombine.low %v1872_v33, %v1872_v33 }
  0x48   :  { %1045 = vmatpush1.bf16.msra.mxu0 %v1446_v13  ;;  %964 = vmatprep.subr.bf16.mxu1 %v1451_v14  ;;  %v1537_v13 = vld [vmem:[%s2056_s1 + $0x400] ss:$8 sps:$4 sm:$0xff]   ;;  %v1542_v14 = vld [vmem:[%s2056_s1 + $0x414] ss:$8 sps:$4 sm:$0xff]  }
  0x49   :  { %1046 = vmatprep.subr.bf16.mxu0 %v1454_v15  ;;  %v1540_v15 = vld [vmem:[%s2056_s1 + $0x410] ss:$8 sps:$4 sm:$0xff]  }
  0x4b   :  { %965 = vmatpush1.bf16.msra.mxu1 %v1449_v16  ;;  %v1562_v16 = vmov 0  }
  0x4c   :  { %1047 = vmatpush1.bf16.msra.mxu0 %v1452_v17  ;;  %966 = vmatprep.subr.bf16.mxu1 %v1457_v18  ;;  %v1545_v17 = vld [vmem:[%s2056_s1 + $0x424] ss:$8 sps:$4 sm:$0xff]   ;;  %v1543_v18 = vld [vmem:[%s2056_s1 + $0x420] ss:$8 sps:$4 sm:$0xff]  }
  0x4d   :  { %1048 = vmatprep.subr.bf16.mxu0 %v1460_v19  ;;  %v1548_v19 = vld [vmem:[%s2056_s1 + $0x434] ss:$8 sps:$4 sm:$0xff]  }
  0x4f   :  { %967 = vmatpush1.bf16.msra.mxu1 %v1455_v20  ;;  %v1546_v20 = vld [vmem:[%s2056_s1 + $0x430] ss:$8 sps:$4 sm:$0xff]  }
  0x50   :  { %1049 = vmatpush1.bf16.msra.mxu0 %v1458_v21  ;;  %968 = vmatprep.subr.bf16.mxu1 %v1463_v22  ;;  %v1551_v21 = vld [vmem:[%s2056_s1 + $0x444] ss:$8 sps:$4 sm:$0xff]   ;;  %v1549_v22 = vld [vmem:[%s2056_s1 + $0x440] ss:$8 sps:$4 sm:$0xff]  }
  0x51   :  { %1050 = vmatprep.subr.bf16.mxu0 %v1466_v23  ;;  %v1554_v23 = vld [vmem:[%s2056_s1 + $0x454] ss:$8 sps:$4 sm:$0xff]  }
  0x53   :  { %969 = vmatpush1.bf16.msra.mxu1 %v1461_v24  ;;  %v1552_v24 = vld [vmem:[%s2056_s1 + $0x450] ss:$8 sps:$4 sm:$0xff]  }
  0x54   :  { %1051 = vmatpush1.bf16.msra.mxu0 %v1464_v25  ;;  %970 = vmatprep.subr.bf16.mxu1 %v1469_v26  ;;  %v1557_v25 = vld [vmem:[%s2056_s1 + $0x464] ss:$8 sps:$4 sm:$0xff]   ;;  %v1555_v26 = vld [vmem:[%s2056_s1 + $0x460] ss:$8 sps:$4 sm:$0xff]  }
  0x55   :  { %1052 = vmatprep.subr.bf16.mxu0 %v1472_v27  ;;  %v1560_v27 = vld [vmem:[%s2056_s1 + $0x474] ss:$8 sps:$4 sm:$0xff]  }
  0x57   :  { %971 = vmatpush1.bf16.msra.mxu1 %v1467_v28  ;;  %v1558_v28 = vld [vmem:[%s2056_s1 + $0x470] ss:$8 sps:$4 sm:$0xff]  }
  0x58   :  { %1053 = vmatpush1.bf16.msra.mxu0 %v1470_v29  ;;  %972 = vmatprep.subr.bf16.mxu1 %v1475_v30  ;;  %v1561_v29 = vld [vmem:[%s2057_s0 + $0x20] ss:$0 sps:$4 sm:$0xff]  }
  0x59   :  { %1054 = vmatprep.subr.bf16.mxu0 %v1478_v31 }
  0x5b   :  { %973 = vmatpush1.bf16.msra.mxu1 %v1473_v34  ;;  %v1126_v34 = vlaneseq }
  0x5c   :  { %1055 = vmatpush1.bf16.msra.mxu0 %v1476_v35  ;;  %974 = vmatprep.subr.bf16.mxu1 %v1481_v38 }
  0x5d   :  { %1056 = vmatprep.subr.bf16.mxu0 %v1484_v39  ;;  %v1127_v35 = vshrl.u32 %v1126_v34, 7  ;;  %v1138_v39 = vld [vmem:[%s2059_s3] sm:$0x3] }
  0x5f   :  { %975 = vmatpush1.bf16.msra.mxu1 %v1479_v40  ;;  %v1128_v36 = vsub.s32 0, %v1127_v35  ;;  %v1132_v38 = vsub.s32 1, %v1127_v35 }
  0x60   :  { %1057 = vmatpush1.bf16.msra.mxu0 %v1482_v41  ;;  %976 = vmatprep.subr.bf16.mxu1 %v1487_v42 }
  0x61   :  { %1058 = vmatprep.subr.bf16.mxu0 %v1490_v43  ;;  %v1129_v40 = vrot.slane %v1124_v37, %v1128_v36  ;;  %v1133_v42 = vrot.slane %v1124_v37, %v1132_v38 }
  0x63   :  { %977 = vmatpush1.bf16.msra.mxu1 %v1485_v44  ;;  %v1143_v44 = vrot.slane %v1138_v39, %v1128_v36 }
  0x64   :  { %1059 = vmatpush1.bf16.msra.mxu0 %v1488_v45  ;;  %978 = vmatprep.subr.bf16.mxu1 %v1493_v46 }
  0x65   :  { %1060 = vmatprep.subr.bf16.mxu0 %v1496_v47  ;;  %v1147_v47 = vrot.slane %v1138_v39, %v1132_v38 }
  0x67   :  { %979 = vmatpush1.bf16.msra.mxu1 %v1491_v48 }
  0x68   :  { %1061 = vmatpush1.bf16.msra.mxu0 %v1494_v49  ;;  %980 = vmatprep.subr.bf16.mxu1 %v1499_v50 }
  0x69   :  { %1062 = vmatprep.subr.bf16.mxu0 %v1502_v51 }
  0x6b   :  { %981 = vmatpush1.bf16.msra.mxu1 %v1497_v52 }
  0x6c   :  { %1063 = vmatpush1.bf16.msra.mxu0 %v1500_v53  ;;  %982 = vmatprep.subr.bf16.mxu1 %v1505_v54 }
  0x6d   :  { %1064 = vmatprep.subr.bf16.mxu0 %v1508_v55 }
  0x6f   :  { %983 = vmatpush1.bf16.msra.mxu1 %v1503_v56 }
  0x70   :  { %1065 = vmatpush1.bf16.msra.mxu0 %v1506_v57  ;;  %984 = vmatprep.subr.bf16.mxu1 %v1511_v58 }
  0x71   :  { %1066 = vmatprep.subr.bf16.mxu0 %v1514_v59 }
  0x73   :  { %985 = vmatpush1.bf16.msra.mxu1 %v1509_v60 }
  0x74   :  { %1067 = vmatpush1.bf16.msra.mxu0 %v1512_v61  ;;  %986 = vmatprep.subr.bf16.mxu1 %v1517_v62 }
  0x75   :  { %1068 = vmatprep.subr.bf16.mxu0 %v1520_v63 }
  0x77   :  { %987 = vmatpush1.bf16.msra.mxu1 %v1515_v0 }
  0x78   :  { %1069 = vmatpush1.bf16.msra.mxu0 %v1518_v1  ;;  %988 = vmatprep.subr.bf16.mxu1 %v1523_v2 }
  0x79   :  { %1070 = vmatprep.subr.bf16.mxu0 %v1526_v3 }
  0x7b   :  { %989 = vmatpush1.bf16.msra.mxu1 %v1521_v4 }
  0x7c   :  { %1071 = vmatpush1.bf16.msra.mxu0 %v1524_v5  ;;  %990 = vmatprep.subr.bf16.mxu1 %v1529_v6 }
  0x7d   :  { %1072 = vmatprep.subr.bf16.mxu0 %v1532_v7 }
  0x7f   :  { %991 = vmatpush1.bf16.msra.mxu1 %v1527_v8 }
  0x80   :  { %1073 = vmatpush1.bf16.msra.mxu0 %v1530_v9 }
  0x81   :  { %1083 = vmatprep.subr.bf16.mxu0 %v1539_v10 }
  0x82   :  { %993 = vmatmul.mubr.bf16.vlgmr.msra.gmra.mrb[0].mxu1 %v1169_v11 }
  0x83   :  { %1075 = vmatmul.mubr.bf16.vlgmr.msra.gmra.mrb[0].mxu0 %v1173_v12 }
  0x84   :  { %1084 = vmatpush1.bf16.msra.mxu0 %v1537_v13  ;;  %1115 = vmatprep.mubr.bf16.mxu0 %v1562_v16 }
  0x85   :  { %1085 = vmatprep.subr.bf16.mxu0 %v1542_v14 }
  0x88   :  { %1086 = vmatpush1.bf16.msra.mxu0 %v1540_v15 }
  0x89   :  { %1087 = vmatprep.subr.bf16.mxu0 %v1545_v17 }
  0x8c   :  { %1088 = vmatpush1.bf16.msra.mxu0 %v1543_v18 }
  0x8d   :  { %1089 = vmatprep.subr.bf16.mxu0 %v1548_v19 }
  0x90   :  { %1090 = vmatpush1.bf16.msra.mxu0 %v1546_v20 }
  0x91   :  { %1091 = vmatprep.subr.bf16.mxu0 %v1551_v21 }
  0x94   :  { %1092 = vmatpush1.bf16.msra.mxu0 %v1549_v22 }
  0x95   :  { %1093 = vmatprep.subr.bf16.mxu0 %v1554_v23 }
  0x98   :  { %1094 = vmatpush1.bf16.msra.mxu0 %v1552_v24 }
  0x99   :  { %1095 = vmatprep.subr.bf16.mxu0 %v1557_v25 }
  0x9c   :  { %1096 = vmatpush1.bf16.msra.mxu0 %v1555_v26 }
  0x9d   :  { %1097 = vmatprep.subr.bf16.mxu0 %v1560_v27 }
  0xa0   :  { %1098 = vmatpush1.bf16.msra.mxu0 %v1558_v28 }
  0xa3   :  { %1116 = vmatmul.mubr.bf16.vlgmr.msra.gmra.mrb[0].mxu0 %v1561_v29 }
 0x155   :  { %v994_v30 = vpop.f32.mrb[0].mxu1 }
 0x156   :  { %v996_v31 = vpop.f32.mrb[1].mxu1 }
 0x157   :  { %v998_v32 = vpop.f32.mrb[2].mxu1 }
 0x158   :  { %v999_v33 = vpop.f32.mrb[3].mxu1 }
 0x176   :  { %v1117_v41 = vpop.f32.mrb[0].mxu0 }
 0x177   :  { %v1322_v43 = vadd.f32 %v1117_v41, %v994_v30  ;;  %v1119_v45 = vpop.f32.mrb[1].mxu0 }
 0x178   :  { %v1323_v46 = vadd.f32 %v1119_v45, %v996_v31  ;;  %v1121_v48 = vpop.f32.mrb[2].mxu0 }
 0x179   :  { %v1136_v49 = vmul.f32 %v1322_v43, %v1129_v40  ;;  %v1122_v50 = vpop.f32.mrb[3].mxu0 }
 0x17a   :  { %v1137_v51 = vmul.f32 %v1323_v46, %v1133_v42 }
 0x17b   :  { %v1150_v52 = vadd.f32 %v1143_v44, %v1136_v49 }
 0x17c   :  { %v1151_v53 = vadd.f32 %v1147_v47, %v1137_v51 }
 0x17d   :  { %v1152_v54 = vmax.f32 %v1150_v52, 0.0 }
 0x17e   :  { %v1153_v55 = vmax.f32 %v1151_v53, 0.0 }
 0x180   :  { %v1321_v56 = vpack.c.bf16 %v1153_v55, %v1152_v54 }
 0x182   :  { %1162 = vst [vmem:[%s2060_s4] sm:$0xff] %v1321_v56 }

// kernel: _lambda_.15
= control target key start
LH: loop header
LB: loop body
LE: loop exit
PB: predicated region body
PF: predicated region fallthrough
CT: control target
= control target key end

     0   :  { %v33_v9 = vlaneseq  ;;  %vm98_vm0 = vcmask 1041409   ;;  %s906_s0 = inlined_call_operand.vmem [shape: bf16[2,1,256], index: 0, kind: input, shape index: {}]   ;;  %s907_s1 = inlined_call_operand.vmem [shape: bf16[256,256], index: 1, kind: input, shape index: {}]   ;;  %s908_s2 = inlined_call_operand.vmem [shape: f32[1,256], index: 2, kind: input, shape index: {}]   ;;  %s909_s3 = inlined_call_operand.vmem [shape: f32[1,256], index: 3, kind: input, shape index: {}]   ;;  %s910_s4 = inlined_call_operand.vmem [shape: bf16[256,128], index: 4, kind: input, shape index: {}]   ;;  %s911_s5 = inlined_call_operand.vmem [shape: f32[1,128], index: 5, kind: input, shape index: {}]   ;;  %s912_s6 = inlined_call_operand.hbm [shape: f32[2,128], index: 6, kind: output, shape index: {}]  }
   0x1   :  { %v601_v0 = vld [vmem:[%s907_s1 + $0x4] ss:$8 sps:$4 sm:$0xff]   ;;  %v603_v1 = vld [vmem:[%s907_s1] ss:$8 sps:$4 sm:$0xff]   ;;  %v604_v2 = vld [vmem:[%s907_s1 + $0x14] ss:$8 sps:$4 sm:$0xff]  }
   0x2   :  { %266 = vmatprep.subr.bf16.mxu0 %v601_v0  ;;  %v606_v3 = vld [vmem:[%s907_s1 + $0x10] ss:$8 sps:$4 sm:$0xff]   ;;  %v607_v4 = vld [vmem:[%s907_s1 + $0x24] ss:$8 sps:$4 sm:$0xff]   ;;  %v609_v5 = vld [vmem:[%s907_s1 + $0x20] ss:$8 sps:$4 sm:$0xff]  }
   0x3   :  { %267 = vmatpush1.bf16.msra.mxu0 %v603_v1  ;;  %v610_v6 = vld [vmem:[%s907_s1 + $0x34] ss:$8 sps:$4 sm:$0xff]   ;;  %v612_v7 = vld [vmem:[%s907_s1 + $0x30] ss:$8 sps:$4 sm:$0xff]   ;;  %v613_v8 = vld [vmem:[%s907_s1 + $0x44] ss:$8 sps:$4 sm:$0xff]  }
   0x4   :  { %268 = vmatprep.subr.bf16.mxu0 %v604_v2  ;;  %v615_v10 = vld [vmem:[%s907_s1 + $0x40] ss:$8 sps:$4 sm:$0xff]   ;;  %v616_v11 = vld [vmem:[%s907_s1 + $0x54] ss:$8 sps:$4 sm:$0xff]   ;;  %v758_v12 = vshrl.u32 %v33_v9, 7 }
   0x5   :  { %v618_v13 = vld [vmem:[%s907_s1 + $0x50] ss:$8 sps:$4 sm:$0xff]   ;;  %v619_v14 = vld [vmem:[%s907_s1 + $0x64] ss:$8 sps:$4 sm:$0xff]   ;;  %v621_v16 = vld [vmem:[%s907_s1 + $0x60] ss:$8 sps:$4 sm:$0xff]  }
   0x6   :  { %v39_v15 = vsub.s32 2, %v758_v12  ;;  %v773_v17 = vld [vmem:[%s906_s0] sm:$0x3]  ;;  %v26_v18 = vld [vmem:[%s906_s0 + $0x2] sm:$0x3]  ;;  %v651_v26 = vld [vmem:[%s910_s4 + $0x48] sm:$0xff]  }
   0x7   :  { %269 = vmatpush1.bf16.msra.mxu0 %v606_v3  ;;  %v622_v19 = vld [vmem:[%s907_s1 + $0x74] ss:$8 sps:$4 sm:$0xff]   ;;  %v27_v20 = vunpack.c.l.bf16 %v773_v17  ;;  %v28_v21 = vunpack.c.l.bf16 %v26_v18  ;;  %v649_v22 = vld [vmem:[%s910_s4 + $0x40] sm:$0xff]   ;;  %v624_v27 = vld [vmem:[%s907_s1 + $0x70] ss:$8 sps:$4 sm:$0xff]  }
   0x8   :  { %270 = vmatprep.subr.bf16.mxu0 %v607_v4  ;;  %v650_v23 = vld [vmem:[%s910_s4] sm:$0xff]   ;;  %578 = vmatprep.subr.bf16.mxu1 %v649_v22  ;;  %v652_v30 = vld [vmem:[%s910_s4 + $0x8] sm:$0xff]   ;;  %v653_v31 = vld [vmem:[%s910_s4 + $0x50] sm:$0xff]  }
   0x9   :  { %v40_v24 = vrot.slane %v27_v20, %v39_v15  ;;  %v48_v25 = vrot.slane %v28_v21, %v39_v15  ;;  %579 = vmatpush3.bf16.msra.mxu1 %v650_v23  ;;  %v625_v32 = vld [vmem:[%s907_s1 + $0x84] ss:$8 sps:$4 sm:$0xff]   ;;  %v627_v35 = vld [vmem:[%s907_s1 + $0x80] ss:$8 sps:$4 sm:$0xff]   ;;  %v628_v36 = vld [vmem:[%s907_s1 + $0x94] ss:$8 sps:$4 sm:$0xff]  }
   0xa   :  { %580 = vmatprep.subr.bf16.mxu1 %v651_v26  ;;  %v654_v38 = vld [vmem:[%s910_s4 + $0x10] sm:$0xff]   ;;  %v655_v39 = vld [vmem:[%s910_s4 + $0x58] sm:$0xff]   ;;  %v657_v44 = vld [vmem:[%s910_s4 + $0x60] sm:$0xff]  }
   0xb   :  { %271 = vmatpush1.bf16.msra.mxu0 %v609_v5  ;;  %v54_v28 = vpack.c.bf16 %v40_v24, %v40_v24  ;;  %v56_v29 = vpack.c.bf16 %v48_v25, %v48_v25  ;;  %v656_v41 = vld [vmem:[%s910_s4 + $0x18] sm:$0xff]   ;;  %v631_v45 = vld [vmem:[%s907_s1 + $0xa4] ss:$8 sps:$4 sm:$0xff]  }
   0xc   :  { %272 = vmatprep.subr.bf16.mxu0 %v610_v6  ;;  %v630_v42 = vld [vmem:[%s907_s1 + $0x90] ss:$8 sps:$4 sm:$0xff]  }
   0xd   :  { %v94_v33 = vunpack.c.l.b16 %v54_v28  ;;  %v96_v34 = vunpack.c.l.b16 %v56_v29  ;;  %581 = vmatpush3.bf16.msra.mxu1 %v652_v30 }
   0xe   :  { %582 = vmatprep.subr.bf16.mxu1 %v653_v31 }
   0xf   :  { %273 = vmatpush1.bf16.msra.mxu0 %v612_v7  ;;  %v100_v37 = vrot.slane %v96_v34, 7 }
  0x10   :  { %274 = vmatprep.subr.bf16.mxu0 %v613_v8 }
  0x11   :  { %v101_v40 = vsel %vm98_vm0, %v100_v37, %v94_v33  ;;  %583 = vmatpush3.bf16.msra.mxu1 %v654_v38 }
  0x12   :  { %v103_v43 = vpack.c.b16 %v101_v40, %v101_v40  ;;  %584 = vmatprep.subr.bf16.mxu1 %v655_v39 }
  0x13   :  { %275 = vmatpush1.bf16.msra.mxu0 %v615_v10 }
  0x14   :  { %276 = vmatprep.subr.bf16.mxu0 %v616_v11  ;;  %298 = vmatprep.mubr.bf16.mxu0 %v103_v43 }
  0x17   :  { %277 = vmatpush1.bf16.msra.mxu0 %v618_v13 }
  0x18   :  { %278 = vmatprep.subr.bf16.mxu0 %v619_v14 }
  0x1b   :  { %279 = vmatpush1.bf16.msra.mxu0 %v621_v16 }
  0x1c   :  { %280 = vmatprep.subr.bf16.mxu0 %v622_v19 }
  0x1f   :  { %281 = vmatpush1.bf16.msra.mxu0 %v624_v27 }
  0x20   :  { %282 = vmatprep.subr.bf16.mxu0 %v625_v32 }
  0x23   :  { %283 = vmatpush1.bf16.msra.mxu0 %v627_v35 }
  0x24   :  { %284 = vmatprep.subr.bf16.mxu0 %v628_v36 }
  0x25   :  { %11 = vsyncpa [#allocation3], 0  ;;  %585 = vmatpush3.bf16.msra.mxu1 %v656_v41  ;;  %v658_v46 = vld [vmem:[%s910_s4 + $0x20] sm:$0xff]   ;;  %v35_v48 = vsub.s32 0, %v758_v12  ;;  %v659_v49 = vld [vmem:[%s910_s4 + $0x68] sm:$0xff]   ;;  %v315_v11 = vsub.s32 1, %v758_v12 }
  0x26   :  { %v633_v47 = vld [vmem:[%s907_s1 + $0xa0] ss:$8 sps:$4 sm:$0xff]   ;;  %586 = vmatprep.subr.bf16.mxu1 %v657_v44  ;;  %v634_v50 = vld [vmem:[%s907_s1 + $0xb4] ss:$8 sps:$4 sm:$0xff]   ;;  %v636_v51 = vld [vmem:[%s907_s1 + $0xb0] ss:$8 sps:$4 sm:$0xff]  }
  0x27   :  { %285 = vmatpush1.bf16.msra.mxu0 %v630_v42  ;;  %v44_v52 = vrot.slane %v28_v21, %v35_v48  ;;  %v637_v53 = vld [vmem:[%s907_s1 + $0xc4] ss:$8 sps:$4 sm:$0xff]   ;;  %v639_v54 = vld [vmem:[%s907_s1 + $0xc0] ss:$8 sps:$4 sm:$0xff]   ;;  %v36_v55 = vrot.slane %v27_v20, %v35_v48  ;;  %v640_v57 = vld [vmem:[%s907_s1 + $0xd4] ss:$8 sps:$4 sm:$0xff]  }
  0x28   :  { %286 = vmatprep.subr.bf16.mxu0 %v631_v45  ;;  %v642_v58 = vld [vmem:[%s907_s1 + $0xd0] ss:$8 sps:$4 sm:$0xff]   ;;  %v643_v61 = vld [vmem:[%s907_s1 + $0xe4] ss:$8 sps:$4 sm:$0xff]   ;;  %v645_v62 = vld [vmem:[%s907_s1 + $0xe0] ss:$8 sps:$4 sm:$0xff]  }
  0x29   :  { %587 = vmatpush3.bf16.msra.mxu1 %v658_v46  ;;  %v55_v56 = vpack.c.bf16 %v44_v52, %v44_v52  ;;  %v53_v59 = vpack.c.bf16 %v36_v55, %v36_v55  ;;  %v646_v1 = vld [vmem:[%s907_s1 + $0xf4] ss:$8 sps:$4 sm:$0xff]   ;;  %v648_v2 = vld [vmem:[%s907_s1 + $0xf0] ss:$8 sps:$4 sm:$0xff]   ;;  %v660_v5 = vld [vmem:[%s910_s4 + $0x28] sm:$0xff]  }
  0x2a   :  { %588 = vmatprep.subr.bf16.mxu1 %v659_v49  ;;  %v661_v6 = vld [vmem:[%s910_s4 + $0x70] sm:$0xff]   ;;  %v663_v8 = vld [vmem:[%s910_s4 + $0x78] sm:$0xff]   ;;  %v307_v10 = vld [vmem:[%s908_s2] sm:$0x3] }
  0x2b   :  { %287 = vmatpush1.bf16.msra.mxu0 %v633_v47  ;;  %v95_v60 = vunpack.c.l.b16 %v55_v56  ;;  %v93_v63 = vunpack.c.l.b16 %v53_v59  ;;  %v662_v7 = vld [vmem:[%s910_s4 + $0x30] sm:$0xff]   ;;  %v664_v9 = vld [vmem:[%s910_s4 + $0x38] sm:$0xff]   ;;  %v321_v13 = vld [vmem:[%s909_s3] sm:$0x3]  ;;  %v312_v14 = vrot.slane %v307_v10, %v35_v48  ;;  %v316_v15 = vrot.slane %v307_v10, %v315_v11  ;;  %s689_s4 = smov [#allocation2]  }
  0x2c   :  { %288 = vmatprep.subr.bf16.mxu0 %v634_v50  ;;  %v326_v16 = vrot.slane %v321_v13, %v35_v48  ;;  %v330_v18 = vrot.slane %v321_v13, %v315_v11  ;;  %v561_v31 = vld [vmem:[%s911_s5] ss:$0 sm:$0xff]  ;;  %s521_s25 = sshll.u32 %s689_s4, 4  ;;  %s522_s25 = int_to_ptr.vmem [resolvable:$true] %s521_s25 }
  0x2d   :  { %v97_v0 = vrot.slane %v95_v60, 7  ;;  %589 = vmatpush3.bf16.msra.mxu1 %v660_v5  ;;  %s665_s26 = scalar_lea.vmem %s522_s25, 32  ;;  %p670_p1 = scmp.lt.s32.totalorder %s522_s25, %s522_s25 }
  0x2e   :  { %590 = vmatprep.subr.bf16.mxu1 %v661_v6  ;;  %p666_p0 = scmp.ne.s32.totalorder %s522_s25, %s665_s26  ;;  %p671_p2 = scmp.lt.s32.totalorder %s665_s26, %s665_s26 }
  0x2f   :  { %289 = vmatpush1.bf16.msra.mxu0 %v636_v51  ;;  %v99_v3 = vsel %vm98_vm0, %v97_v0, %v93_v63 }
  0x30   :  { %290 = vmatprep.subr.bf16.mxu0 %v637_v53  ;;  %v102_v4 = vpack.c.b16 %v99_v3, %v99_v3  ;;  %p672_p3 = por %p671_p2, %p670_p1 }
  0x31   :  { %591 = vmatpush3.bf16.msra.mxu1 %v662_v7 }
  0x32   :  { %592 = vmatprep.subr.bf16.mxu1 %v663_v8  ;;  %p673_p4 = pnand %p672_p3, %p666_p0 }
  0x33   :  { %291 = vmatpush1.bf16.msra.mxu0 %v639_v54 }
  0x34   :  { %292 = vmatprep.subr.bf16.mxu0 %v640_v57 }
  0x35   :  { %593 = vmatpush3.bf16.msra.mxu1 %v664_v9 }
  0x37   :  { %293 = vmatpush1.bf16.msra.mxu0 %v642_v58 }
  0x38   :  { %294 = vmatprep.subr.bf16.mxu0 %v643_v61 }
  0x3b   :  { %295 = vmatpush1.bf16.msra.mxu0 %v645_v62 }
  0x3c   :  { %296 = vmatprep.subr.bf16.mxu0 %v646_v1 }
  0x3f   :  { %297 = vmatpush1.bf16.msra.mxu0 %v648_v2 }
  0x42   :  { %299 = vmatmul.mubr.bf16.vlgmr.msra.gmra.mrb[0].mxu0 %v102_v4 }
 0x115   :  { %v300_v17 = vpop.f32.mrb[0].mxu0 }
 0x116   :  { %v319_v19 = vmul.f32 %v312_v14, %v300_v17  ;;  %v302_v20 = vpop.f32.mrb[1].mxu0 }
 0x117   :  { %v320_v21 = vmul.f32 %v316_v15, %v302_v20  ;;  %v304_v22 = vpop.f32.mrb[2].mxu0 }
 0x118   :  { %v333_v23 = vadd.f32 %v326_v16, %v319_v19  ;;  %v305_v24 = vpop.f32.mrb[3].mxu0 }
 0x119   :  { %v334_v25 = vadd.f32 %v330_v18, %v320_v21 }
 0x11a   :  { %v335_v26 = vmax.f32 %v333_v23, 0.0 }
 0x11b   :  { %v336_v27 = vmax.f32 %v334_v25, 0.0 }
 0x11c   :  { %v337_v12 = vpack.c.bf16 %v335_v26, %v335_v26 }
 0x11d   :  { %v338_v28 = vpack.c.bf16 %v336_v27, %v336_v27 }
 0x11f   :  { %506 = vmatprep.mubr.bf16.mxu1 %v338_v28 }
 0x120   :  { %507 = vmatmul.mubr.bf16.vlgmr.msra.gmra.mrb[0].mxu1 %v337_v12 }
 0x1f3   :  { %v594_v29 = vpop.f32.mrb[0].mxu1 }
 0x1f4   :  { %v595_v30 = vpop.f32.mrb[1].mxu1 }
 0x1f5   :  { %v596_v32 = vadd.f32 %v595_v30, %v594_v29  ;;  %v597_v33 = vpop.f32.mrb[2].mxu1 }
 0x1f6   :  { %v598_v34 = vpop.f32.mrb[3].mxu1 }
 0x1f7   :  { %v509_v35 = vadd.f32 %v596_v32, %v561_v31 }
 0x1f9   :  { %514 = vst [vmem:[#allocation2] sm:$0x3] %v509_v35 }
 0x1fa   :  { %676 = shalt.err (!%p673_p4)
}
 0x1fb   :  { %s677_s29 = scalar_lea.hbm %s912_s6, 32 }
 0x1fc   :  { %p678_p5 = scmp.ne.s32.totalorder %s912_s6, %s677_s29  ;;  %p681_p6 = scmp.lt.u32.totalorder %s677_s29, %s912_s6 }
 0x1fe   :  { %p683_p7 = pnand %p681_p6, %p678_p5 }
 0x200   :  { %686 = shalt.err (!%p683_p7)
}
 0x201   :  { %524 = dma.vmem_to_hbm [thread:$0]  %s522_s25, 32, %s912_s6, [#allocation3]  }
 0x202   :  { %687 = dma.done.wait [#allocation3], 32  }
 0x203   :  { %688 = vsyncadd [#allocation3], 4294967264 }
 0x204   :  { %528 = vsyncpa [#allocation3], 1 }

</bundles_post_ra>
